<compile_context>
chip_gen: v5e
topology: v5e:2x2
jax: 0.10.0
libtpu: 0.0.40
codegen_flags: <defaults>
</compile_context>

<pallas_src>
import functools

import jax
import jax.numpy as jnp
from jax.experimental import pallas as pl
from jax.experimental.pallas import tpu as pltpu


def _dcgan_convt_kernel(x_ref, w_ref, shift_ref, o_ref, *,
                        H, W, apply_bn_act, negative_slope):
    """One block of B images, all 4 output-pixel parities.

    x_ref:     (B, R, Cin)       f32   zero-padded NHWC images, rows flattened (R = (H+3)*(W+2)).
    w_ref:     (4, 4*Cin, Cout)  bf16  fused per-parity sub-kernels (BN scale folded in);
                                       parity p = 2*ry + rx, K axis ordered (dy, dx, ci).
    shift_ref: (1, Cout)         f32   BN shift (ignored on the last layer).
    o_ref:     (B, 2, L, 2*Cout) bf16  per-ry slabs with rx packed along lanes; columns px >= W of
                                       each image row are junk and dropped in the wrapper.
    """
    B, R, Cin = x_ref.shape
    Cout = w_ref.shape[2]
    Wp = W + 2
    L = H * Wp
    M = B * L

    # The 9 unique (sy, sx) bands: sliced from the f32 ref and cast to bf16 exactly once per step.
    bands = {}
    for sy in range(3):
        for sx in range(3):
            s = sy * Wp + sx
            band = x_ref[:, s:s + L, :].astype(jnp.bfloat16)          # (B, L, Cin)
            bands[(sy, sx)] = band.reshape(M, Cin)

    if apply_bn_act:
        # Hoisted once: JAX does not CSE broadcast_in_dim, so don't re-emit it per parity.
        shift_b = jnp.broadcast_to(shift_ref[...], (M, Cout))

    split_store = (Cout % 128 == 0)

    for ry in range(2):
        ys = []
        for rx in range(2):
            p = 2 * ry + rx
            # Fused K = 4*Cin contraction: concat the four (dy, dx) taps along the lane axis.
            lhs = jnp.concatenate(
                [bands[(ry + dy, rx + dx)] for dy in range(2) for dx in range(2)],
                axis=-1)                                              # (M, 4*Cin) bf16
            acc = jnp.dot(lhs, w_ref[p], preferred_element_type=jnp.float32)
            if apply_bn_act:
                acc = acc + shift_b                                   # BN shift (scale is in w)
                acc = jnp.where(acc > 0, acc, negative_slope * acc)   # LeakyReLU(0.2)
            ys.append(acc.astype(o_ref.dtype))
        if split_store:
            # Cout is a multiple of 128: two lane-aligned, unmasked stores (no concat copy).
            o_ref[:, ry, :, 0:Cout] = ys[0].reshape(B, L, Cout)
            o_ref[:, ry, :, Cout:2 * Cout] = ys[1].reshape(B, L, Cout)
        else:
            # Pack the two rx parities along lanes -> a single, denser (B, L, 2*Cout) store.
            o_ref[:, ry, :, :] = jnp.concatenate(ys, axis=-1).reshape(B, L, 2 * Cout)


def _vmem_bytes_estimate(B, R, L, Cin, Cout):
    """Rough per-step VMEM working set (double-buffered pallas blocks + in-kernel temporaries)."""
    M = B * L
    x_blk = 2 * B * R * Cin * 4                 # f32 input block (double-buffered)
    w_blk = 2 * 4 * (4 * Cin) * Cout * 2        # bf16 fused weights
    s_blk = 2 * max(Cout, 128) * 4              # BN shift row
    o_blk = 2 * B * 2 * L * (2 * Cout) * 2      # bf16 output block (double-buffered)
    tmp = (M * Cin * 2 * (9 + 2 * 4)            # 9 cached bands + live fused LHS
           + M * Cout * 4 * 3                   # f32 accumulator / shift broadcast
           + M * 2 * Cout * 2)                  # bf16 store staging
    return x_blk + w_blk + s_blk + o_blk + tmp


def _pick_image_block(N, R, L, Cin, Cout, budget=40 * 1024 * 1024):
    """Largest divisor B of N with B*L >= ~256 MXU rows that fits the VMEM budget."""
    if L % 8 != 0:
        return 1                                # keep (B, L, *) <-> (B*L, *) reshapes layout-clean
    target = max(1, -(-256 // L))               # ceil(256 / L)
    for B in range(min(N, target), 0, -1):
        if N % B == 0 and _vmem_bytes_estimate(B, R, L, Cin, Cout) <= budget:
            return B
    return 1


def dcgan_conv_transpose2d(x, w_t, gamma, beta, running_mean, running_var, *,
                           stride=2, padding=1, is_last_layer=False,
                           negative_slope=0.2, eps=1e-5):
    """x: (N, Cin, H, W) NCHW.  w_t: (Cin, Cout, 4, 4) PyTorch ConvTranspose2d weight.

    is_last_layer=False: conv_transpose -> BatchNorm2d (running stats) -> LeakyReLU(0.2)
    is_last_layer=True : conv_transpose only.
    """
    N, Cin, H, W = x.shape
    Cin_w, Cout, kH, kW = w_t.shape
    assert Cin == Cin_w
    assert (kH, kW, stride, padding) == (4, 4, 2, 1), "specialized to DCGAN k=4, s=2, p=1"

    Wp = W + 2
    L = H * Wp                  # rows produced per parity (2 junk columns per image row)
    R = (H + 3) * Wp            # padded, flattened input rows

    # NCHW -> zero-padded NHWC, rows flattened.  Kept f32 in HBM so the odd-offset band slices
    # stay plain 32-bit loads; cast to bf16 once per band inside the kernel.
    xp = jnp.transpose(x, (0, 2, 3, 1)).astype(jnp.float32)
    xp = jnp.pad(xp, ((0, 0), (1, 2), (1, 1), (0, 0)))            # (N, H+3, W+2, Cin)
    xf = xp.reshape(N, R, Cin)

    # Inference-mode BN folded into a per-channel weight scale + bias shift.
    if is_last_layer:
        scale = jnp.ones((Cout,), jnp.float32)
        shift = jnp.zeros((1, Cout), jnp.float32)
    else:
        inv_std = gamma.astype(jnp.float32) * jax.lax.rsqrt(
            running_var.astype(jnp.float32) + eps)
        scale = inv_std
        shift = (beta.astype(jnp.float32)
                 - running_mean.astype(jnp.float32) * inv_std).reshape(1, Cout)

    # Sub-pixel decomposition, fused over the 4 (dy,dx) taps:
    #   out[n, co, 2py+ry, 2px+rx] = sum_{dy,dx,ci} xpad[n, py+ry+dy, px+rx+dx, ci]
    #                                              * w_t[ci, co, 3-2dy-ry, 3-2dx-rx]
    w32 = w_t.astype(jnp.float32) * scale[None, :, None, None]   # fold BN scale into the weight
    parity_blocks = []
    for ry in range(2):
        for rx in range(2):
            taps = [w32[:, :, 3 - 2 * dy - ry, 3 - 2 * dx - rx]   # (Cin, Cout)
                    for dy in range(2) for dx in range(2)]
            parity_blocks.append(jnp.concatenate(taps, axis=0))   # (4*Cin, Cout)
    w_fused = jnp.stack(parity_blocks, axis=0).astype(jnp.bfloat16)   # (4, 4*Cin, Cout)

    B = _pick_image_block(N, R, L, Cin, Cout)
    vmem_need = _vmem_bytes_estimate(B, R, L, Cin, Cout)
    vmem_limit = min(64 * 1024 * 1024,                            # v7x physical VMEM cap
                     max(32 * 1024 * 1024, int(vmem_need * 1.25)))

    kernel = functools.partial(_dcgan_convt_kernel, H=H, W=W,
                               apply_bn_act=not is_last_layer,
                               negative_slope=negative_slope)

    cost = pl.CostEstimate(
        flops=int(2 * N * 4 * L * (4 * Cin) * Cout),
        transcendentals=0,
        bytes_accessed=int(N * R * Cin * 4 + 16 * Cin * Cout * 2 + Cout * 4
                           + N * 2 * L * 2 * Cout * 2))

    out = pl.pallas_call(
        kernel,
        out_shape=jax.ShapeDtypeStruct((N, 2, L, 2 * Cout), jnp.bfloat16),
        grid_spec=pltpu.PrefetchScalarGridSpec(
            num_scalar_prefetch=0,
            grid=(N // B,),                                              # image blocks
            in_specs=[
                pl.BlockSpec((B, R, Cin), lambda n: (n, 0, 0)),          # images: fetched once
                pl.BlockSpec((4, 4 * Cin, Cout), lambda n: (0, 0, 0)),   # fused weights: resident
                pl.BlockSpec((1, Cout), lambda n: (0, 0)),               # BN shift: resident
            ],
            out_specs=pl.BlockSpec((B, 2, L, 2 * Cout), lambda n: (n, 0, 0, 0)),
        ),
        compiler_params=pltpu.CompilerParams(
            dimension_semantics=("parallel",),
            vmem_limit_bytes=vmem_limit),
        cost_estimate=cost,
    )(xf, w_fused, shift)

    # Parity de-interleave + junk-column drop — pure layout plumbing, done in bf16.
    out = out.reshape(N, 2, H, Wp, 2, Cout)[:, :, :, :W, :, :]    # (n, ry, py, px, rx, co)
    out = jnp.transpose(out, (0, 5, 2, 1, 3, 4))                  # (n, co, py, ry, px, rx)
    return out.reshape(N, Cout, 2 * H, 2 * W).astype(x.dtype)


def _reference(x, w_t, gamma, beta, rmean, rvar, *, stride, padding,
               is_last_layer, eps=1e-5, negative_slope=0.2):
    k = w_t.shape[2]
    w_oihw = jnp.transpose(w_t[:, :, ::-1, ::-1], (1, 0, 2, 3))
    out = jax.lax.conv_general_dilated(
        x.astype(jnp.float32), w_oihw.astype(jnp.float32),
        window_strides=(1, 1),
        padding=[(k - 1 - padding, k - 1 - padding)] * 2,
        lhs_dilation=(stride, stride),
        dimension_numbers=("NCHW", "OIHW", "NCHW"))
    if is_last_layer:
        return out
    scale = gamma / jnp.sqrt(rvar + eps)
    shift = beta - rmean * scale
    y = out * scale[None, :, None, None] + shift[None, :, None, None]
    return jnp.where(y > 0, y, negative_slope * y)


if __name__ == "__main__":
    N, Cin, Cout, H, W = 2, 4, 8, 16, 16
    kH = kW = 4

    key = jax.random.PRNGKey(0)
    kx, kw, kg, kb, km, kv = jax.random.split(key, 6)
    x = jax.random.normal(kx, (N, Cin, H, W), jnp.float32)
    w_t = 0.1 * jax.random.normal(kw, (Cin, Cout, kH, kW), jnp.float32)
    gamma = 1.0 + 0.1 * jax.random.normal(kg, (Cout,), jnp.float32)
    beta = 0.1 * jax.random.normal(kb, (Cout,), jnp.float32)
    running_mean = 0.05 * jax.random.normal(km, (Cout,), jnp.float32)
    running_var = jnp.abs(1.0 + 0.1 * jax.random.normal(kv, (Cout,), jnp.float32))

    # Main DCGAN path: trans_conv -> bn (inference stats) -> leaky_relu(0.2)
    y = dcgan_conv_transpose2d(x, w_t, gamma, beta, running_mean, running_var,
                               is_last_layer=False)
    y = jax.block_until_ready(y)
    y_ref = _reference(x, w_t, gamma, beta, running_mean, running_var,
                       stride=2, padding=1, is_last_layer=False)
    assert y.shape == (N, Cout, 2 * H, 2 * W)
    # bf16 MXU operands + bf16 output -> compare against the f32 reference at bf16 tolerance.
    assert jnp.allclose(y, y_ref, atol=3e-2, rtol=3e-2), \
        float(jnp.max(jnp.abs(y - y_ref)))

    # Last-layer path: trans_conv only (no BN, no activation)
    y2 = dcgan_conv_transpose2d(x, w_t, gamma, beta, running_mean, running_var,
                                is_last_layer=True)
    y2 = jax.block_until_ready(y2)
    y2_ref = _reference(x, w_t, gamma, beta, running_mean, running_var,
                        stride=2, padding=1, is_last_layer=True)
    assert jnp.allclose(y2, y2_ref, atol=3e-2, rtol=3e-2), \
        float(jnp.max(jnp.abs(y2 - y2_ref)))

    print("KERNEL_OK")
</pallas_src>

<mosaic_0001>
module attributes {stable_mosaic.version = 11 : i64} {
  func.func @_dcgan_convt_kernel(%arg0: i32, %arg1: memref<1x342x4xf32, #tpu.memory_space<vmem>>, %arg2: memref<4x16x8xbf16, #tpu.memory_space<vmem>>, %arg3: memref<1x8xf32, #tpu.memory_space<vmem>>, %arg4: memref<1x2x288x16xbf16, #tpu.memory_space<vmem>>) attributes {dimension_semantics = [#tpu.dimension_semantics<parallel>], iteration_bounds = array<i64: 2>, scalar_prefetch = 0 : i64, scratch_operands = 0 : i64, tpu.core_type = #tpu.core_type<tc>, window_params = [{transform_indices = @transform_0, window_bounds = array<i64: 1, 342, 4>}, {pipeline_mode = #tpu.pipeline_mode<synchronous>, transform_indices = @transform_1, window_bounds = array<i64: 4, 16, 8>}, {pipeline_mode = #tpu.pipeline_mode<synchronous>, transform_indices = @transform_2, window_bounds = array<i64: 1, 8>}, {transform_indices = @transform_3, window_bounds = array<i64: 1, 2, 288, 16>}]} {
    %c0 = arith.constant 0 : index
    %c0_0 = arith.constant 0 : index
    %c0_1 = arith.constant 0 : index
    %0 = vector.load %arg1[%c0, %c0_0, %c0_1] : memref<1x342x4xf32, #tpu.memory_space<vmem>>, vector<1x288x4xf32>
    %1 = arith.truncf %0 : vector<1x288x4xf32> to vector<1x288x4xbf16>
    %2 = vector.shape_cast %1 : vector<1x288x4xbf16> to vector<288x4xbf16>
    %c0_2 = arith.constant 0 : index
    %c1 = arith.constant 1 : index
    %c0_3 = arith.constant 0 : index
    %3 = vector.load %arg1[%c0_2, %c1, %c0_3] : memref<1x342x4xf32, #tpu.memory_space<vmem>>, vector<1x288x4xf32>
    %4 = arith.truncf %3 : vector<1x288x4xf32> to vector<1x288x4xbf16>
    %5 = vector.shape_cast %4 : vector<1x288x4xbf16> to vector<288x4xbf16>
    %c0_4 = arith.constant 0 : index
    %c2 = arith.constant 2 : index
    %c0_5 = arith.constant 0 : index
    %6 = vector.load %arg1[%c0_4, %c2, %c0_5] : memref<1x342x4xf32, #tpu.memory_space<vmem>>, vector<1x288x4xf32>
    %7 = arith.truncf %6 : vector<1x288x4xf32> to vector<1x288x4xbf16>
    %8 = vector.shape_cast %7 : vector<1x288x4xbf16> to vector<288x4xbf16>
    %c0_6 = arith.constant 0 : index
    %c18 = arith.constant 18 : index
    %c0_7 = arith.constant 0 : index
    %9 = vector.load %arg1[%c0_6, %c18, %c0_7] : memref<1x342x4xf32, #tpu.memory_space<vmem>>, vector<1x288x4xf32>
    %10 = arith.truncf %9 : vector<1x288x4xf32> to vector<1x288x4xbf16>
    %11 = vector.shape_cast %10 : vector<1x288x4xbf16> to vector<288x4xbf16>
    %c0_8 = arith.constant 0 : index
    %c19 = arith.constant 19 : index
    %c0_9 = arith.constant 0 : index
    %12 = vector.load %arg1[%c0_8, %c19, %c0_9] : memref<1x342x4xf32, #tpu.memory_space<vmem>>, vector<1x288x4xf32>
    %13 = arith.truncf %12 : vector<1x288x4xf32> to vector<1x288x4xbf16>
    %14 = vector.shape_cast %13 : vector<1x288x4xbf16> to vector<288x4xbf16>
    %c0_10 = arith.constant 0 : index
    %c20 = arith.constant 20 : index
    %c0_11 = arith.constant 0 : index
    %15 = vector.load %arg1[%c0_10, %c20, %c0_11] : memref<1x342x4xf32, #tpu.memory_space<vmem>>, vector<1x288x4xf32>
    %16 = arith.truncf %15 : vector<1x288x4xf32> to vector<1x288x4xbf16>
    %17 = vector.shape_cast %16 : vector<1x288x4xbf16> to vector<288x4xbf16>
    %c0_12 = arith.constant 0 : index
    %c36 = arith.constant 36 : index
    %c0_13 = arith.constant 0 : index
    %18 = vector.load %arg1[%c0_12, %c36, %c0_13] : memref<1x342x4xf32, #tpu.memory_space<vmem>>, vector<1x288x4xf32>
    %19 = arith.truncf %18 : vector<1x288x4xf32> to vector<1x288x4xbf16>
    %20 = vector.shape_cast %19 : vector<1x288x4xbf16> to vector<288x4xbf16>
    %c0_14 = arith.constant 0 : index
    %c37 = arith.constant 37 : index
    %c0_15 = arith.constant 0 : index
    %21 = vector.load %arg1[%c0_14, %c37, %c0_15] : memref<1x342x4xf32, #tpu.memory_space<vmem>>, vector<1x288x4xf32>
    %22 = arith.truncf %21 : vector<1x288x4xf32> to vector<1x288x4xbf16>
    %23 = vector.shape_cast %22 : vector<1x288x4xbf16> to vector<288x4xbf16>
    %c0_16 = arith.constant 0 : index
    %c38 = arith.constant 38 : index
    %c0_17 = arith.constant 0 : index
    %24 = vector.load %arg1[%c0_16, %c38, %c0_17] : memref<1x342x4xf32, #tpu.memory_space<vmem>>, vector<1x288x4xf32>
    %25 = arith.truncf %24 : vector<1x288x4xf32> to vector<1x288x4xbf16>
    %26 = vector.shape_cast %25 : vector<1x288x4xbf16> to vector<288x4xbf16>
    %c0_18 = arith.constant 0 : index
    %c0_19 = arith.constant 0 : index
    %27 = vector.load %arg3[%c0_18, %c0_19] : memref<1x8xf32, #tpu.memory_space<vmem>>, vector<1x8xf32>
    %28 = vector.shape_cast %27 : vector<1x8xf32> to vector<1x8xf32>
    %29 = vector.broadcast %28 : vector<1x8xf32> to vector<288x8xf32>
    %30 = tpu.concatenate %2, %5, %11, %14 in 1 : vector<288x4xbf16>, vector<288x4xbf16>, vector<288x4xbf16>, vector<288x4xbf16> -> vector<288x16xbf16>
    %c0_20 = arith.constant 0 : index
    %c0_21 = arith.constant 0 : index
    %c0_22 = arith.constant 0 : index
    %31 = vector.load %arg2[%c0_20, %c0_21, %c0_22] : memref<4x16x8xbf16, #tpu.memory_space<vmem>>, vector<1x16x8xbf16>
    %32 = vector.shape_cast %31 : vector<1x16x8xbf16> to vector<16x8xbf16>
    %cst = arith.constant dense<0.000000e+00> : vector<288x8xf32>
    %33 = tpu.matmul %30, %32, %cst {dimension_numbers = #tpu.dot_dimension_numbers<[1], [0], [0], [1], [0, 0, 1, 1], [], []>} : vector<288x16xbf16>, vector<16x8xbf16>, vector<288x8xf32> -> vector<288x8xf32>
    %34 = arith.addf %33, %29 : vector<288x8xf32>
    %cst_23 = arith.constant 0.000000e+00 : f32
    %35 = vector.broadcast %cst_23 : f32 to vector<288x8xf32>
    %36 = arith.cmpf ogt, %34, %35 : vector<288x8xf32>
    %cst_24 = arith.constant 2.000000e-01 : f32
    %37 = vector.broadcast %cst_24 : f32 to vector<288x8xf32>
    %38 = arith.mulf %37, %34 : vector<288x8xf32>
    %39 = arith.select %36, %34, %38 : vector<288x8xi1>, vector<288x8xf32>
    %40 = arith.truncf %39 : vector<288x8xf32> to vector<288x8xbf16>
    %41 = tpu.concatenate %5, %8, %14, %17 in 1 : vector<288x4xbf16>, vector<288x4xbf16>, vector<288x4xbf16>, vector<288x4xbf16> -> vector<288x16xbf16>
    %c1_25 = arith.constant 1 : index
    %c0_26 = arith.constant 0 : index
    %c0_27 = arith.constant 0 : index
    %42 = vector.load %arg2[%c1_25, %c0_26, %c0_27] : memref<4x16x8xbf16, #tpu.memory_space<vmem>>, vector<1x16x8xbf16>
    %43 = vector.shape_cast %42 : vector<1x16x8xbf16> to vector<16x8xbf16>
    %cst_28 = arith.constant dense<0.000000e+00> : vector<288x8xf32>
    %44 = tpu.matmul %41, %43, %cst_28 {dimension_numbers = #tpu.dot_dimension_numbers<[1], [0], [0], [1], [0, 0, 1, 1], [], []>} : vector<288x16xbf16>, vector<16x8xbf16>, vector<288x8xf32> -> vector<288x8xf32>
    %45 = arith.addf %44, %29 : vector<288x8xf32>
    %cst_29 = arith.constant 0.000000e+00 : f32
    %46 = vector.broadcast %cst_29 : f32 to vector<288x8xf32>
    %47 = arith.cmpf ogt, %45, %46 : vector<288x8xf32>
    %cst_30 = arith.constant 2.000000e-01 : f32
    %48 = vector.broadcast %cst_30 : f32 to vector<288x8xf32>
    %49 = arith.mulf %48, %45 : vector<288x8xf32>
    %50 = arith.select %47, %45, %49 : vector<288x8xi1>, vector<288x8xf32>
    %51 = arith.truncf %50 : vector<288x8xf32> to vector<288x8xbf16>
    %52 = tpu.concatenate %40, %51 in 1 : vector<288x8xbf16>, vector<288x8xbf16> -> vector<288x16xbf16>
    %53 = vector.shape_cast %52 : vector<288x16xbf16> to vector<1x288x16xbf16>
    %c0_31 = arith.constant 0 : index
    %c0_32 = arith.constant 0 : index
    %c0_33 = arith.constant 0 : index
    %c0_34 = arith.constant 0 : index
    %54 = vector.load %arg4[%c0_31, %c0_32, %c0_33, %c0_34] : memref<1x2x288x16xbf16, #tpu.memory_space<vmem>>, vector<1x1x288x16xbf16>
    %55 = vector.shape_cast %54 : vector<1x1x288x16xbf16> to vector<1x288x16xbf16>
    %56 = vector.shape_cast %53 : vector<1x288x16xbf16> to vector<1x1x288x16xbf16>
    tpu.vector_store %arg4[%c0_31, %c0_32, %c0_33, %c0_34], %56 {strides = array<i32>} : memref<1x2x288x16xbf16, #tpu.memory_space<vmem>>, vector<1x1x288x16xbf16>,
    %57 = tpu.concatenate %11, %14, %20, %23 in 1 : vector<288x4xbf16>, vector<288x4xbf16>, vector<288x4xbf16>, vector<288x4xbf16> -> vector<288x16xbf16>
    %c2_35 = arith.constant 2 : index
    %c0_36 = arith.constant 0 : index
    %c0_37 = arith.constant 0 : index
    %58 = vector.load %arg2[%c2_35, %c0_36, %c0_37] : memref<4x16x8xbf16, #tpu.memory_space<vmem>>, vector<1x16x8xbf16>
    %59 = vector.shape_cast %58 : vector<1x16x8xbf16> to vector<16x8xbf16>
    %cst_38 = arith.constant dense<0.000000e+00> : vector<288x8xf32>
    %60 = tpu.matmul %57, %59, %cst_38 {dimension_numbers = #tpu.dot_dimension_numbers<[1], [0], [0], [1], [0, 0, 1, 1], [], []>} : vector<288x16xbf16>, vector<16x8xbf16>, vector<288x8xf32> -> vector<288x8xf32>
    %61 = arith.addf %60, %29 : vector<288x8xf32>
    %cst_39 = arith.constant 0.000000e+00 : f32
    %62 = vector.broadcast %cst_39 : f32 to vector<288x8xf32>
    %63 = arith.cmpf ogt, %61, %62 : vector<288x8xf32>
    %cst_40 = arith.constant 2.000000e-01 : f32
    %64 = vector.broadcast %cst_40 : f32 to vector<288x8xf32>
    %65 = arith.mulf %64, %61 : vector<288x8xf32>
    %66 = arith.select %63, %61, %65 : vector<288x8xi1>, vector<288x8xf32>
    %67 = arith.truncf %66 : vector<288x8xf32> to vector<288x8xbf16>
    %68 = tpu.concatenate %14, %17, %23, %26 in 1 : vector<288x4xbf16>, vector<288x4xbf16>, vector<288x4xbf16>, vector<288x4xbf16> -> vector<288x16xbf16>
    %c3 = arith.constant 3 : index
    %c0_41 = arith.constant 0 : index
    %c0_42 = arith.constant 0 : index
    %69 = vector.load %arg2[%c3, %c0_41, %c0_42] : memref<4x16x8xbf16, #tpu.memory_space<vmem>>, vector<1x16x8xbf16>
    %70 = vector.shape_cast %69 : vector<1x16x8xbf16> to vector<16x8xbf16>
    %cst_43 = arith.constant dense<0.000000e+00> : vector<288x8xf32>
    %71 = tpu.matmul %68, %70, %cst_43 {dimension_numbers = #tpu.dot_dimension_numbers<[1], [0], [0], [1], [0, 0, 1, 1], [], []>} : vector<288x16xbf16>, vector<16x8xbf16>, vector<288x8xf32> -> vector<288x8xf32>
    %72 = arith.addf %71, %29 : vector<288x8xf32>
    %cst_44 = arith.constant 0.000000e+00 : f32
    %73 = vector.broadcast %cst_44 : f32 to vector<288x8xf32>
    %74 = arith.cmpf ogt, %72, %73 : vector<288x8xf32>
    %cst_45 = arith.constant 2.000000e-01 : f32
    %75 = vector.broadcast %cst_45 : f32 to vector<288x8xf32>
    %76 = arith.mulf %75, %72 : vector<288x8xf32>
    %77 = arith.select %74, %72, %76 : vector<288x8xi1>, vector<288x8xf32>
    %78 = arith.truncf %77 : vector<288x8xf32> to vector<288x8xbf16>
    %79 = tpu.concatenate %67, %78 in 1 : vector<288x8xbf16>, vector<288x8xbf16> -> vector<288x16xbf16>
    %80 = vector.shape_cast %79 : vector<288x16xbf16> to vector<1x288x16xbf16>
    %c0_46 = arith.constant 0 : index
    %c1_47 = arith.constant 1 : index
    %c0_48 = arith.constant 0 : index
    %c0_49 = arith.constant 0 : index
    %81 = vector.load %arg4[%c0_46, %c1_47, %c0_48, %c0_49] : memref<1x2x288x16xbf16, #tpu.memory_space<vmem>>, vector<1x1x288x16xbf16>
    %82 = vector.shape_cast %81 : vector<1x1x288x16xbf16> to vector<1x288x16xbf16>
    %83 = vector.shape_cast %80 : vector<1x288x16xbf16> to vector<1x1x288x16xbf16>
    tpu.vector_store %arg4[%c0_46, %c1_47, %c0_48, %c0_49], %83 {strides = array<i32>} : memref<1x2x288x16xbf16, #tpu.memory_space<vmem>>, vector<1x1x288x16xbf16>,
    return
  }
  func.func @transform_0(%arg0: i32) -> (i32, i32, i32) {
    %c0_i32 = arith.constant 0 : i32
    %c0_i32_0 = arith.constant 0 : i32
    %c0_i32_1 = arith.constant 0 : i32
    return %arg0, %c0_i32, %c0_i32_0 : i32, i32, i32
  }
  func.func @transform_1(%arg0: i32) -> (i32, i32, i32) {
    %c0_i32 = arith.constant 0 : i32
    %c0_i32_0 = arith.constant 0 : i32
    %c0_i32_1 = arith.constant 0 : i32
    %c0_i32_2 = arith.constant 0 : i32
    return %c0_i32, %c0_i32_0, %c0_i32_1 : i32, i32, i32
  }
  func.func @transform_2(%arg0: i32) -> (i32, i32) {
    %c0_i32 = arith.constant 0 : i32
    %c0_i32_0 = arith.constant 0 : i32
    %c0_i32_1 = arith.constant 0 : i32
    return %c0_i32, %c0_i32_0 : i32, i32
  }
  func.func @transform_3(%arg0: i32) -> (i32, i32, i32, i32) {
    %c0_i32 = arith.constant 0 : i32
    %c0_i32_0 = arith.constant 0 : i32
    %c0_i32_1 = arith.constant 0 : i32
    %c0_i32_2 = arith.constant 0 : i32
    return %arg0, %c0_i32, %c0_i32_0, %c0_i32_1 : i32, i32, i32, i32
  }
}

</mosaic_0001>

<bundles_post_ra>
// kernel: tpu_custom_call.1
= control target key start
LH: loop header
LB: loop body
LE: loop exit
PB: predicated region body
PF: predicated region fallthrough
CT: control target
= control target key end

     0   :  { %s4531_s12 = smov 0   ;;  %s6915_s0 = inlined_call_operand.vmem [shape: f32[2,342,4], index: 0, kind: input, shape index: {}]   ;;  %s6916_s1 = inlined_call_operand.vmem [shape: bf16[4,16,8], index: 1, kind: input, shape index: {}]   ;;  %s6917_s2 = inlined_call_operand.vmem [shape: f32[1,8], index: 2, kind: input, shape index: {}]   ;;  %s6918_s3 = inlined_call_operand.vmem [shape: bf16[2,2,288,16], index: 3, kind: output, shape index: {}]  }
   0x1 LB: > { %s4340_s13 = sadd.s32 4294967295, %s4506_s12   ;;  %p4344_p0 = scmp.ge.s32.totalorder %s4506_s12, 1  ;;  %s4506_s12 = sphi %s4531_s12, %s13_s12  }
   0x2   : > { %p137_p1 = scmp.lt.s32.totalorder %s4506_s12, 3 }
   0x4   : > { %p138_p2 = pnand %p4344_p0, %p137_p1 }
   0x6   : > { %141 = sbr.rel (%p138_p2) target bundleno = 987 (0x3db), region = 32 }
   0xb   : > { %p161_p3 = scmp.lt.s32.totalorder %s4340_s13, 1  ;;  %s4508_s18 = smov 4   ;;  %vm1156_vm0 = vcmask 31744   ;;  %vm1211_vm1 = vcmask 64512   ;;  %vm1293_vm2 = vcmask 130048   ;;  %vm1248_vm3 = vcmask 97280  }
   0xc   : > { %s4509_s19 = smov 8   ;;  %s4510_s20 = smov 12  }
   0xd   : > { %s7195_s13 = smov (!%p161_p3, %s4340_s13), 1 }
   0xe   : > { %s4483_s14 = smul.u32 344, %s7195_s13 }
   0xf   : > { %s4484_s6 = smul.u32 288, %s7195_s13 }
  0x10   : > { %s4545_s17 = scalar_lea.vmem %s6915_s0, %s4483_s14 }
  0x11   : > { %v252_v0 = vld [vmem:[%s4545_s17 + $0x41] sm:$0xff]  ;;  %v253_v1 = vld [vmem:[%s4545_s17 + $0x49] sm:$0xff]  ;;  %v254_v12 = vld [vmem:[%s4545_s17 + $0x51] sm:$0xff]  ;;  %s6350_s9 = scalar_lea.vmem %s6918_s3, %s4484_s6 }
  0x12   : > { %v248_v2 = vld [vmem:[%s4545_s17 + $0x21] sm:$0xff]  ;;  %v288_v3 = vpack.c.bf16 %v252_v0, %v252_v0  ;;  %v289_v4 = vpack.c.bf16 %v253_v1, %v253_v1  ;;  %v249_v5 = vld [vmem:[%s4545_s17 + $0x29] sm:$0xff]  ;;  %v255_v13 = vld [vmem:[%s4545_s17 + $0x59] sm:$0xff]  ;;  %v290_v18 = vpack.c.bf16 %v254_v12, %v254_v12 }
  0x13   : > { %v284_v6 = vpack.c.bf16 %v248_v2, %v248_v2  ;;  %v244_v7 = vld [vmem:[%s4545_s17 + $0x1] sm:$0xff]  ;;  %v245_v8 = vld [vmem:[%s4545_s17 + $0x9] sm:$0xff]  ;;  %v285_v9 = vpack.c.bf16 %v249_v5, %v249_v5  ;;  %v250_v14 = vld [vmem:[%s4545_s17 + $0x31] sm:$0xff]  ;;  %v291_v24 = vpack.c.bf16 %v255_v13, %v255_v13 }
  0x14   : > { %v280_v10 = vpack.c.bf16 %v244_v7, %v244_v7  ;;  %v281_v11 = vpack.c.bf16 %v245_v8, %v245_v8  ;;  %v822_v15 = vunpack.c.l.b16 %v288_v3  ;;  %v823_v16 = vunpack.c.l.b16 %v289_v4  ;;  %v251_v19 = vld [vmem:[%s4545_s17 + $0x39] sm:$0xff]  ;;  %v246_v20 = vld [vmem:[%s4545_s17 + $0x11] sm:$0xff]  ;;  %v260_v35 = vld [vmem:[%s4545_s17 + $0x81] sm:$0xff] }
  0x15   : > { %v818_v17 = vunpack.c.l.b16 %v284_v6  ;;  %v819_v21 = vunpack.c.l.b16 %v285_v9  ;;  %v247_v25 = vld [vmem:[%s4545_s17 + $0x19] sm:$0xff]  ;;  %v286_v27 = vpack.c.bf16 %v250_v14, %v250_v14  ;;  %v287_v28 = vpack.c.bf16 %v251_v19, %v251_v19  ;;  %v261_v36 = vld [vmem:[%s4545_s17 + $0x89] sm:$0xff]  ;;  %v258_v40 = vld [vmem:[%s4545_s17 + $0x71] sm:$0xff] }
  0x16   : > { %v814_v22 = vunpack.c.l.b16 %v280_v10  ;;  %v815_v23 = vunpack.c.l.b16 %v281_v11  ;;  %v4559_v26 = vpack.c.b16 %v823_v16, %v822_v15  ;;  %v282_v31 = vpack.c.bf16 %v246_v20, %v246_v20  ;;  %v259_v41 = vld [vmem:[%s4545_s17 + $0x79] sm:$0xff]  ;;  %v256_v43 = vld [vmem:[%s4545_s17 + $0x61] sm:$0xff]  ;;  %v257_v44 = vld [vmem:[%s4545_s17 + $0x69] sm:$0xff] }
  0x17   : > { %v4561_v29 = vpack.c.b16 %v819_v21, %v818_v17  ;;  %v824_v32 = vunpack.c.l.b16 %v290_v18  ;;  %v825_v33 = vunpack.c.l.b16 %v291_v24  ;;  %v283_v34 = vpack.c.bf16 %v247_v25, %v247_v25  ;;  %v266_v58 = vld [vmem:[%s4545_s17 + $0xb1] sm:$0xff]  ;;  %v267_v61 = vld [vmem:[%s4545_s17 + $0xb9] sm:$0xff]  ;;  %v264_v62 = vld [vmem:[%s4545_s17 + $0xa1] sm:$0xff] }
  0x18   : > { %6979 = vst [vmem:[#allocation2_spill] sm:$0xff] %v4559_v26  ;;  %v4563_v30 = vpack.c.b16 %v815_v23, %v814_v22  ;;  %876 = vrot.lane.b32.xlu2 %v4559_v26, %s4508_s18  ;;  %v820_v37 = vunpack.c.l.b16 %v286_v27  ;;  %v821_v38 = vunpack.c.l.b16 %v287_v28  ;;  %v816_v39 = vunpack.c.l.b16 %v282_v31  ;;  %v265_v63 = vld [vmem:[%s4545_s17 + $0xa9] sm:$0xff]  ;;  %v262_v0 = vld [vmem:[%s4545_s17 + $0x91] sm:$0xff]  ;;  %v263_v1 = vld [vmem:[%s4545_s17 + $0x99] sm:$0xff] }
  0x19   : > { %872 = vrot.lane.b32.xlu1 %v4561_v29, %s4508_s18  ;;  %v817_v42 = vunpack.c.l.b16 %v283_v34  ;;  %v296_v45 = vpack.c.bf16 %v260_v35, %v260_v35  ;;  %v4577_v46 = vpack.c.b16 %v825_v33, %v824_v32  ;;  %v297_v47 = vpack.c.bf16 %v261_v36, %v261_v36  ;;  %v272_v13 = vld [vmem:[%s4545_s17 + $0xe1] sm:$0xff]  ;;  %v273_v14 = vld [vmem:[%s4545_s17 + $0xe9] sm:$0xff]  ;;  %v270_v19 = vld [vmem:[%s4545_s17 + $0xd1] sm:$0xff] }
  0x1a   : > { %868 = vrot.lane.b32.xlu0 %v4563_v30, %s4508_s18  ;;  %v294_v48 = vpack.c.bf16 %v258_v40, %v258_v40  ;;  %v295_v49 = vpack.c.bf16 %v259_v41, %v259_v41  ;;  %v4579_v50 = vpack.c.b16 %v821_v38, %v820_v37  ;;  %v292_v52 = vpack.c.bf16 %v256_v43, %v256_v43  ;;  %v271_v20 = vld [vmem:[%s4545_s17 + $0xd9] sm:$0xff]  ;;  %v268_v21 = vld [vmem:[%s4545_s17 + $0xc1] sm:$0xff]  ;;  %v269_v22 = vld [vmem:[%s4545_s17 + $0xc9] sm:$0xff] }
  0x1b   : > { %6980 = vst [vmem:[#allocation3_spill] sm:$0xff] %v4577_v46  ;;  %v4581_v51 = vpack.c.b16 %v817_v42, %v816_v39  ;;  %v293_v53 = vpack.c.bf16 %v257_v44, %v257_v44  ;;  %v830_v54 = vunpack.c.l.b16 %v296_v45  ;;  %v831_v55 = vunpack.c.l.b16 %v297_v47  ;;  %v278_v39 = vld [vmem:[%s4545_s17 + $0x111] sm:$0xff]  ;;  %v279_v42 = vld [vmem:[%s4545_s17 + $0x119] sm:$0xff]  ;;  %v276_v43 = vld [vmem:[%s4545_s17 + $0x101] sm:$0xff] }
  0x1c   : > { %6981 = vst [vmem:[#allocation4_spill] sm:$0xff] %v4579_v50  ;;  %v828_v56 = vunpack.c.l.b16 %v294_v48  ;;  %v829_v57 = vunpack.c.l.b16 %v295_v49  ;;  %v826_v59 = vunpack.c.l.b16 %v292_v52  ;;  %v302_v2 = vpack.c.bf16 %v266_v58, %v266_v58  ;;  %v277_v44 = vld [vmem:[%s4545_s17 + $0x109] sm:$0xff]  ;;  %v274_v45 = vld [vmem:[%s4545_s17 + $0xf1] sm:$0xff]  ;;  %v275_v47 = vld [vmem:[%s4545_s17 + $0xf9] sm:$0xff] }
  0x1d   : > { %v827_v60 = vunpack.c.l.b16 %v293_v53  ;;  %v4595_v3 = vpack.c.b16 %v831_v55, %v830_v54  ;;  %v303_v5 = vpack.c.bf16 %v267_v61, %v267_v61  ;;  %v300_v6 = vpack.c.bf16 %v264_v62, %v264_v62  ;;  %v322_v61 = vld [vmem:[%s4545_s17 + $0x32] sm:$0xff]  ;;  %v323_v62 = vld [vmem:[%s4545_s17 + $0x3a] sm:$0xff] }
  0x1e   : > { %v4597_v4 = vpack.c.b16 %v829_v57, %v828_v56  ;;  %v301_v8 = vpack.c.bf16 %v265_v63, %v265_v63  ;;  %v298_v9 = vpack.c.bf16 %v262_v0, %v262_v0  ;;  %v299_v10 = vpack.c.bf16 %v263_v1, %v263_v1 }
  0x1f   : > { %6982 = vst [vmem:[#allocation5_spill] sm:$0xff] %v4595_v3  ;;  %v4599_v7 = vpack.c.b16 %v827_v60, %v826_v59  ;;  %v836_v11 = vunpack.c.l.b16 %v302_v2  ;;  %v837_v12 = vunpack.c.l.b16 %v303_v5  ;;  %v834_v15 = vunpack.c.l.b16 %v300_v6  ;;  %v320_v5 = vld [vmem:[%s4545_s17 + $0x22] sm:$0xff]  ;;  %v321_v6 = vld [vmem:[%s4545_s17 + $0x2a] sm:$0xff] }
  0x20   : > { %878 = vrot.lane.b32.xlu2 %v4577_v46, %s4508_s18  ;;  %6983 = vst [vmem:[#allocation6_spill] sm:$0xff] %v4597_v4  ;;  %v835_v16 = vunpack.c.l.b16 %v301_v8  ;;  %v832_v17 = vunpack.c.l.b16 %v298_v9  ;;  %v833_v18 = vunpack.c.l.b16 %v299_v10  ;;  %v308_v23 = vpack.c.bf16 %v272_v13, %v272_v13  ;;  %v318_v8 = vld [vmem:[%s4545_s17 + $0x12] sm:$0xff]  ;;  %v319_v9 = vld [vmem:[%s4545_s17 + $0x1a] sm:$0xff] }
  0x21   : > { %874 = vrot.lane.b32.xlu1 %v4579_v50, %s4508_s18  ;;  %6984 = vst [vmem:[#allocation7_spill] sm:$0xff] %v4599_v7  ;;  %v309_v24 = vpack.c.bf16 %v273_v14, %v273_v14  ;;  %v4613_v25 = vpack.c.b16 %v837_v12, %v836_v11  ;;  %v306_v27 = vpack.c.bf16 %v270_v19, %v270_v19 }
  0x22   : > { %870 = vrot.lane.b32.xlu0 %v4581_v51, %s4508_s18  ;;  %v307_v28 = vpack.c.bf16 %v271_v20, %v271_v20  ;;  %v4615_v31 = vpack.c.b16 %v835_v16, %v834_v15  ;;  %v4617_v32 = vpack.c.b16 %v833_v18, %v832_v17  ;;  %v304_v33 = vpack.c.bf16 %v268_v21, %v268_v21 }
  0x23   : > { %6985 = vst [vmem:[#allocation8_spill] sm:$0xff] %v4613_v25  ;;  %v305_v34 = vpack.c.bf16 %v269_v22, %v269_v22  ;;  %v842_v35 = vunpack.c.l.b16 %v308_v23  ;;  %v843_v36 = vunpack.c.l.b16 %v309_v24  ;;  %v840_v37 = vunpack.c.l.b16 %v306_v27  ;;  %v328_v23 = vld [vmem:[%s4545_s17 + $0x62] sm:$0xff]  ;;  %v329_v24 = vld [vmem:[%s4545_s17 + $0x6a] sm:$0xff] }
  0x24   : > { %6986 = vst [vmem:[#allocation9_spill] sm:$0xff] %v4615_v31  ;;  %v841_v38 = vunpack.c.l.b16 %v307_v28  ;;  %v838_v40 = vunpack.c.l.b16 %v304_v33  ;;  %v314_v52 = vpack.c.bf16 %v278_v39, %v278_v39  ;;  %v315_v53 = vpack.c.bf16 %v279_v42, %v279_v42  ;;  %v326_v33 = vld [vmem:[%s4545_s17 + $0x52] sm:$0xff] }
  0x25   : > { %6987 = vst [vmem:[#allocation10_spill] sm:$0xff] %v4617_v32  ;;  %v839_v41 = vunpack.c.l.b16 %v305_v34  ;;  %v4631_v48 = vpack.c.b16 %v843_v36, %v842_v35  ;;  %v312_v54 = vpack.c.bf16 %v276_v43, %v276_v43  ;;  %v313_v56 = vpack.c.bf16 %v277_v44, %v277_v44  ;;  %v327_v34 = vld [vmem:[%s4545_s17 + $0x5a] sm:$0xff]  ;;  %v324_v35 = vld [vmem:[%s4545_s17 + $0x42] sm:$0xff]  ;;  %v325_v36 = vld [vmem:[%s4545_s17 + $0x4a] sm:$0xff] }
  0x26   : > { %v4633_v49 = vpack.c.b16 %v841_v38, %v840_v37  ;;  %v310_v57 = vpack.c.bf16 %v274_v45, %v274_v45  ;;  %v311_v58 = vpack.c.bf16 %v275_v47, %v275_v47  ;;  %v848_v59 = vunpack.c.l.b16 %v314_v52 }
  0x27   : > { %6988 = vst [vmem:[#allocation11_spill] sm:$0xff] %v4631_v48  ;;  %v4635_v55 = vpack.c.b16 %v839_v41, %v838_v40  ;;  %v849_v60 = vunpack.c.l.b16 %v315_v53  ;;  %v846_v63 = vunpack.c.l.b16 %v312_v54  ;;  %v847_v0 = vunpack.c.l.b16 %v313_v56  ;;  %v334_v53 = vld [vmem:[%s4545_s17 + $0x92] sm:$0xff]  ;;  %v335_v54 = vld [vmem:[%s4545_s17 + $0x9a] sm:$0xff]  ;;  %v332_v56 = vld [vmem:[%s4545_s17 + $0x82] sm:$0xff] }
  0x28   : > { %884 = vrot.lane.b32.xlu2 %v4595_v3, %s4508_s18  ;;  %6989 = vst [vmem:[#allocation12_spill] sm:$0xff] %v4633_v49  ;;  %v844_v1 = vunpack.c.l.b16 %v310_v57  ;;  %v845_v2 = vunpack.c.l.b16 %v311_v58  ;;  %v358_v10 = vpack.c.bf16 %v322_v61, %v322_v61  ;;  %v359_v12 = vpack.c.bf16 %v323_v62, %v323_v62  ;;  %v333_v57 = vld [vmem:[%s4545_s17 + $0x8a] sm:$0xff]  ;;  %v330_v62 = vld [vmem:[%s4545_s17 + $0x72] sm:$0xff] }
  0x29   : > { %882 = vrot.lane.b32.xlu1 %v4597_v4, %s4508_s18  ;;  %6990 = vst [vmem:[#allocation13_spill] sm:$0xff] %v4635_v55  ;;  %v4649_v11 = vpack.c.b16 %v849_v60, %v848_v59  ;;  %v356_v13 = vpack.c.bf16 %v320_v5, %v320_v5  ;;  %v357_v14 = vpack.c.bf16 %v321_v6, %v321_v6 }
  0x2a   : > { %880 = vrot.lane.b32.xlu0 %v4599_v7, %s4508_s18  ;;  %v4651_v15 = vpack.c.b16 %v847_v0, %v846_v63  ;;  %v4653_v16 = vpack.c.b16 %v845_v2, %v844_v1  ;;  %v354_v17 = vpack.c.bf16 %v318_v8, %v318_v8  ;;  %v355_v18 = vpack.c.bf16 %v319_v9, %v319_v9  ;;  %v331_v63 = vld [vmem:[%s4545_s17 + $0x7a] sm:$0xff] }
  0x2b   : > { %6991 = vst [vmem:[#allocation14_spill] sm:$0xff] %v4649_v11  ;;  %v944_v19 = vunpack.c.l.b16 %v358_v10  ;;  %v945_v20 = vunpack.c.l.b16 %v359_v12  ;;  %v942_v21 = vunpack.c.l.b16 %v356_v13  ;;  %v943_v22 = vunpack.c.l.b16 %v357_v14 }
  0x2c   : > { %6992 = vst [vmem:[#allocation15_spill] sm:$0xff] %v4651_v15  ;;  %v940_v27 = vunpack.c.l.b16 %v354_v17  ;;  %v941_v28 = vunpack.c.l.b16 %v355_v18  ;;  %v364_v37 = vpack.c.bf16 %v328_v23, %v328_v23  ;;  %v365_v38 = vpack.c.bf16 %v329_v24, %v329_v24  ;;  %v338_v23 = vld [vmem:[%s4545_s17 + $0xb2] sm:$0xff]  ;;  %v339_v24 = vld [vmem:[%s4545_s17 + $0xba] sm:$0xff] }
  0x2d   : > { %6993 = vst [vmem:[#allocation16_spill] sm:$0xff] %v4653_v16  ;;  %v4667_v39 = vpack.c.b16 %v945_v20, %v944_v19  ;;  %v4669_v40 = vpack.c.b16 %v943_v22, %v942_v21  ;;  %v362_v41 = vpack.c.bf16 %v326_v33, %v326_v33  ;;  %v363_v43 = vpack.c.bf16 %v327_v34, %v327_v34  ;;  %v340_v21 = vld [vmem:[%s4545_s17 + $0xc2] sm:$0xff]  ;;  %v341_v22 = vld [vmem:[%s4545_s17 + $0xca] sm:$0xff] }
  0x2e   : > { %v4671_v42 = vpack.c.b16 %v941_v28, %v940_v27  ;;  %v360_v44 = vpack.c.bf16 %v324_v35, %v324_v35  ;;  %v361_v45 = vpack.c.bf16 %v325_v36, %v325_v36  ;;  %v950_v47 = vunpack.c.l.b16 %v364_v37  ;;  %v336_v27 = vld [vmem:[%s4545_s17 + $0xa2] sm:$0xff]  ;;  %v337_v28 = vld [vmem:[%s4545_s17 + $0xaa] sm:$0xff] }
  0x2f   : > { %6994 = vst [vmem:[#allocation17_spill] sm:$0xff] %v4667_v39  ;;  %v951_v52 = vunpack.c.l.b16 %v365_v38  ;;  %v948_v58 = vunpack.c.l.b16 %v362_v41  ;;  %v949_v59 = vunpack.c.l.b16 %v363_v43  ;;  %v370_v1 = vpack.c.bf16 %v334_v53, %v334_v53  ;;  %v347_v53 = vld [vmem:[%s4545_s17 + $0xfa] sm:$0xff] }
  0x30   : > { %890 = vrot.lane.b32.xlu2 %v4613_v25, %s4508_s18  ;;  %6995 = vst [vmem:[#allocation18_spill] sm:$0xff] %v4669_v40  ;;  %v946_v60 = vunpack.c.l.b16 %v360_v44  ;;  %v947_v61 = vunpack.c.l.b16 %v361_v45  ;;  %v371_v2 = vpack.c.bf16 %v335_v54, %v335_v54  ;;  %v368_v5 = vpack.c.bf16 %v332_v56, %v332_v56  ;;  %v344_v54 = vld [vmem:[%s4545_s17 + $0xe2] sm:$0xff]  ;;  %v345_v56 = vld [vmem:[%s4545_s17 + $0xea] sm:$0xff] }
  0x31   : > { %888 = vrot.lane.b32.xlu1 %v4615_v31, %s4508_s18  ;;  %v4685_v0 = vpack.c.b16 %v951_v52, %v950_v47  ;;  %v369_v6 = vpack.c.bf16 %v333_v57, %v333_v57  ;;  %v366_v8 = vpack.c.bf16 %v330_v62, %v330_v62  ;;  %v367_v9 = vpack.c.bf16 %v331_v63, %v331_v63  ;;  %v346_v52 = vld [vmem:[%s4545_s17 + $0xf2] sm:$0xff]  ;;  %v343_v62 = vld [vmem:[%s4545_s17 + $0xda] sm:$0xff] }
  0x32   : > { %886 = vrot.lane.b32.xlu0 %v4617_v32, %s4508_s18  ;;  %v4687_v10 = vpack.c.b16 %v949_v59, %v948_v58  ;;  %v4689_v12 = vpack.c.b16 %v947_v61, %v946_v60  ;;  %v956_v13 = vunpack.c.l.b16 %v370_v1  ;;  %v957_v14 = vunpack.c.l.b16 %v371_v2  ;;  %v342_v61 = vld [vmem:[%s4545_s17 + $0xd2] sm:$0xff] }
  0x33   : > { %6996 = vst [vmem:[#allocation19_spill] sm:$0xff] %v4685_v0  ;;  %v954_v17 = vunpack.c.l.b16 %v368_v5  ;;  %v955_v18 = vunpack.c.l.b16 %v369_v6  ;;  %v952_v19 = vunpack.c.l.b16 %v366_v8  ;;  %v953_v20 = vunpack.c.l.b16 %v367_v9 }
  0x34   : > { %6997 = vst [vmem:[#allocation20_spill] sm:$0xff] %v4687_v10  ;;  %v376_v33 = vpack.c.bf16 %v340_v21, %v340_v21  ;;  %v377_v34 = vpack.c.bf16 %v341_v22, %v341_v22  ;;  %v4703_v35 = vpack.c.b16 %v957_v14, %v956_v13  ;;  %v374_v38 = vpack.c.bf16 %v338_v23, %v338_v23  ;;  %v388_v23 = vld [vmem:[%s4545_s17 + $0x122] sm:$0xff] }
  0x35   : > { %6998 = vst [vmem:[#allocation21_spill] sm:$0xff] %v4689_v12  ;;  %v4705_v36 = vpack.c.b16 %v955_v18, %v954_v17  ;;  %v4707_v37 = vpack.c.b16 %v953_v20, %v952_v19  ;;  %v375_v41 = vpack.c.bf16 %v339_v24, %v339_v24  ;;  %v372_v43 = vpack.c.bf16 %v336_v27, %v336_v27  ;;  %v389_v24 = vld [vmem:[%s4545_s17 + $0x12a] sm:$0xff]  ;;  %v350_v27 = vld [vmem:[%s4545_s17 + $0x112] sm:$0xff] }
  0x36   : > { %6999 = vst [vmem:[#allocation22_spill] sm:$0xff] %v4703_v35  ;;  %v373_v44 = vpack.c.bf16 %v337_v28, %v337_v28  ;;  %v962_v45 = vunpack.c.l.b16 %v376_v33  ;;  %v963_v47 = vunpack.c.l.b16 %v377_v34  ;;  %v960_v57 = vunpack.c.l.b16 %v374_v38  ;;  %v351_v28 = vld [vmem:[%s4545_s17 + $0x11a] sm:$0xff]  ;;  %v348_v33 = vld [vmem:[%s4545_s17 + $0x102] sm:$0xff]  ;;  %v349_v34 = vld [vmem:[%s4545_s17 + $0x10a] sm:$0xff] }
  0x37   : > { %7000 = vst [vmem:[#allocation23_spill] sm:$0xff] %v4705_v36  ;;  %v961_v58 = vunpack.c.l.b16 %v375_v41  ;;  %v958_v59 = vunpack.c.l.b16 %v372_v43  ;;  %v382_v1 = vpack.c.bf16 %v346_v52, %v346_v52  ;;  %v383_v2 = vpack.c.bf16 %v347_v53, %v347_v53 }
  0x38   : > { %896 = vrot.lane.b32.xlu2 %v4631_v48, %s4508_s18  ;;  %7001 = vst [vmem:[#allocation24_spill] sm:$0xff] %v4707_v37  ;;  %v959_v60 = vunpack.c.l.b16 %v373_v44  ;;  %v4721_v63 = vpack.c.b16 %v963_v47, %v962_v45  ;;  %v380_v5 = vpack.c.bf16 %v344_v54, %v344_v54  ;;  %v381_v6 = vpack.c.bf16 %v345_v56, %v345_v56  ;;  %v420_v48 = vld [vmem:[%s4545_s17 + $0xf3] sm:$0xff] }
  0x39   : > { %894 = vrot.lane.b32.xlu1 %v4633_v49, %s4508_s18  ;;  %v378_v8 = vpack.c.bf16 %v342_v61, %v342_v61  ;;  %v379_v9 = vpack.c.bf16 %v343_v62, %v343_v62  ;;  %v4723_v13 = vpack.c.b16 %v961_v58, %v960_v57  ;;  %v968_v17 = vunpack.c.l.b16 %v382_v1  ;;  %v396_v58 = vld [vmem:[%s4545_s17 + $0x33] sm:$0xff]  ;;  %v395_v61 = vld [vmem:[%s4545_s17 + $0x2b] sm:$0xff] }
  0x3a   : > { %892 = vrot.lane.b32.xlu0 %v4635_v55, %s4508_s18  ;;  %7002 = vst [vmem:[#allocation25_spill] sm:$0xff] %v4721_v63  ;;  %v4725_v14 = vpack.c.b16 %v959_v60, %v958_v59  ;;  %v969_v18 = vunpack.c.l.b16 %v383_v2  ;;  %v966_v19 = vunpack.c.l.b16 %v380_v5  ;;  %v967_v20 = vunpack.c.l.b16 %v381_v6  ;;  %v397_v59 = vld [vmem:[%s4545_s17 + $0x3b] sm:$0xff]  ;;  %v394_v60 = vld [vmem:[%s4545_s17 + $0x23] sm:$0xff]  ;;  %v392_v6 = vld [vmem:[%s4545_s17 + $0x13] sm:$0xff] }
  0x3b   : > { %7003 = vst [vmem:[#allocation26_spill] sm:$0xff] %v4723_v13  ;;  %v964_v21 = vunpack.c.l.b16 %v378_v8  ;;  %v965_v22 = vunpack.c.l.b16 %v379_v9  ;;  %v390_v38 = vpack.c.bf16 %v388_v23, %v388_v23  ;;  %v391_v41 = vpack.c.bf16 %v389_v24, %v389_v24  ;;  %v393_v8 = vld [vmem:[%s4545_s17 + $0x1b] sm:$0xff] }
  0x3c   : > { %7004 = vst [vmem:[#allocation27_spill] sm:$0xff] %v4725_v14  ;;  %v4739_v43 = vpack.c.b16 %v969_v18, %v968_v17  ;;  %v4741_v44 = vpack.c.b16 %v967_v20, %v966_v19  ;;  %v386_v47 = vpack.c.bf16 %v350_v27, %v350_v27  ;;  %v387_v52 = vpack.c.bf16 %v351_v28, %v351_v28 }
  0x3d   : > { %v4743_v45 = vpack.c.b16 %v965_v22, %v964_v21  ;;  %v384_v53 = vpack.c.bf16 %v348_v33, %v348_v33  ;;  %v385_v54 = vpack.c.bf16 %v349_v34, %v349_v34  ;;  %v974_v56 = vunpack.c.l.b16 %v390_v38 }
  0x3e   : > { %7005 = vst [vmem:[#allocation28_spill] sm:$0xff] %v4739_v43  ;;  %v975_v57 = vunpack.c.l.b16 %v391_v41  ;;  %v972_v62 = vunpack.c.l.b16 %v386_v47  ;;  %v973_v1 = vunpack.c.l.b16 %v387_v52  ;;  %v432_v17 = vpack.c.bf16 %v396_v58, %v396_v58  ;;  %v402_v47 = vld [vmem:[%s4545_s17 + $0x63] sm:$0xff]  ;;  %v403_v52 = vld [vmem:[%s4545_s17 + $0x6b] sm:$0xff] }
  0x3f   : > { %7006 = vst [vmem:[#allocation29_spill] sm:$0xff] %v4741_v44  ;;  %v970_v2 = vunpack.c.l.b16 %v384_v53  ;;  %v971_v5 = vunpack.c.l.b16 %v385_v54  ;;  %v433_v18 = vpack.c.bf16 %v397_v59, %v397_v59  ;;  %v430_v19 = vpack.c.bf16 %v394_v60, %v394_v60  ;;  %v400_v53 = vld [vmem:[%s4545_s17 + $0x53] sm:$0xff]  ;;  %v399_v58 = vld [vmem:[%s4545_s17 + $0x4b] sm:$0xff] }
  0x40   : > { %902 = vrot.lane.b32.xlu2 %v4649_v11, %s4508_s18  ;;  %7007 = vst [vmem:[#allocation30_spill] sm:$0xff] %v4743_v45  ;;  %v4757_v9 = vpack.c.b16 %v975_v57, %v974_v56  ;;  %v431_v20 = vpack.c.bf16 %v395_v61, %v395_v61  ;;  %v428_v21 = vpack.c.bf16 %v392_v6, %v392_v6  ;;  %v1070_v27 = vunpack.c.l.b16 %v432_v17  ;;  %v401_v56 = vld [vmem:[%s4545_s17 + $0x5b] sm:$0xff]  ;;  %v398_v57 = vld [vmem:[%s4545_s17 + $0x43] sm:$0xff] }
  0x41   : > { %900 = vrot.lane.b32.xlu1 %v4651_v15, %s4508_s18  ;;  %v429_v22 = vpack.c.bf16 %v393_v8, %v393_v8  ;;  %v4759_v23 = vpack.c.b16 %v973_v1, %v972_v62  ;;  %v4761_v24 = vpack.c.b16 %v971_v5, %v970_v2  ;;  %v1071_v28 = vunpack.c.l.b16 %v433_v18 }
  0x42   : > { %898 = vrot.lane.b32.xlu0 %v4653_v16, %s4508_s18  ;;  %7008 = vst [vmem:[#allocation31_spill] sm:$0xff] %v4757_v9  ;;  %v1068_v33 = vunpack.c.l.b16 %v430_v19  ;;  %v1069_v34 = vunpack.c.l.b16 %v431_v20  ;;  %v1066_v38 = vunpack.c.l.b16 %v428_v21  ;;  %v438_v59 = vpack.c.bf16 %v402_v47, %v402_v47  ;;  %v408_v19 = vld [vmem:[%s4545_s17 + $0x93] sm:$0xff]  ;;  %v409_v20 = vld [vmem:[%s4545_s17 + $0x9b] sm:$0xff]  ;;  %v406_v21 = vld [vmem:[%s4545_s17 + $0x83] sm:$0xff] }
  0x43   : > { %7009 = vst [vmem:[#allocation32_spill] sm:$0xff] %v4759_v23  ;;  %v1067_v41 = vunpack.c.l.b16 %v429_v22  ;;  %v439_v60 = vpack.c.bf16 %v403_v52, %v403_v52  ;;  %v4777_v61 = vpack.c.b16 %v1071_v28, %v1070_v27  ;;  %v436_v2 = vpack.c.bf16 %v400_v53, %v400_v53  ;;  %v407_v22 = vld [vmem:[%s4545_s17 + $0x8b] sm:$0xff] }
  0x44   : > { %7010 = vst [vmem:[#allocation33_spill] sm:$0xff] %v4761_v24  ;;  %v4779_v62 = vpack.c.b16 %v1069_v34, %v1068_v33  ;;  %v437_v5 = vpack.c.bf16 %v401_v56, %v401_v56  ;;  %v434_v6 = vpack.c.bf16 %v398_v57, %v398_v57  ;;  %v435_v8 = vpack.c.bf16 %v399_v58, %v399_v58 }
  0x45   : > { %v4781_v1 = vpack.c.b16 %v1067_v41, %v1066_v38  ;;  %v1076_v17 = vunpack.c.l.b16 %v438_v59  ;;  %v1077_v18 = vunpack.c.l.b16 %v439_v60  ;;  %v1074_v27 = vunpack.c.l.b16 %v436_v2  ;;  %v404_v38 = vld [vmem:[%s4545_s17 + $0x73] sm:$0xff]  ;;  %v405_v41 = vld [vmem:[%s4545_s17 + $0x7b] sm:$0xff] }
  0x46   : > { %v1075_v28 = vunpack.c.l.b16 %v437_v5  ;;  %v1072_v33 = vunpack.c.l.b16 %v434_v6  ;;  %v1073_v34 = vunpack.c.l.b16 %v435_v8  ;;  %v444_v53 = vpack.c.bf16 %v408_v19, %v408_v19 }
  0x47   : > { %v4797_v52 = vpack.c.b16 %v1077_v18, %v1076_v17  ;;  %v445_v56 = vpack.c.bf16 %v409_v20, %v409_v20  ;;  %v442_v57 = vpack.c.bf16 %v406_v21, %v406_v21  ;;  %v443_v58 = vpack.c.bf16 %v407_v22, %v407_v22  ;;  %v414_v21 = vld [vmem:[%s4545_s17 + $0xc3] sm:$0xff]  ;;  %v415_v22 = vld [vmem:[%s4545_s17 + $0xcb] sm:$0xff] }
  0x48   : > { %998 = vrot.lane.b32.xlu2 %v4667_v39, %s4509_s19  ;;  %v440_v59 = vpack.c.bf16 %v404_v38, %v404_v38  ;;  %v441_v60 = vpack.c.bf16 %v405_v41, %v405_v41  ;;  %v4799_v2 = vpack.c.b16 %v1075_v28, %v1074_v27  ;;  %v4801_v5 = vpack.c.b16 %v1073_v34, %v1072_v33  ;;  %v412_v27 = vld [vmem:[%s4545_s17 + $0xb3] sm:$0xff]  ;;  %v413_v33 = vld [vmem:[%s4545_s17 + $0xbb] sm:$0xff]  ;;  %v410_v34 = vld [vmem:[%s4545_s17 + $0xa3] sm:$0xff] }
  0x49   : > { %996 = vrot.lane.b32.xlu1 %v4669_v40, %s4509_s19  ;;  %v1082_v6 = vunpack.c.l.b16 %v444_v53  ;;  %v1083_v8 = vunpack.c.l.b16 %v445_v56  ;;  %v1080_v17 = vunpack.c.l.b16 %v442_v57  ;;  %v1081_v18 = vunpack.c.l.b16 %v443_v58  ;;  %v411_v38 = vld [vmem:[%s4545_s17 + $0xab] sm:$0xff] }
  0x4a   : > { %994 = vrot.lane.b32.xlu0 %v4671_v42, %s4509_s19  ;;  %v1078_v19 = vunpack.c.l.b16 %v440_v59  ;;  %v1079_v20 = vunpack.c.l.b16 %v441_v60  ;;  %v450_v41 = vpack.c.bf16 %v414_v21, %v414_v21  ;;  %v451_v53 = vpack.c.bf16 %v415_v22, %v415_v22  ;;  %v421_v21 = vld [vmem:[%s4545_s17 + $0xfb] sm:$0xff]  ;;  %v418_v22 = vld [vmem:[%s4545_s17 + $0xe3] sm:$0xff] }
  0x4b   : > { %v4817_v56 = vpack.c.b16 %v1083_v8, %v1082_v6  ;;  %v4819_v57 = vpack.c.b16 %v1081_v18, %v1080_v17  ;;  %v448_v59 = vpack.c.bf16 %v412_v27, %v412_v27  ;;  %v449_v60 = vpack.c.bf16 %v413_v33, %v413_v33  ;;  %v419_v6 = vld [vmem:[%s4545_s17 + $0xeb] sm:$0xff]  ;;  %v417_v27 = vld [vmem:[%s4545_s17 + $0xdb] sm:$0xff] }
  0x4c   : > { %v4821_v58 = vpack.c.b16 %v1079_v20, %v1078_v19  ;;  %v447_v11 = vpack.c.bf16 %v411_v38, %v411_v38  ;;  %v1088_v15 = vunpack.c.l.b16 %v450_v41  ;;  %v1089_v16 = vunpack.c.l.b16 %v451_v53  ;;  %v416_v20 = vld [vmem:[%s4545_s17 + $0xd3] sm:$0xff] }
  0x4d   : > { %7011 = vst [vmem:[#allocation34_spill] sm:$0xff] %v4817_v56  ;;  %v1086_v8 = vunpack.c.l.b16 %v448_v59  ;;  %v1087_v17 = vunpack.c.l.b16 %v449_v60  ;;  %v456_v53 = vpack.c.bf16 %v420_v48, %v420_v48  ;;  %v457_v49 = vpack.c.bf16 %v421_v21, %v421_v21 }
  0x4e   : > { %7012 = vst [vmem:[#allocation35_spill] sm:$0xff] %v4819_v57  ;;  %v1085_v19 = vunpack.c.l.b16 %v447_v11  ;;  %v4841_v41 = vpack.c.b16 %v1089_v16, %v1088_v15  ;;  %v454_v55 = vpack.c.bf16 %v418_v22, %v418_v22  ;;  %v455_v25 = vpack.c.bf16 %v419_v6, %v419_v6  ;;  %v426_v22 = vld [vmem:[%s4545_s17 + $0x123] sm:$0xff]  ;;  %v427_v6 = vld [vmem:[%s4545_s17 + $0x12b] sm:$0xff] }
  0x4f   : > { %v452_v59 = vpack.c.bf16 %v416_v20, %v416_v20  ;;  %v4843_v11 = vpack.c.b16 %v1087_v17, %v1086_v8  ;;  %v1094_v31 = vunpack.c.l.b16 %v456_v53  ;;  %v1095_v32 = vunpack.c.l.b16 %v457_v49  ;;  %v424_v8 = vld [vmem:[%s4545_s17 + $0x113] sm:$0xff]  ;;  %v422_v49 = vld [vmem:[%s4545_s17 + $0x103] sm:$0xff] }
  0x50   : > { %1004 = vrot.lane.b32.xlu2 %v4685_v0, %s4509_s19  ;;  %7013 = vst [vmem:[#allocation36_spill] sm:$0xff] %v4841_v41  ;;  %v1092_v48 = vunpack.c.l.b16 %v454_v55  ;;  %v1093_v15 = vunpack.c.l.b16 %v455_v25  ;;  %v460_v3 = vpack.c.bf16 %v424_v8, %v424_v8  ;;  %v458_v7 = vpack.c.bf16 %v422_v49, %v422_v49 }
  0x51   : > { %1002 = vrot.lane.b32.xlu1 %v4687_v10, %s4509_s19  ;;  %7014 = vst [vmem:[#allocation37_spill] sm:$0xff] %v4843_v11  ;;  %v1090_v16 = vunpack.c.l.b16 %v452_v59  ;;  %v4865_v25 = vpack.c.b16 %v1095_v32, %v1094_v31  ;;  %v462_v59 = vpack.c.bf16 %v426_v22, %v426_v22  ;;  %v317_v22 = vld [vmem:[%s4545_s17 + $0xa] sm:$0xff] }
  0x52   : > { %1000 = vrot.lane.b32.xlu0 %v4689_v12, %s4509_s19  ;;  %v1098_v31 = vunpack.c.l.b16 %v460_v3 }
  0x53   : > { %7017 = vst [vmem:[#allocation40_spill] sm:$0xff] %v4865_v25  ;;  %v1100_v46 = vunpack.c.l.b16 %v462_v59 }
  0x58   : > { %1010 = vrot.lane.b32.xlu2 %v4703_v35, %s4509_s19 }
  0x59   : > { %1008 = vrot.lane.b32.xlu1 %v4705_v36, %s4509_s19 }
  0x5a   : > { %1006 = vrot.lane.b32.xlu0 %v4707_v37, %s4509_s19 }
  0x60   : > { %1016 = vrot.lane.b32.xlu2 %v4721_v63, %s4509_s19 }
  0x61   : > { %1014 = vrot.lane.b32.xlu1 %v4723_v13, %s4509_s19 }
  0x62   : > { %1012 = vrot.lane.b32.xlu0 %v4725_v14, %s4509_s19 }
  0x68   : > { %1022 = vrot.lane.b32.xlu2 %v4739_v43, %s4509_s19 }
  0x69   : > { %1020 = vrot.lane.b32.xlu1 %v4741_v44, %s4509_s19 }
  0x6a   : > { %1018 = vrot.lane.b32.xlu0 %v4743_v45, %s4509_s19 }
  0x70   : > { %1028 = vrot.lane.b32.xlu2 %v4757_v9, %s4509_s19  ;;  %v446_v9 = vpack.c.bf16 %v410_v34, %v410_v34 }
  0x71   : > { %1026 = vrot.lane.b32.xlu1 %v4759_v23, %s4509_s19 }
  0x72   : > { %1024 = vrot.lane.b32.xlu0 %v4761_v24, %s4509_s19  ;;  %v4772_v54 = vpop.permute.xlu2 %876  ;;  %v1084_v18 = vunpack.c.l.b16 %v446_v9  ;;  %v453_v9 = vpack.c.bf16 %v417_v27, %v417_v27  ;;  %v4867_v27 = vpack.c.b16 %v1093_v15, %v1092_v48  ;;  %v1096_v48 = vunpack.c.l.b16 %v458_v7 }
  0x74   : > { %v4845_v60 = vpack.c.b16 %v1085_v19, %v1084_v18  ;;  %v1091_v21 = vunpack.c.l.b16 %v453_v9  ;;  %v425_v18 = vld [vmem:[%s4545_s17 + $0x11b] sm:$0xff]  ;;  %v423_v19 = vld [vmem:[%s4545_s17 + $0x10b] sm:$0xff]  ;;  %7018 = vst [vmem:[#allocation41_spill] sm:$0xff] %v4867_v27  ;;  %v463_v9 = vpack.c.bf16 %v427_v6, %v427_v6 }
  0x75   : > { %v461_v4 = vpack.c.bf16 %v425_v18, %v425_v18 }
  0x76   : > { %7015 = vst [vmem:[#allocation38_spill] sm:$0xff] %v4845_v60  ;;  %v4869_v53 = vpack.c.b16 %v1091_v21, %v1090_v16  ;;  %v1101_v26 = vunpack.c.l.b16 %v463_v9  ;;  %v316_v21 = vld [vmem:[%s4545_s17 + $0x2] sm:$0xff]  ;;  %v353_v9 = vpack.c.bf16 %v317_v22, %v317_v22 }
  0x77   : > { %v1099_v32 = vunpack.c.l.b16 %v461_v4  ;;  %v352_v59 = vpack.c.bf16 %v316_v21, %v316_v21 }
  0x78   : > { %1124 = vrot.lane.b32.xlu2 %v4777_v61, %s4510_s20  ;;  %7019 = vst [vmem:[#allocation42_spill] sm:$0xff] %v4869_v53  ;;  %v4885_v18 = vpack.c.b16 %v1101_v26, %v1100_v46  ;;  %v1576_v4 = vunpack.c.l.b16 %v353_v9 }
  0x79   : > { %1122 = vrot.lane.b32.xlu1 %v4779_v62, %s4510_s20  ;;  %v4887_v49 = vpack.c.b16 %v1099_v32, %v1098_v31  ;;  %v1575_v3 = vunpack.c.l.b16 %v352_v59 }
  0x7a   : > { %1120 = vrot.lane.b32.xlu0 %v4781_v1, %s4510_s20  ;;  %v4795_v47 = vpop.permute.xlu2 %878  ;;  %7021 = vst [vmem:[#allocation44_spill] sm:$0xff] %v4885_v18 }
  0x7b   : > { %7022 = vst [vmem:[#allocation45_spill] sm:$0xff] %v4887_v49 }
  0x80   : > { %1130 = vrot.lane.b32.xlu2 %v4797_v52, %s4510_s20 }
  0x81   : > { %1128 = vrot.lane.b32.xlu1 %v4799_v2, %s4510_s20 }
  0x82   : > { %1126 = vrot.lane.b32.xlu0 %v4801_v5, %s4510_s20  ;;  %v4812_v28 = vpop.permute.xlu2 %884 }
  0x88   : > { %1136 = vrot.lane.b32.xlu2 %v4817_v56, %s4510_s20 }
  0x89   : > { %1134 = vrot.lane.b32.xlu1 %v4819_v57, %s4510_s20 }
  0x8a   : > { %1132 = vrot.lane.b32.xlu0 %v4821_v58, %s4510_s20  ;;  %v4835_v33 = vpop.permute.xlu2 %890 }
  0x8b   : > { %v4837_v34 = vpop.permute.xlu1 %872 }
  0x8c   : > { %v4839_v38 = vpop.permute.xlu0 %868 }
  0x90   : > { %1142 = vrot.lane.b32.xlu2 %v4841_v41, %s4510_s20 }
  0x91   : > { %1140 = vrot.lane.b32.xlu1 %v4843_v11, %s4510_s20 }
  0x92   : > { %1138 = vrot.lane.b32.xlu0 %v4845_v60, %s4510_s20  ;;  %v4856_v17 = vpop.permute.xlu2 %896 }
  0x93   : > { %7016 = vst [vmem:[#allocation39_spill] sm:$0xff] %v4856_v17  ;;  %v4861_v20 = vpop.permute.xlu1 %874  ;;  %v459_v17 = vpack.c.bf16 %v423_v19, %v423_v19 }
  0x94   : > { %v4863_v55 = vpop.permute.xlu0 %870 }
  0x95   : > { %v1097_v15 = vunpack.c.l.b16 %v459_v17  ;;  %v1577_v17 = vpack.c.b16 %v1576_v4, %v1575_v3 }
  0x97   : > { %v4889_v19 = vpack.c.b16 %v1097_v15, %v1096_v48 }
  0x98   : > { %1148 = vrot.lane.b32.xlu2 %v4865_v25, %s4510_s20  ;;  %v465_v25 = vld [vmem:[%s4545_s17 + $0x1c] sm:$0xff] }
  0x99   : > { %1146 = vrot.lane.b32.xlu1 %v4867_v27, %s4510_s20  ;;  %7023 = vst [vmem:[#allocation46_spill] sm:$0xff] %v4889_v19 }
  0x9a   : > { %1144 = vrot.lane.b32.xlu0 %v4869_v53, %s4510_s20  ;;  %v4877_v16 = vpop.permute.xlu2 %902 }
  0x9b   : > { %7020 = vst [vmem:[#allocation43_spill] sm:$0xff] %v4877_v16  ;;  %v4881_v6 = vpop.permute.xlu1 %882 }
  0x9c   : > { %v4883_v8 = vpop.permute.xlu0 %880 }
  0xa0   : > { %1154 = vrot.lane.b32.xlu2 %v4885_v18, %s4510_s20 }
  0xa1   : > { %1152 = vrot.lane.b32.xlu1 %v4887_v49, %s4510_s20  ;;  %v4479_v49 = vld [vmem:[%s6916_s1] sm:$0xff] }
  0xa2   : > { %1150 = vrot.lane.b32.xlu0 %v4889_v19, %s4510_s20  ;;  %v4897_v7 = vpop.permute.xlu2 %998  ;;  %1337 = vmatpush.bf16.msra.mxu0 %v4479_v49 }
  0xa3   : > { %v4899_v26 = vpop.permute.xlu1 %888 }
  0xa4   : > { %v4901_v46 = vpop.permute.xlu0 %886 }
  0xa8   : > { %1582 = vrot.lane.b32.xlu2 %v4669_v40, %s4508_s18 }
  0xa9   : > { %1580 = vrot.lane.b32.xlu1 %v4671_v42, %s4508_s18 }
  0xaa   : > { %1578 = vrot.lane.b32.xlu0 %v1577_v17, %s4508_s18  ;;  %v4908_v31 = vpop.permute.xlu2 %1004 }
  0xab   : > { %v4910_v32 = vpop.permute.xlu1 %894 }
  0xac   : > { %7024 = vst [vmem:[#allocation47_spill] sm:$0xff] %v4910_v32  ;;  %v4912_v48 = vpop.permute.xlu0 %892 }
  0xad   : > { %7025 = vst [vmem:[#allocation48_spill] sm:$0xff] %v4912_v48 }
  0xb0   : > { %1588 = vrot.lane.b32.xlu2 %v4687_v10, %s4508_s18  ;;  %v501_v10 = vpack.c.bf16 %v465_v25, %v465_v25 }
  0xb1   : > { %1586 = vrot.lane.b32.xlu1 %v4689_v12, %s4508_s18 }
  0xb2   : > { %1584 = vrot.lane.b32.xlu0 %v4667_v39, %s4508_s18  ;;  %v4920_v15 = vpop.permute.xlu2 %1010 }
  0xb3   : > { %v4922_v21 = vpop.permute.xlu1 %900 }
  0xb4   : > { %7026 = vst [vmem:[#allocation49_spill] sm:$0xff] %v4922_v21  ;;  %v4924_v22 = vpop.permute.xlu0 %898 }
  0xb5   : > { %7027 = vst [vmem:[#allocation50_spill] sm:$0xff] %v4924_v22 }
  0xb8   : > { %1594 = vrot.lane.b32.xlu2 %v4705_v36, %s4508_s18 }
  0xb9   : > { %1592 = vrot.lane.b32.xlu1 %v4707_v37, %s4508_s18 }
  0xba   : > { %1590 = vrot.lane.b32.xlu0 %v4685_v0, %s4508_s18  ;;  %v4932_v59 = vpop.permute.xlu2 %1016 }
  0xbb   : > { %7028 = vst [vmem:[#allocation51_spill] sm:$0xff] %v4932_v59  ;;  %v4934_v9 = vpop.permute.xlu1 %996 }
  0xbc   : > { %v995_v3 = vpop.permute.xlu0 %994 }
  0xc0   : > { %1600 = vrot.lane.b32.xlu2 %v4723_v13, %s4508_s18 }
  0xc1   : > { %1598 = vrot.lane.b32.xlu1 %v4725_v14, %s4508_s18 }
  0xc2   : > { %1596 = vrot.lane.b32.xlu0 %v4703_v35, %s4508_s18  ;;  %v4942_v4 = vpop.permute.xlu2 %1022 }
  0xc3   : > { %7029 = vst [vmem:[#allocation52_spill] sm:$0xff] %v4942_v4  ;;  %v4944_v17 = vpop.permute.xlu1 %1002  ;;  %v174_v4 = vld [vmem:[%s4545_s17 + $0x10] sm:$0xff] }
  0xc4   : > { %v4946_v18 = vpop.permute.xlu0 %1000 }
  0xc8   : > { %1606 = vrot.lane.b32.xlu2 %v4741_v44, %s4508_s18 }
  0xc9   : > { %1604 = vrot.lane.b32.xlu1 %v4743_v45, %s4508_s18 }
  0xca   : > { %1602 = vrot.lane.b32.xlu0 %v4721_v63, %s4508_s18  ;;  %v4957_v13 = vpop.permute.xlu2 %1028 }
  0xcb   : > { %7030 = vst [vmem:[#allocation53_spill] sm:$0xff] %v4957_v13  ;;  %v4959_v14 = vpop.permute.xlu1 %1008  ;;  %v464_v13 = vld [vmem:[%s4545_s17 + $0x14] sm:$0xff] }
  0xcc   : > { %v4961_v35 = vpop.permute.xlu0 %1006 }
  0xd0   : > { %1612 = vrot.lane.b32.xlu2 %v4759_v23, %s4508_s18  ;;  %v172_v23 = vld [vmem:[%s4545_s17] sm:$0xff] }
  0xd1   : > { %1610 = vrot.lane.b32.xlu1 %v4761_v24, %s4508_s18  ;;  %v208_v19 = vpack.c.bf16 %v172_v23, %v172_v23  ;;  %v500_v23 = vpack.c.bf16 %v464_v13, %v464_v13 }
  0xd2   : > { %1608 = vrot.lane.b32.xlu0 %v4739_v43, %s4508_s18  ;;  %v4969_v44 = vpop.permute.xlu2 %1124  ;;  %v173_v43 = vld [vmem:[%s4545_s17 + $0x8] sm:$0xff] }
  0xd3   : > { %v4971_v45 = vpop.permute.xlu1 %1014  ;;  %v209_v37 = vpack.c.bf16 %v173_v43, %v173_v43  ;;  %v724_v16 = vunpack.c.l.b16 %v208_v19  ;;  %v1686_v19 = vunpack.c.l.b16 %v500_v23  ;;  %v175_v23 = vld [vmem:[%s4545_s17 + $0x18] sm:$0xff] }
  0xd4   : > { %v4973_v49 = vpop.permute.xlu0 %1012  ;;  %v211_v40 = vpack.c.bf16 %v175_v23, %v175_v23 }
  0xd5   : > { %v725_v0 = vunpack.c.l.b16 %v209_v37  ;;  %v1687_v37 = vunpack.c.l.b16 %v501_v10 }
  0xd7   : > { %v760_v22 = vpack.c.b16 %v725_v0, %v724_v16  ;;  %v613_v0 = vld [vmem:[%s4545_s17 + $0x2e] sm:$0xff]  ;;  %v540_v16 = vld [vmem:[%s4545_s17 + $0x25] sm:$0xff]  ;;  %v1722_v39 = vpack.c.b16 %v1687_v37, %v1686_v19  ;;  %v543_v37 = vld [vmem:[%s4545_s17 + $0x3d] sm:$0xff] }
  0xd8   : > { %1618 = vrot.lane.b32.xlu2 %v4777_v61, %s4509_s19 }
  0xd9   : > { %1616 = vrot.lane.b32.xlu1 %v4779_v62, %s4509_s19  ;;  %v1159_v13 = vsel %vm1156_vm0, %v760_v22, %v4839_v38  ;;  %v649_v22 = vpack.c.bf16 %v613_v0, %v613_v0  ;;  %v727_v0 = vunpack.c.l.b16 %v211_v40 }
  0xda   : > { %1614 = vrot.lane.b32.xlu0 %v4781_v1, %s4509_s19  ;;  %v4981_v24 = vpop.permute.xlu2 %1130  ;;  %v1213_v10 = vsel %vm1211_vm1, %v1159_v13, %v995_v3 }
  0xdb   : > { %v4985_v63 = vpop.permute.xlu1 %1020  ;;  %v3349_v3 = vunpack.c.l.b16 %v649_v22 }
  0xdc   : > { %7031 = vst [vmem:[#allocation54_spill] sm:$0xff] %v4985_v63  ;;  %v4987_v36 = vpop.permute.xlu0 %1018 }
  0xdd   : > { %7032 = vst [vmem:[#allocation55_spill] sm:$0xff] %v4987_v36  ;;  %v576_v36 = vpack.c.bf16 %v540_v16, %v540_v16  ;;  %v467_v16 = vld [vmem:[%s4545_s17 + $0x2c] sm:$0xff] }
  0xdf   : > { %v2736_v19 = vunpack.c.l.b16 %v576_v36 }
  0xe0   : > { %1624 = vrot.lane.b32.xlu2 %v4797_v52, %s4509_s19 }
  0xe1   : > { %1622 = vrot.lane.b32.xlu1 %v4799_v2, %s4509_s19 }
  0xe2   : > { %1620 = vrot.lane.b32.xlu0 %v4801_v5, %s4509_s19  ;;  %v4997_v21 = vpop.permute.xlu2 %1136 }
  0xe3   : > { %v4999_v27 = vpop.permute.xlu1 %1026 }
  0xe4   : > { %7033 = vst [vmem:[#allocation56_spill] sm:$0xff] %v4999_v27  ;;  %v5001_v43 = vpop.permute.xlu0 %1024  ;;  %v612_v27 = vld [vmem:[%s4545_s17 + $0x26] sm:$0xff] }
  0xe5   : > { %7034 = vst [vmem:[#allocation57_spill] sm:$0xff] %v5001_v43  ;;  %v541_v43 = vld [vmem:[%s4545_s17 + $0x2d] sm:$0xff]  ;;  %v648_v38 = vpack.c.bf16 %v612_v27, %v612_v27  ;;  %v542_v27 = vld [vmem:[%s4545_s17 + $0x35] sm:$0xff] }
  0xe6   : > { %v577_v48 = vpack.c.bf16 %v541_v43, %v541_v43 }
  0xe8   : > { %1630 = vrot.lane.b32.xlu2 %v4817_v56, %s4509_s19  ;;  %v210_v56 = vpack.c.bf16 %v174_v4, %v174_v4  ;;  %v466_v4 = vld [vmem:[%s4545_s17 + $0x24] sm:$0xff] }
  0xe9   : > { %1628 = vrot.lane.b32.xlu1 %v4819_v57, %s4509_s19 }
  0xea   : > { %1626 = vrot.lane.b32.xlu0 %v4821_v58, %s4509_s19  ;;  %v5012_v25 = vpop.permute.xlu2 %1142  ;;  %v726_v13 = vunpack.c.l.b16 %v210_v56  ;;  %v503_v56 = vpack.c.bf16 %v467_v16, %v467_v16 }
  0xeb   : > { %7035 = vst [vmem:[#allocation58_spill] sm:$0xff] %v5012_v25  ;;  %v1123_v12 = vpop.permute.xlu1 %1122 }
  0xec   : > { %v1121_v63 = vpop.permute.xlu0 %1120  ;;  %v761_v40 = vpack.c.b16 %v727_v0, %v726_v13  ;;  %v177_v13 = vld [vmem:[%s4545_s17 + $0x28] sm:$0xff] }
  0xed   : > { %v1250_v32 = vsel %vm1248_vm3, %v1213_v10, %v1121_v63  ;;  %v3348_v63 = vunpack.c.l.b16 %v648_v38 }
  0xee   : > { %4351 = vmatmul.msk.bf16.vlgmr.msra.gmra.mxu0 %vm1293_vm2, %v1250_v32  ;;  %v2737_v32 = vunpack.c.l.b16 %v577_v48  ;;  %v502_v48 = vpack.c.bf16 %v466_v4, %v466_v4 }
  0xef   : > { %v3384_v38 = vpack.c.b16 %v3349_v3, %v3348_v63  ;;  %v615_v63 = vld [vmem:[%s4545_s17 + $0x3e] sm:$0xff]  ;;  %v1162_v3 = vsel %vm1156_vm0, %v761_v40, %v4863_v55 }
  0xf0   : > { %3240 = vrot.lane.b32.xlu2 %v1722_v39, %s4508_s18  ;;  %v5037_v36 = vpack.c.b16 %v2737_v32, %v2736_v19  ;;  %v1688_v25 = vunpack.c.l.b16 %v502_v48  ;;  %v176_v32 = vld [vmem:[%s4545_s17 + $0x20] sm:$0xff]  ;;  %v651_v55 = vpack.c.bf16 %v615_v63, %v615_v63  ;;  %v213_v48 = vpack.c.bf16 %v177_v13, %v177_v13  ;;  %v468_v63 = vld [vmem:[%s4545_s17 + $0x34] sm:$0xff] }
  0xf1   : > { %1634 = vrot.lane.b32.xlu1 %v4843_v11, %s4509_s19  ;;  %v578_v11 = vpack.c.bf16 %v542_v27, %v542_v27  ;;  %v1689_v27 = vunpack.c.l.b16 %v503_v56 }
  0xf2   : > { %1632 = vrot.lane.b32.xlu0 %v4845_v60, %s4509_s19  ;;  %v5029_v43 = vpop.permute.xlu2 %1148  ;;  %v579_v60 = vpack.c.bf16 %v543_v37, %v543_v37  ;;  %v614_v37 = vld [vmem:[%s4545_s17 + $0x36] sm:$0xff]  ;;  %v3351_v40 = vunpack.c.l.b16 %v651_v55 }
  0xf3   : > { %7036 = vst [vmem:[#allocation59_spill] sm:$0xff] %v5029_v43  ;;  %v5033_v23 = vpop.permute.xlu1 %1128  ;;  %v2738_v22 = vunpack.c.l.b16 %v578_v11  ;;  %v650_v16 = vpack.c.bf16 %v614_v37, %v614_v37  ;;  %v545_v37 = vld [vmem:[%s4545_s17 + $0x4d] sm:$0xff] }
  0xf4   : > { %v5035_v10 = vpop.permute.xlu0 %1126  ;;  %v2739_v43 = vunpack.c.l.b16 %v579_v60  ;;  %v581_v57 = vpack.c.bf16 %v545_v37, %v545_v37 }
  0xf5   : > { %v3350_v56 = vunpack.c.l.b16 %v650_v16 }
  0xf6   : > { %v5058_v4 = vpack.c.b16 %v2739_v43, %v2738_v22  ;;  %v544_v43 = vld [vmem:[%s4545_s17 + $0x45] sm:$0xff] }
  0xf8   : > { %1740 = vrot.lane.b32.xlu2 %v1722_v39, %s4510_s20  ;;  %v1215_v39 = vsel %vm1211_vm1, %v1162_v3, %v4934_v9  ;;  %v212_v9 = vpack.c.bf16 %v176_v32, %v176_v32  ;;  %v616_v3 = vld [vmem:[%s4545_s17 + $0x46] sm:$0xff]  ;;  %v469_v32 = vld [vmem:[%s4545_s17 + $0x3c] sm:$0xff] }
  0xf9   : > { %3402 = vrot.lane.b32.xlu1 %v3384_v38, %s4510_s20  ;;  %v1252_v0 = vsel %vm1248_vm3, %v1215_v39, %v1123_v12  ;;  %v5061_v38 = vpack.c.b16 %v1689_v27, %v1688_v25  ;;  %v617_v12 = vld [vmem:[%s4545_s17 + $0x4e] sm:$0xff]  ;;  %v729_v25 = vunpack.c.l.b16 %v213_v48  ;;  %v652_v16 = vpack.c.bf16 %v616_v3, %v616_v3 }
  0xfa   : > { %3276 = vrot.lane.b32.xlu0 %v5037_v36, %s4509_s19  ;;  %v5047_v19 = vpop.permute.xlu2 %1154  ;;  %v728_v22 = vunpack.c.l.b16 %v212_v9  ;;  %v653_v55 = vpack.c.bf16 %v617_v12, %v617_v12  ;;  %v505_v50 = vpack.c.bf16 %v469_v32, %v469_v32 }
  0xfb   : > { %7037 = vst [vmem:[#allocation60_spill] sm:$0xff] %v5047_v19  ;;  %v5053_v11 = vpop.permute.xlu1 %1134  ;;  %v580_v19 = vpack.c.bf16 %v544_v43, %v544_v43  ;;  %v3352_v48 = vunpack.c.l.b16 %v652_v16 }
  0xfc   : > { %v5055_v60 = vpop.permute.xlu0 %1132  ;;  %v762_v9 = vpack.c.b16 %v729_v25, %v728_v22  ;;  %v3353_v59 = vunpack.c.l.b16 %v653_v55  ;;  %v1691_v12 = vunpack.c.l.b16 %v505_v50  ;;  %v178_v22 = vld [vmem:[%s4545_s17 + $0x30] sm:$0xff]  ;;  %v179_v25 = vld [vmem:[%s4545_s17 + $0x38] sm:$0xff] }
  0xfe   : > { %4352 = vmatmul.msk.bf16.gmra.mxu0 %vm1293_vm2, %v1252_v0  ;;  %v3385_v0 = vpack.c.b16 %v3351_v40, %v3350_v56  ;;  %v2740_v56 = vunpack.c.l.b16 %v580_v19  ;;  %v2741_v40 = vunpack.c.l.b16 %v581_v57  ;;  %v1165_v43 = vsel %vm1156_vm0, %v762_v9, %v4837_v34 }
  0xff   : > { %v3386_v57 = vpack.c.b16 %v3353_v59, %v3352_v48  ;;  %v214_v19 = vpack.c.bf16 %v178_v22, %v178_v22  ;;  %v470_v48 = vld [vmem:[%s4545_s17 + $0x44] sm:$0xff] }
 0x100   : > { %3278 = vrot.lane.b32.xlu2 %v5058_v4, %s4509_s19  ;;  %v5101_v34 = vpack.c.b16 %v2741_v40, %v2740_v56  ;;  %v471_v56 = vld [vmem:[%s4545_s17 + $0x4c] sm:$0xff]  ;;  %v506_v22 = vpack.c.bf16 %v470_v48, %v470_v48  ;;  %v618_v48 = vld [vmem:[%s4545_s17 + $0x56] sm:$0xff] }
 0x101   : > { %3242 = vrot.lane.b32.xlu1 %v5061_v38, %s4508_s18  ;;  %v730_v55 = vunpack.c.l.b16 %v214_v19 }
 0x102   : > { %1636 = vrot.lane.b32.xlu0 %v4841_v41, %s4509_s19  ;;  %v5072_v27 = vpop.permute.xlu2 %1582  ;;  %v504_v41 = vpack.c.bf16 %v468_v63, %v468_v63  ;;  %v1217_v63 = vsel %vm1211_vm1, %v1165_v43, %v4897_v7  ;;  %v546_v7 = vld [vmem:[%s4545_s17 + $0x55] sm:$0xff]  ;;  %v1692_v19 = vunpack.c.l.b16 %v506_v22 }
 0x103   : > { %v5077_v13 = vpop.permute.xlu1 %1140  ;;  %v1254_v50 = vsel %vm1248_vm3, %v1217_v63, %v4969_v44  ;;  %v547_v44 = vld [vmem:[%s4545_s17 + $0x5d] sm:$0xff] }
 0x104   : > { %v5079_v39 = vpop.permute.xlu0 %1138  ;;  %v1690_v3 = vunpack.c.l.b16 %v504_v41  ;;  %v583_v43 = vpack.c.bf16 %v547_v44, %v547_v44 }
 0x106   : > { %v5103_v41 = vpack.c.b16 %v1691_v12, %v1690_v3  ;;  %v582_v12 = vpack.c.bf16 %v546_v7, %v546_v7 }
 0x108   : > { %1638 = vrot.lane.b32.xlu2 %v4869_v53, %s4509_s19 }
 0x109   : > { %1742 = vrot.lane.b32.xlu1 %v5061_v38, %s4510_s20 }
 0x10a   : > { %3404 = vrot.lane.b32.xlu0 %v3385_v0, %s4510_s20  ;;  %v5088_v37 = vpop.permute.xlu2 %1588  ;;  %v215_v0 = vpack.c.bf16 %v179_v25, %v179_v25  ;;  %v507_v25 = vpack.c.bf16 %v471_v56, %v471_v56  ;;  %v181_v56 = vld [vmem:[%s4545_s17 + $0x48] sm:$0xff] }
 0x10b   : > { %7038 = vst [vmem:[#allocation61_spill] sm:$0xff] %v5088_v37  ;;  %v5094_v32 = vpop.permute.xlu1 %1146  ;;  %v217_v53 = vpack.c.bf16 %v181_v56, %v181_v56 }
 0x10c   : > { %v5096_v16 = vpop.permute.xlu0 %1144  ;;  %v731_v59 = vunpack.c.l.b16 %v215_v0  ;;  %v1693_v0 = vunpack.c.l.b16 %v507_v25 }
 0x10e   : > { %4353 = vmatmul.msk.bf16.gmra.mxu0 %vm1293_vm2, %v1254_v50  ;;  %v763_v63 = vpack.c.b16 %v731_v59, %v730_v55  ;;  %v2742_v50 = vunpack.c.l.b16 %v582_v12  ;;  %v619_v55 = vld [vmem:[%s4545_s17 + $0x5e] sm:$0xff] }
 0x10f   : > { %v180_v59 = vld [vmem:[%s4545_s17 + $0x40] sm:$0xff] }
 0x110   : > { %3406 = vrot.lane.b32.xlu2 %v3386_v57, %s4510_s20  ;;  %v2743_v57 = vunpack.c.l.b16 %v583_v43  ;;  %v1168_v7 = vsel %vm1156_vm0, %v763_v63, %v4861_v20  ;;  %v5145_v20 = vpack.c.b16 %v1693_v0, %v1692_v19  ;;  %v654_v63 = vpack.c.bf16 %v618_v48, %v618_v48 }
 0x111   : > { %3280 = vrot.lane.b32.xlu1 %v5101_v34, %s4509_s19  ;;  %v733_v0 = vunpack.c.l.b16 %v217_v53 }
 0x112   : > { %3244 = vrot.lane.b32.xlu0 %v5103_v41, %s4508_s18  ;;  %v5112_v9 = vpop.permute.xlu2 %1594  ;;  %v5142_v25 = vpack.c.b16 %v2743_v57, %v2742_v50  ;;  %v472_v50 = vld [vmem:[%s4545_s17 + $0x54] sm:$0xff]  ;;  %v473_v57 = vld [vmem:[%s4545_s17 + $0x5c] sm:$0xff] }
 0x113   : > { %7039 = vst [vmem:[#allocation62_spill] sm:$0xff] %v5112_v9  ;;  %v5116_v40 = vpop.permute.xlu1 %1152  ;;  %v216_v9 = vpack.c.bf16 %v180_v59, %v180_v59  ;;  %v508_v59 = vpack.c.bf16 %v472_v50, %v472_v50  ;;  %v621_v50 = vld [vmem:[%s4545_s17 + $0x6e] sm:$0xff] }
 0x114   : > { %7040 = vst [vmem:[#allocation63_spill] sm:$0xff] %v5116_v40  ;;  %v5118_v3 = vpop.permute.xlu0 %1150 }
 0x115   : > { %7041 = vst [vmem:[#allocation64_spill] sm:$0xff] %v5118_v3  ;;  %v732_v19 = vunpack.c.l.b16 %v216_v9  ;;  %v1694_v9 = vunpack.c.l.b16 %v508_v59 }
 0x118   : > { %2664 = vrot.lane.b32.xlu2 %v5061_v38, %s4509_s19  ;;  %v1219_v38 = vsel %vm1211_vm1, %v1168_v7, %v4946_v18  ;;  %v3354_v18 = vunpack.c.l.b16 %v654_v63 }
 0x119   : > { %1744 = vrot.lane.b32.xlu1 %v5103_v41, %s4510_s20  ;;  %v1256_v22 = vsel %vm1248_vm3, %v1219_v38, %v5035_v10  ;;  %v620_v38 = vld [vmem:[%s4545_s17 + $0x66] sm:$0xff] }
 0x11a   : > { %2623 = vrot.lane.b32.xlu0 %v4781_v1, %s4508_s18  ;;  %v5128_v44 = vpop.permute.xlu2 %1600 }
 0x11b   : > { %7042 = vst [vmem:[#allocation65_spill] sm:$0xff] %v5128_v44  ;;  %v5136_v12 = vpop.permute.xlu1 %1580  ;;  %v655_v44 = vpack.c.bf16 %v619_v55, %v619_v55 }
 0x11c   : > { %v5138_v43 = vpop.permute.xlu0 %1578 }
 0x11d   : > { %v3355_v10 = vunpack.c.l.b16 %v655_v44  ;;  %v764_v44 = vpack.c.b16 %v733_v0, %v732_v19  ;;  %v183_v19 = vld [vmem:[%s4545_s17 + $0x58] sm:$0xff] }
 0x11e   : > { %4354 = vmatmul.msk.bf16.gmra.mxu0 %vm1293_vm2, %v1256_v22  ;;  %v219_v37 = vpack.c.bf16 %v183_v19, %v183_v19 }
 0x11f   : > { %v3387_v56 = vpack.c.b16 %v3355_v10, %v3354_v18  ;;  %v1171_v22 = vsel %vm1156_vm0, %v764_v44, %v4772_v54  ;;  %v549_v18 = vld [vmem:[%s4545_s17 + $0x6d] sm:$0xff]  ;;  %v656_v54 = vpack.c.bf16 %v620_v38, %v620_v38  ;;  %v657_v44 = vpack.c.bf16 %v621_v50, %v621_v50 }
 0x120   : > { %3282 = vrot.lane.b32.xlu2 %v5142_v25, %s4509_s19  ;;  %v182_v10 = vld [vmem:[%s4545_s17 + $0x50] sm:$0xff]  ;;  %v1221_v0 = vsel %vm1211_vm1, %v1171_v22, %v4944_v17  ;;  %v585_v40 = vpack.c.bf16 %v549_v18, %v549_v18  ;;  %v4480_v17 = vld [vmem:[%s6916_s1 + $0x8] sm:$0xff]  ;;  %v735_v50 = vunpack.c.l.b16 %v219_v37 }
 0x121   : > { %3246 = vrot.lane.b32.xlu1 %v5145_v20, %s4508_s18  ;;  %v218_v3 = vpack.c.bf16 %v182_v10, %v182_v10  ;;  %1954 = vmatpush.bf16.msra.mxu1 %v4480_v17  ;;  %v622_v37 = vld [vmem:[%s4545_s17 + $0x76] sm:$0xff]  ;;  %v184_v17 = vld [vmem:[%s4545_s17 + $0x60] sm:$0xff] }
 0x122   : > { %2790 = vrot.lane.b32.xlu0 %v5037_v36, %s4510_s20  ;;  %v5155_v7 = vpop.permute.xlu2 %1606  ;;  %v509_v36 = vpack.c.bf16 %v473_v57, %v473_v57  ;;  %v548_v57 = vld [vmem:[%s4545_s17 + $0x65] sm:$0xff]  ;;  %v2745_v38 = vunpack.c.l.b16 %v585_v40 }
 0x123   : > { %7043 = vst [vmem:[#allocation66_spill] sm:$0xff] %v5155_v7  ;;  %v5157_v48 = vpop.permute.xlu1 %1586  ;;  %v734_v22 = vunpack.c.l.b16 %v218_v3  ;;  %v623_v40 = vld [vmem:[%s4545_s17 + $0x7e] sm:$0xff]  ;;  %v550_v3 = vld [vmem:[%s4545_s17 + $0x75] sm:$0xff] }
 0x124   : > { %v5159_v55 = vpop.permute.xlu0 %1584  ;;  %v1695_v53 = vunpack.c.l.b16 %v509_v36 }
 0x126   : > { %v5184_v7 = vpack.c.b16 %v1695_v53, %v1694_v9  ;;  %v3357_v9 = vunpack.c.l.b16 %v657_v44  ;;  %v475_v44 = vld [vmem:[%s4545_s17 + $0x6c] sm:$0xff] }
 0x128   : > { %1746 = vrot.lane.b32.xlu2 %v5145_v20, %s4510_s20 }
 0x129   : > { %2625 = vrot.lane.b32.xlu1 %v4779_v62, %s4508_s18 }
 0x12a   : > { %3408 = vrot.lane.b32.xlu0 %v3387_v56, %s4510_s20  ;;  %v5169_v63 = vpop.permute.xlu2 %1612  ;;  %v1258_v56 = vsel %vm1248_vm3, %v1221_v0, %v5033_v23  ;;  %v3356_v23 = vunpack.c.l.b16 %v656_v54  ;;  %v474_v54 = vld [vmem:[%s4545_s17 + $0x64] sm:$0xff] }
 0x12b   : > { %7044 = vst [vmem:[#allocation67_spill] sm:$0xff] %v5169_v63  ;;  %v5178_v59 = vpop.permute.xlu1 %1592  ;;  %v584_v63 = vpack.c.bf16 %v548_v57, %v548_v57 }
 0x12c   : > { %7045 = vst [vmem:[#allocation68_spill] sm:$0xff] %v5178_v59  ;;  %v5180_v36 = vpop.permute.xlu0 %1590  ;;  %v220_v59 = vpack.c.bf16 %v184_v17, %v184_v17 }
 0x12d   : > { %7046 = vst [vmem:[#allocation69_spill] sm:$0xff] %v5180_v36  ;;  %v2744_v53 = vunpack.c.l.b16 %v584_v63  ;;  %v765_v63 = vpack.c.b16 %v735_v50, %v734_v22  ;;  %v658_v50 = vpack.c.bf16 %v622_v37, %v622_v37 }
 0x12e   : > { %4355 = vmatmul.msk.bf16.gmra.mxu0 %vm1293_vm2, %v1258_v56  ;;  %v551_v56 = vld [vmem:[%s4545_s17 + $0x7d] sm:$0xff] }
 0x12f   : > { %v5202_v10 = vpack.c.b16 %v2745_v38, %v2744_v53  ;;  %v1174_v19 = vsel %vm1156_vm0, %v765_v63, %v4795_v47  ;;  %v586_v47 = vpack.c.bf16 %v550_v3, %v550_v3  ;;  %v587_v63 = vpack.c.bf16 %v551_v56, %v551_v56 }
 0x130   : > { %3248 = vrot.lane.b32.xlu2 %v5184_v7, %s4508_s18  ;;  %v736_v56 = vunpack.c.l.b16 %v220_v59  ;;  %v552_v59 = vld [vmem:[%s4545_s17 + $0x85] sm:$0xff] }
 0x131   : > { %2792 = vrot.lane.b32.xlu1 %v5058_v4, %s4510_s20  ;;  %v2747_v37 = vunpack.c.l.b16 %v587_v63  ;;  %v186_v63 = vld [vmem:[%s4545_s17 + $0x70] sm:$0xff] }
 0x132   : > { %2666 = vrot.lane.b32.xlu0 %v5103_v41, %s4509_s19  ;;  %v5196_v57 = vpop.permute.xlu2 %1618  ;;  %v3388_v41 = vpack.c.b16 %v3357_v9, %v3356_v23  ;;  %v185_v23 = vld [vmem:[%s4545_s17 + $0x68] sm:$0xff]  ;;  %v1223_v9 = vsel %vm1211_vm1, %v1174_v19, %v4908_v31  ;;  %v3358_v31 = vunpack.c.l.b16 %v658_v50 }
 0x133   : > { %v5198_v18 = vpop.permute.xlu1 %1598  ;;  %v1260_v22 = vsel %vm1248_vm3, %v1223_v9, %v4981_v24  ;;  %v221_v36 = vpack.c.bf16 %v185_v23, %v185_v23  ;;  %v2746_v24 = vunpack.c.l.b16 %v586_v47  ;;  %v477_v47 = vld [vmem:[%s4545_s17 + $0x7c] sm:$0xff] }
 0x134   : > { %7047 = vst [vmem:[#allocation70_spill] sm:$0xff] %v5198_v18  ;;  %v5200_v4 = vpop.permute.xlu0 %1596  ;;  %v510_v18 = vpack.c.bf16 %v474_v54, %v474_v54 }
 0x135   : > { %7048 = vst [vmem:[#allocation71_spill] sm:$0xff] %v5200_v4  ;;  %v511_v4 = vpack.c.bf16 %v475_v44, %v475_v44  ;;  %v737_v54 = vunpack.c.l.b16 %v221_v36  ;;  %v5242_v23 = vpack.c.b16 %v2747_v37, %v2746_v24  ;;  %v553_v36 = vld [vmem:[%s4545_s17 + $0x8d] sm:$0xff] }
 0x137   : > { %v1697_v3 = vunpack.c.l.b16 %v511_v4 }
 0x138   : > { %2627 = vrot.lane.b32.xlu2 %v4777_v61, %s4508_s18 }
 0x139   : > { %3410 = vrot.lane.b32.xlu1 %v3388_v41, %s4510_s20  ;;  %v659_v41 = vpack.c.bf16 %v623_v40, %v623_v40  ;;  %v1696_v40 = vunpack.c.l.b16 %v510_v18  ;;  %v4482_v18 = vld [vmem:[%s6916_s1 + $0x18] sm:$0xff] }
 0x13a   : > { %3284 = vrot.lane.b32.xlu0 %v5202_v10, %s4509_s19  ;;  %v5214_v0 = vpop.permute.xlu2 %1624  ;;  %3616 = vmatpush.bf16.msra.mxu3 %v4482_v18  ;;  %v1778_v18 = vsel %vm1156_vm0, %v4563_v30, %v5138_v43 }
 0x13b   : > { %v5223_v53 = vpop.permute.xlu1 %1604  ;;  %v3359_v19 = vunpack.c.l.b16 %v659_v41  ;;  %v5244_v9 = vpack.c.b16 %v1697_v3, %v1696_v40  ;;  %v476_v41 = vld [vmem:[%s4545_s17 + $0x74] sm:$0xff]  ;;  %v588_v3 = vpack.c.bf16 %v552_v59, %v552_v59 }
 0x13c   : > { %7049 = vst [vmem:[#allocation72_spill] sm:$0xff] %v5223_v53  ;;  %v5225_v38 = vpop.permute.xlu0 %1602 }
 0x13d   : > { %7050 = vst [vmem:[#allocation73_spill] sm:$0xff] %v5225_v38 }
 0x13e   : > { %4356 = vmatmul.msk.bf16.gmra.mxu0 %vm1293_vm2, %v1260_v22  ;;  %v766_v22 = vpack.c.b16 %v737_v54, %v736_v56  ;;  %v589_v56 = vpack.c.bf16 %v553_v36, %v553_v36  ;;  %v513_v54 = vpack.c.bf16 %v477_v47, %v477_v47 }
 0x140   : > { %2794 = vrot.lane.b32.xlu2 %v5101_v34, %s4510_s20  ;;  %v1177_v4 = vsel %vm1156_vm0, %v766_v22, %v4883_v8  ;;  %v512_v8 = vpack.c.bf16 %v476_v41, %v476_v41  ;;  %v1699_v59 = vunpack.c.l.b16 %v513_v54 }
 0x141   : > { %2668 = vrot.lane.b32.xlu1 %v5145_v20, %s4509_s19  ;;  %v3389_v20 = vpack.c.b16 %v3359_v19, %v3358_v31  ;;  %v187_v31 = vld [vmem:[%s4545_s17 + $0x78] sm:$0xff]  ;;  %v1225_v19 = vsel %vm1211_vm1, %v1177_v4, %v4961_v35  ;;  %v2748_v35 = vunpack.c.l.b16 %v588_v3  ;;  %v2749_v4 = vunpack.c.l.b16 %v589_v56 }
 0x142   : > { %1748 = vrot.lane.b32.xlu0 %v5184_v7, %s4510_s20  ;;  %v5236_v44 = vpop.permute.xlu2 %1630  ;;  %v1262_v40 = vsel %vm1248_vm3, %v1225_v19, %v5055_v60  ;;  %v223_v22 = vpack.c.bf16 %v187_v31, %v187_v31  ;;  %v1698_v60 = vunpack.c.l.b16 %v512_v8  ;;  %v625_v31 = vld [vmem:[%s4545_s17 + $0x8e] sm:$0xff] }
 0x143   : > { %7051 = vst [vmem:[#allocation74_spill] sm:$0xff] %v5236_v44  ;;  %v5238_v34 = vpop.permute.xlu1 %1610  ;;  %v661_v56 = vpack.c.bf16 %v625_v31, %v625_v31 }
 0x144   : > { %7052 = vst [vmem:[#allocation75_spill] sm:$0xff] %v5238_v34  ;;  %v5240_v17 = vpop.permute.xlu0 %1608  ;;  %v739_v41 = vunpack.c.l.b16 %v223_v22  ;;  %v5291_v3 = vpack.c.b16 %v1699_v59, %v1698_v60  ;;  %v478_v22 = vld [vmem:[%s4545_s17 + $0x84] sm:$0xff]  ;;  %v191_v34 = vld [vmem:[%s4545_s17 + $0x98] sm:$0xff] }
 0x145   : > { %7053 = vst [vmem:[#allocation76_spill] sm:$0xff] %v5240_v17  ;;  %v188_v60 = vld [vmem:[%s4545_s17 + $0x80] sm:$0xff]  ;;  %v189_v59 = vld [vmem:[%s4545_s17 + $0x88] sm:$0xff] }
 0x146   : > { %v224_v31 = vpack.c.bf16 %v188_v60, %v188_v60 }
 0x148   : > { %3412 = vrot.lane.b32.xlu2 %v3389_v20, %s4510_s20  ;;  %v222_v20 = vpack.c.bf16 %v186_v63, %v186_v63 }
 0x149   : > { %3286 = vrot.lane.b32.xlu1 %v5242_v23, %s4509_s19 }
 0x14a   : > { %3250 = vrot.lane.b32.xlu0 %v5244_v9, %s4508_s18  ;;  %v5258_v50 = vpop.permute.xlu2 %3240  ;;  %v738_v36 = vunpack.c.l.b16 %v222_v20  ;;  %v3361_v20 = vunpack.c.l.b16 %v661_v56  ;;  %v740_v56 = vunpack.c.l.b16 %v224_v31  ;;  %v5336_v31 = vld [vmem:[%s6917_s2] ss:$0 sm:$0xff] }
 0x14b   : > { %v5266_v24 = vpop.permute.xlu1 %1616  ;;  %v3440_v17 = vsel %vm1156_vm0, %v4781_v1, %v5258_v50  ;;  %v227_v50 = vpack.c.bf16 %v191_v34, %v191_v34 }
 0x14c   : > { %v1615_v37 = vpop.permute.xlu0 %1614  ;;  %v767_v8 = vpack.c.b16 %v739_v41, %v738_v36 }
 0x14d   : > { %v1831_v47 = vsel %vm1211_vm1, %v1778_v18, %v1615_v37  ;;  %v479_v18 = vld [vmem:[%s4545_s17 + $0x8c] sm:$0xff] }
 0x14e   : > { %4357 = vmatmul.msk.bf16.gmra.mxu0 %vm1293_vm2, %v1262_v40  ;;  %v5289_v40 = vpack.c.b16 %v2749_v4, %v2748_v35  ;;  %v1180_v35 = vsel %vm1156_vm0, %v767_v8, %v4881_v6 }
 0x14f   : > { %v1227_v36 = vsel %vm1211_vm1, %v1180_v35, %v4959_v14 }
 0x150   : > { %2670 = vrot.lane.b32.xlu2 %v5184_v7, %s4509_s19  ;;  %v624_v7 = vld [vmem:[%s4545_s17 + $0x86] sm:$0xff] }
 0x151   : > { %1750 = vrot.lane.b32.xlu1 %v5244_v9, %s4510_s20  ;;  %v660_v37 = vpack.c.bf16 %v624_v7, %v624_v7  ;;  %v515_v7 = vpack.c.bf16 %v479_v18, %v479_v18  ;;  %v555_v18 = vld [vmem:[%s4545_s17 + $0x9d] sm:$0xff] }
 0x152   : > { %2629 = vrot.lane.b32.xlu0 %v4801_v5, %s4508_s18  ;;  %v1741_v63 = vpop.permute.xlu2 %1740 }
 0x153   : > { %v5283_v19 = vpop.permute.xlu1 %1622  ;;  %v1867_v43 = vsel %vm1248_vm3, %v1831_v47, %v1741_v63  ;;  %v3360_v54 = vunpack.c.l.b16 %v660_v37  ;;  %v514_v63 = vpack.c.bf16 %v478_v22, %v478_v22  ;;  %v1701_v37 = vunpack.c.l.b16 %v515_v7 }
 0x154   : > { %v5285_v30 = vpop.permute.xlu0 %1620  ;;  %4375 = vmatmul.msk.bf16.vlgmr.msra.gmra.mxu1 %vm1293_vm2, %v1867_v43  ;;  %v225_v43 = vpack.c.bf16 %v189_v59, %v189_v59  ;;  %v591_v7 = vpack.c.bf16 %v555_v18, %v555_v18 }
 0x155   : > { %v3390_v6 = vpack.c.b16 %v3361_v20, %v3360_v54  ;;  %v1700_v14 = vunpack.c.l.b16 %v514_v63  ;;  %v627_v54 = vld [vmem:[%s4545_s17 + $0x9e] sm:$0xff]  ;;  %v554_v20 = vld [vmem:[%s4545_s17 + $0x95] sm:$0xff] }
 0x156   : > { %v741_v8 = vunpack.c.l.b16 %v225_v43  ;;  %v590_v63 = vpack.c.bf16 %v554_v20, %v554_v20  ;;  %v190_v43 = vld [vmem:[%s4545_s17 + $0x90] sm:$0xff] }
 0x157   : > { %v5331_v59 = vpack.c.b16 %v1701_v37, %v1700_v14  ;;  %v226_v1 = vpack.c.bf16 %v190_v43, %v190_v43 }
 0x158   : > { %3288 = vrot.lane.b32.xlu2 %v5289_v40, %s4509_s19 }
 0x159   : > { %3252 = vrot.lane.b32.xlu1 %v5291_v3, %s4508_s18 }
 0x15a   : > { %2796 = vrot.lane.b32.xlu0 %v5142_v25, %s4510_s20  ;;  %v5303_v4 = vpop.permute.xlu2 %3278  ;;  %v1264_v25 = vsel %vm1248_vm3, %v1227_v36, %v5053_v11  ;;  %v626_v11 = vld [vmem:[%s4545_s17 + $0x96] sm:$0xff] }
 0x15b   : > { %v5309_v41 = vpop.permute.xlu1 %1628  ;;  %v662_v36 = vpack.c.bf16 %v626_v11, %v626_v11  ;;  %v2750_v11 = vunpack.c.l.b16 %v590_v63 }
 0x15c   : > { %7054 = vst [vmem:[#allocation77_spill] sm:$0xff] %v5309_v41  ;;  %v5311_v47 = vpop.permute.xlu0 %1626 }
 0x15d   : > { %7055 = vst [vmem:[#allocation78_spill] sm:$0xff] %v5311_v47  ;;  %v3362_v14 = vunpack.c.l.b16 %v662_v36 }
 0x15e   : > { %4358 = vmatmul.msk.bf16.gmra.mxu0 %vm1293_vm2, %v1264_v25  ;;  %v663_v25 = vpack.c.bf16 %v627_v54, %v627_v54 }
 0x160   : > { %1752 = vrot.lane.b32.xlu2 %v5291_v3, %s4510_s20  ;;  %v3363_v37 = vunpack.c.l.b16 %v663_v25 }
 0x161   : > { %2631 = vrot.lane.b32.xlu1 %v4799_v2, %s4508_s18 }
 0x162   : > { %3414 = vrot.lane.b32.xlu0 %v3390_v6, %s4510_s20  ;;  %v5322_v22 = vpop.permute.xlu2 %1638  ;;  %v768_v6 = vpack.c.b16 %v741_v8, %v740_v56  ;;  %v2751_v56 = vunpack.c.l.b16 %v591_v7  ;;  %v3391_v34 = vpack.c.b16 %v3363_v37, %v3362_v14  ;;  %v4481_v14 = vld [vmem:[%s6916_s1 + $0x10] sm:$0xff]  ;;  %v556_v37 = vld [vmem:[%s4545_s17 + $0xa5] sm:$0xff] }
 0x163   : > { %7056 = vst [vmem:[#allocation79_spill] sm:$0xff] %v5322_v22  ;;  %v5327_v35 = vpop.permute.xlu1 %1634  ;;  %3004 = vmatpush.bf16.msra.mxu2 %v4481_v14  ;;  %v592_v22 = vpack.c.bf16 %v556_v37, %v556_v37 }
 0x164   : > { %7057 = vst [vmem:[#allocation80_spill] sm:$0xff] %v5327_v35  ;;  %v5329_v60 = vpop.permute.xlu0 %1632  ;;  %v1183_v8 = vsel %vm1156_vm0, %v768_v6, %v4812_v28  ;;  %v5361_v7 = vpack.c.b16 %v2751_v56, %v2750_v11  ;;  %v743_v6 = vunpack.c.l.b16 %v227_v50  ;;  %v557_v11 = vld [vmem:[%s4545_s17 + $0xad] sm:$0xff] }
 0x165   : > { %7058 = vst [vmem:[#allocation81_spill] sm:$0xff] %v5329_v60  ;;  %v1229_v18 = vsel %vm1211_vm1, %v1183_v8, %v4920_v15  ;;  %v742_v15 = vunpack.c.l.b16 %v226_v1  ;;  %v481_v1 = vld [vmem:[%s4545_s17 + $0x9c] sm:$0xff]  ;;  %v593_v38 = vpack.c.bf16 %v557_v11, %v557_v11  ;;  %v2752_v37 = vunpack.c.l.b16 %v592_v22 }
 0x166   : > { %v1266_v63 = vsel %vm1248_vm3, %v1229_v18, %v4997_v21  ;;  %v628_v21 = vld [vmem:[%s4545_s17 + $0xa6] sm:$0xff]  ;;  %v517_v44 = vpack.c.bf16 %v481_v1, %v481_v1 }
 0x167   : > { %v769_v50 = vpack.c.b16 %v743_v6, %v742_v15  ;;  %v2753_v11 = vunpack.c.l.b16 %v593_v38 }
 0x168   : > { %3254 = vrot.lane.b32.xlu2 %v5331_v59, %s4508_s18 }
 0x169   : > { %2798 = vrot.lane.b32.xlu1 %v5202_v10, %s4510_s20 }
 0x16a   : > { %2672 = vrot.lane.b32.xlu0 %v5244_v9, %s4509_s19  ;;  %v5351_v20 = vpop.permute.xlu2 %3406 }
 0x16b   : > { %v1339_v54 = vpop.f32.mrf.mxu0  ;;  %v3403_v9 = vpop.permute.xlu1 %3402 }
 0x16c   : > { %v1340_v10 = vadd.f32 %v5336_v31, %v1339_v54  ;;  %v3277_v36 = vpop.permute.xlu0 %3276  ;;  %v480_v54 = vld [vmem:[%s4545_s17 + $0x94] sm:$0xff] }
 0x16d   : > { %v3493_v25 = vsel %vm1211_vm1, %v3440_v17, %v3277_v36  ;;  %v629_v17 = vld [vmem:[%s4545_s17 + $0xae] sm:$0xff]  ;;  %v516_v60 = vpack.c.bf16 %v480_v54, %v480_v54 }
 0x16e   : > { %4359 = vmatmul.msk.bf16.gmra.mxu0 %vm1293_vm2, %v1266_v63  ;;  %v3529_v28 = vsel %vm1248_vm3, %v3493_v25, %v3403_v9  ;;  %v1465_v43 = vmul.f32 0.2, %v1340_v10  ;;  %vm1429_vm4 = vcmp.gt.f32.partialorder %v1340_v10, 0.0  ;;  %v192_v63 = vld [vmem:[%s4545_s17 + $0xa0] sm:$0xff]  ;;  %v665_v53 = vpack.c.bf16 %v629_v17, %v629_v17 }
 0x16f   : > { %4423 = vmatmul.msk.bf16.vlgmr.msra.gmra.mxu3 %vm1293_vm2, %v3529_v28  ;;  %v193_v28 = vld [vmem:[%s4545_s17 + $0xa8] sm:$0xff]  ;;  %v228_v47 = vpack.c.bf16 %v192_v63, %v192_v63  ;;  %v559_v63 = vld [vmem:[%s4545_s17 + $0xbd] sm:$0xff] }
 0x170   : > { %2633 = vrot.lane.b32.xlu2 %v4797_v52, %s4508_s18  ;;  %v1501_v18 = vsel %vm1429_vm4, %v1340_v10, %v1465_v43  ;;  %v229_v14 = vpack.c.bf16 %v193_v28, %v193_v28  ;;  %v1186_v10 = vsel %vm1156_vm0, %v769_v50, %v4901_v46  ;;  %v3365_v17 = vunpack.c.l.b16 %v665_v53  ;;  %v482_v28 = vld [vmem:[%s4545_s17 + $0xa4] sm:$0xff] }
 0x171   : > { %3416 = vrot.lane.b32.xlu1 %v3391_v34, %s4510_s20  ;;  %v664_v34 = vpack.c.bf16 %v628_v21, %v628_v21  ;;  %v1537_v41 = vpack.c.bf16 %v1501_v18, %v1501_v18  ;;  %v1703_v46 = vunpack.c.l.b16 %v517_v44 }
 0x172   : > { %3290 = vrot.lane.b32.xlu0 %v5361_v7, %s4509_s19  ;;  %v5376_v8 = vpop.permute.xlu2 %2664  ;;  %v745_v18 = vunpack.c.l.b16 %v229_v14 }
 0x173   : > { %v1341_v56 = vpop.f32.mrf.mxu0  ;;  %v3243_v36 = vpop.permute.xlu1 %3242  ;;  %v3364_v21 = vunpack.c.l.b16 %v664_v34  ;;  %v483_v34 = vld [vmem:[%s4545_s17 + $0xac] sm:$0xff] }
 0x174   : > { %v1342_v9 = vadd.f32 %v5336_v31, %v1341_v56  ;;  %v5381_v25 = vpop.permute.xlu0 %1636  ;;  %v3443_v43 = vsel %vm1156_vm0, %v4779_v62, %v3243_v36  ;;  %v1702_v56 = vunpack.c.l.b16 %v516_v60  ;;  %v1781_v62 = vsel %vm1156_vm0, %v4581_v51, %v5136_v12  ;;  %v558_v36 = vld [vmem:[%s4545_s17 + $0xb5] sm:$0xff] }
 0x175   : > { %v1833_v22 = vsel %vm1211_vm1, %v1781_v62, %v5266_v24  ;;  %v3495_v51 = vsel %vm1211_vm1, %v3443_v43, %v5303_v4  ;;  %v3392_v1 = vpack.c.b16 %v3365_v17, %v3364_v21  ;;  %v744_v4 = vunpack.c.l.b16 %v228_v47 }
 0x176   : > { %vm1430_vm5 = vcmp.gt.f32.partialorder %v1342_v9, 0.0  ;;  %v1466_v35 = vmul.f32 0.2, %v1342_v9  ;;  %v5421_v50 = vpack.c.b16 %v1703_v46, %v1702_v56  ;;  %v594_v17 = vpack.c.bf16 %v558_v36, %v558_v36 }
 0x177   : > { %v770_v47 = vpack.c.b16 %v745_v18, %v744_v4  ;;  %v519_v56 = vpack.c.bf16 %v483_v34, %v483_v34 }
 0x178   : > { %v1502_v15 = vsel %vm1430_vm5, %v1342_v9, %v1466_v35  ;;  %2800 = vrot.lane.b32.xlu2 %v5242_v23, %s4510_s20  ;;  %v1231_v35 = vsel %vm1211_vm1, %v1186_v10, %v4973_v49  ;;  %v5400_v23 = vunpack.c.l.b16 %v1537_v41 }
 0x179   : > { %v1538_v6 = vpack.c.bf16 %v1502_v15, %v1502_v15  ;;  %2674 = vrot.lane.b32.xlu1 %v5291_v3, %s4509_s19  ;;  %v1268_v49 = vsel %vm1248_vm3, %v1231_v35, %v5079_v39  ;;  %v5419_v39 = vpack.c.b16 %v2753_v11, %v2752_v37  ;;  %v595_v37 = vpack.c.bf16 %v559_v63, %v559_v63  ;;  %v194_v35 = vld [vmem:[%s4545_s17 + $0xb0] sm:$0xff]  ;;  %v631_v63 = vld [vmem:[%s4545_s17 + $0xbe] sm:$0xff] }
 0x17a   : > { %1754 = vrot.lane.b32.xlu0 %v5331_v59, %s4510_s20  ;;  %v5404_v3 = vpop.permute.xlu2 %3282  ;;  %v518_v11 = vpack.c.bf16 %v482_v28, %v482_v28 }
 0x17b   : > { %v5402_v53 = vunpack.c.l.b16 %v1538_v6  ;;  %v1344_v54 = vpop.f32.mrf.mxu0  ;;  %v1743_v44 = vpop.permute.xlu1 %1742 }
 0x17c   : > { %v1345_v38 = vadd.f32 %v5336_v31, %v1344_v54  ;;  %v3405_v60 = vpop.permute.xlu0 %3404  ;;  %v1869_v12 = vsel %vm1248_vm3, %v1833_v22, %v1743_v44  ;;  %v1189_v54 = vsel %vm1156_vm0, %v770_v47, %v4899_v26  ;;  %v2754_v44 = vunpack.c.l.b16 %v594_v17 }
 0x17d   : > { %v3531_v41 = vsel %vm1248_vm3, %v3495_v51, %v3405_v60  ;;  %4376 = vmatmul.msk.bf16.gmra.mxu1 %vm1293_vm2, %v1869_v12  ;;  %v195_v60 = vld [vmem:[%s4545_s17 + $0xb8] sm:$0xff]  ;;  %v2755_v51 = vunpack.c.l.b16 %v595_v37  ;;  %v1704_v12 = vunpack.c.l.b16 %v518_v11  ;;  %v1233_v4 = vsel %vm1211_vm1, %v1189_v54, %v4971_v45 }
 0x17e   : > { %4360 = vmatmul.msk.bf16.gmra.mxu0 %vm1293_vm2, %v1268_v49  ;;  %v1467_v9 = vmul.f32 0.2, %v1345_v38  ;;  %vm1431_vm6 = vcmp.gt.f32.partialorder %v1345_v38, 0.0  ;;  %v630_v45 = vld [vmem:[%s4545_s17 + $0xb6] sm:$0xff]  ;;  %v231_v28 = vpack.c.bf16 %v195_v60, %v195_v60  ;;  %v667_v37 = vpack.c.bf16 %v631_v63, %v631_v63 }
 0x17f   : > { %4424 = vmatmul.msk.bf16.gmra.mxu3 %vm1293_vm2, %v3531_v41  ;;  %v1705_v41 = vunpack.c.l.b16 %v519_v56  ;;  %v666_v17 = vpack.c.bf16 %v630_v45, %v630_v45  ;;  %v484_v11 = vld [vmem:[%s4545_s17 + $0xb4] sm:$0xff] }
 0x180   : > { %3418 = vrot.lane.b32.xlu2 %v3392_v1, %s4510_s20  ;;  %v1503_v14 = vsel %vm1431_vm6, %v1345_v38, %v1467_v9  ;;  %v230_v1 = vpack.c.bf16 %v194_v35, %v194_v35  ;;  %v3367_v54 = vunpack.c.l.b16 %v667_v37 }
 0x181   : > { %3292 = vrot.lane.b32.xlu1 %v5419_v39, %s4509_s19  ;;  %v1539_v62 = vpack.c.bf16 %v1503_v14, %v1503_v14 }
 0x182   : > { %3256 = vrot.lane.b32.xlu0 %v5421_v50, %s4508_s18  ;;  %v5433_v15 = vpop.permute.xlu2 %1746  ;;  %v746_v56 = vunpack.c.l.b16 %v230_v1 }
 0x183   : > { %v1346_v10 = vpop.f32.mrf.mxu0  ;;  %v3281_v43 = vpop.permute.xlu1 %3280  ;;  %v5453_v26 = vunpack.c.l.b16 %v1539_v62  ;;  %v485_v62 = vld [vmem:[%s4545_s17 + $0xbc] sm:$0xff] }
 0x184   : > { %v1347_v6 = vadd.f32 %v5336_v31, %v1346_v10  ;;  %v3245_v21 = vpop.permute.xlu0 %3244 }
 0x185   : > { %v3446_v38 = vsel %vm1156_vm0, %v4777_v61, %v3245_v21  ;;  %v1784_v61 = vsel %vm1156_vm0, %v4561_v29, %v5072_v27  ;;  %v1270_v27 = vsel %vm1248_vm3, %v1233_v4, %v5077_v13 }
 0x186   : > { %vm1432_vm7 = vcmp.gt.f32.partialorder %v1347_v6, 0.0  ;;  %v1468_v46 = vmul.f32 0.2, %v1347_v6  ;;  %v3497_v36 = vsel %vm1211_vm1, %v3446_v38, %v3281_v43  ;;  %v1835_v34 = vsel %vm1211_vm1, %v1784_v61, %v5196_v57 }
 0x187   : > { %v5470_v43 = vpack.c.b16 %v1705_v41, %v1704_v12  ;;  %v3533_v57 = vsel %vm1248_vm3, %v3497_v36, %v5351_v20  ;;  %v3366_v20 = vunpack.c.l.b16 %v666_v17  ;;  %v521_v41 = vpack.c.bf16 %v485_v62, %v485_v62  ;;  %v197_v36 = vld [vmem:[%s4545_s17 + $0xc8] sm:$0xff]  ;;  %v7060_v17 = vld [vmem:[#allocation4_spill] sm:$0xff] }
 0x188   : > { %v1504_v22 = vsel %vm1432_vm7, %v1347_v6, %v1468_v46  ;;  %2676 = vrot.lane.b32.xlu2 %v5331_v59, %s4509_s19  ;;  %v5468_v6 = vpack.c.b16 %v2755_v51, %v2754_v44  ;;  %v747_v46 = vunpack.c.l.b16 %v231_v28  ;;  %v520_v44 = vpack.c.bf16 %v484_v11, %v484_v11  ;;  %v633_v11 = vld [vmem:[%s4545_s17 + $0xce] sm:$0xff] }
 0x189   : > { %v1540_v49 = vpack.c.bf16 %v1504_v22, %v1504_v22  ;;  %1756 = vrot.lane.b32.xlu1 %v5421_v50, %s4510_s20  ;;  %v1787_v37 = vsel %vm1156_vm0, %v7060_v17, %v5159_v55 }
 0x18a   : > { %2635 = vrot.lane.b32.xlu0 %v4821_v58, %s4508_s18  ;;  %v5457_v9 = vpop.permute.xlu2 %3248  ;;  %v771_v1 = vpack.c.b16 %v747_v46, %v746_v56  ;;  %v1706_v28 = vunpack.c.l.b16 %v520_v44 }
 0x18b   : > { %v5455_v59 = vunpack.c.l.b16 %v1540_v49  ;;  %v1349_v18 = vpop.f32.mrf.mxu0  ;;  %v1745_v47 = vpop.permute.xlu1 %1744 }
 0x18c   : > { %v1350_v10 = vadd.f32 %v5336_v31, %v1349_v18  ;;  %v2624_v29 = vpop.permute.xlu0 %2623  ;;  %v1871_v14 = vsel %vm1248_vm3, %v1835_v34, %v1745_v47  ;;  %v3393_v18 = vpack.c.b16 %v3367_v54, %v3366_v20  ;;  %v1707_v34 = vunpack.c.l.b16 %v521_v41  ;;  %v7062_v20 = vld [vmem:[#allocation58_spill] sm:$0xff] }
 0x18d   : > { %4377 = vmatmul.msk.bf16.gmra.mxu1 %vm1293_vm2, %v1871_v14  ;;  %v2828_v35 = vsel %vm1156_vm0, %v4671_v42, %v2624_v29  ;;  %v7059_v14 = vld [vmem:[#allocation51_spill] sm:$0xff] }
 0x18e   : > { %4361 = vmatmul.msk.bf16.gmra.mxu0 %vm1293_vm2, %v1270_v27  ;;  %v1469_v13 = vmul.f32 0.2, %v1350_v10  ;;  %vm1433_vm8 = vcmp.gt.f32.partialorder %v1350_v10, 0.0  ;;  %v2881_v12 = vsel %vm1211_vm1, %v2828_v35, %v5376_v8  ;;  %v1192_v8 = vsel %vm1156_vm0, %v771_v1, %v4835_v33  ;;  %v7061_v33 = vld [vmem:[#allocation35_spill] sm:$0xff] }
 0x18f   : > { %4425 = vmatmul.msk.bf16.gmra.mxu3 %vm1293_vm2, %v3533_v57  ;;  %v233_v27 = vpack.c.bf16 %v197_v36, %v197_v36  ;;  %v1235_v57 = vsel %vm1211_vm1, %v1192_v8, %v7059_v14  ;;  %v560_v54 = vld [vmem:[%s4545_s17 + $0xc5] sm:$0xff]  ;;  %v669_v1 = vpack.c.bf16 %v633_v11, %v633_v11 }
 0x190   : > { %3294 = vrot.lane.b32.xlu2 %v5468_v6, %s4509_s19  ;;  %v1505_v60 = vsel %vm1433_vm8, %v1350_v10, %v1469_v13  ;;  %v632_v13 = vld [vmem:[%s4545_s17 + $0xc6] sm:$0xff]  ;;  %v1272_v55 = vsel %vm1248_vm3, %v1235_v57, %v7062_v20  ;;  %v199_v20 = vld [vmem:[%s4545_s17 + $0xd8] sm:$0xff] }
 0x191   : > { %3258 = vrot.lane.b32.xlu1 %v5470_v43, %s4508_s18  ;;  %v1541_v45 = vpack.c.bf16 %v1505_v60, %v1505_v60  ;;  %v668_v41 = vpack.c.bf16 %v632_v13, %v632_v13 }
 0x192   : > { %2802 = vrot.lane.b32.xlu0 %v5289_v40, %s4510_s20  ;;  %v5489_v38 = vpop.permute.xlu2 %2627  ;;  %v196_v40 = vld [vmem:[%s4545_s17 + $0xc0] sm:$0xff] }
 0x193   : > { %v1351_v22 = vpop.f32.mrf.mxu0  ;;  %v3247_v49 = vpop.permute.xlu1 %3246  ;;  %v232_v10 = vpack.c.bf16 %v196_v40, %v196_v40  ;;  %v5516_v56 = vunpack.c.l.b16 %v1541_v45  ;;  %v596_v40 = vpack.c.bf16 %v560_v54, %v560_v54  ;;  %v3368_v36 = vunpack.c.l.b16 %v668_v41  ;;  %v562_v41 = vld [vmem:[%s4545_s17 + $0xd5] sm:$0xff] }
 0x194   : > { %v1352_v42 = vadd.f32 %v5336_v31, %v1351_v22  ;;  %v2791_v51 = vpop.permute.xlu0 %2790  ;;  %v3449_v29 = vsel %vm1156_vm0, %v4801_v5, %v3247_v49  ;;  %v1837_v5 = vsel %vm1211_vm1, %v1787_v37, %v5285_v30  ;;  %v561_v22 = vld [vmem:[%s4545_s17 + $0xcd] sm:$0xff]  ;;  %v3369_v45 = vunpack.c.l.b16 %v669_v1  ;;  %v563_v1 = vld [vmem:[%s4545_s17 + $0xdd] sm:$0xff] }
 0x195   : > { %v2917_v4 = vsel %vm1248_vm3, %v2881_v12, %v2791_v51  ;;  %v1873_v49 = vsel %vm1248_vm3, %v1837_v5, %v5433_v15  ;;  %v3499_v30 = vsel %vm1211_vm1, %v3449_v29, %v5404_v3  ;;  %v5531_v51 = vpack.c.b16 %v1707_v34, %v1706_v28  ;;  %v198_v5 = vld [vmem:[%s4545_s17 + $0xd0] sm:$0xff] }
 0x196   : > { %vm1434_vm9 = vcmp.gt.f32.partialorder %v1352_v42, 0.0  ;;  %v1470_v61 = vmul.f32 0.2, %v1352_v42  ;;  %4399 = vmatmul.msk.bf16.vlgmr.msra.gmra.mxu2 %vm1293_vm2, %v2917_v4  ;;  %v748_v15 = vunpack.c.l.b16 %v232_v10  ;;  %v749_v3 = vunpack.c.l.b16 %v233_v27 }
 0x197   : > { %v3394_v17 = vpack.c.b16 %v3369_v45, %v3368_v36 }
 0x198   : > { %v1506_v63 = vsel %vm1434_vm9, %v1352_v42, %v1470_v61  ;;  %1758 = vrot.lane.b32.xlu2 %v5470_v43, %s4510_s20  ;;  %v597_v61 = vpack.c.bf16 %v561_v22, %v561_v22  ;;  %v7064_v22 = vld [vmem:[#allocation34_spill] sm:$0xff] }
 0x199   : > { %v1542_v47 = vpack.c.bf16 %v1506_v63, %v1506_v63  ;;  %2637 = vrot.lane.b32.xlu1 %v7061_v33, %s4508_s18  ;;  %v2756_v63 = vunpack.c.l.b16 %v596_v40  ;;  %v235_v40 = vpack.c.bf16 %v199_v20, %v199_v20 }
 0x19a   : > { %3420 = vrot.lane.b32.xlu0 %v3393_v18, %s4510_s20  ;;  %v5520_v62 = vpop.permute.xlu2 %2794  ;;  %v2757_v28 = vunpack.c.l.b16 %v597_v61  ;;  %v7066_v61 = vld [vmem:[#allocation55_spill] sm:$0xff] }
 0x19b   : > { %v5518_v46 = vunpack.c.l.b16 %v1542_v47  ;;  %v1354_v35 = vpop.f32.mrf.mxu0  ;;  %v2626_v60 = vpop.permute.xlu1 %2625  ;;  %v7063_v47 = vld [vmem:[#allocation18_spill] sm:$0xff] }
 0x19c   : > { %v1355_v44 = vadd.f32 %v5336_v31, %v1354_v35  ;;  %v3409_v42 = vpop.permute.xlu0 %3408  ;;  %v2831_v29 = vsel %vm1156_vm0, %v7063_v47, %v2626_v60  ;;  %v5552_v11 = vpack.c.b16 %v2757_v28, %v2756_v63  ;;  %v635_v60 = vld [vmem:[%s4545_s17 + $0xde] sm:$0xff] }
 0x19d   : > { %v3535_v12 = vsel %vm1248_vm3, %v3499_v30, %v3409_v42  ;;  %4378 = vmatmul.msk.bf16.gmra.mxu1 %vm1293_vm2, %v1873_v49  ;;  %v234_v42 = vpack.c.bf16 %v198_v5, %v198_v5  ;;  %v7065_v49 = vld [vmem:[#allocation48_spill] sm:$0xff]  ;;  %v486_v63 = vld [vmem:[%s4545_s17 + $0xc4] sm:$0xff] }
 0x19e   : > { %4362 = vmatmul.msk.bf16.gmra.mxu0 %vm1293_vm2, %v1272_v55  ;;  %v1471_v18 = vmul.f32 0.2, %v1355_v44  ;;  %vm1435_vm10 = vcmp.gt.f32.partialorder %v1355_v44, 0.0 }
 0x19f   : > { %4426 = vmatmul.msk.bf16.gmra.mxu3 %vm1293_vm2, %v3535_v12  ;;  %v3452_v12 = vsel %vm1156_vm0, %v4799_v2, %v5457_v9  ;;  %v487_v2 = vld [vmem:[%s4545_s17 + $0xcc] sm:$0xff] }
 0x1a0   : > { %3260 = vrot.lane.b32.xlu2 %v5531_v51, %s4508_s18  ;;  %v1507_v10 = vsel %vm1435_vm10, %v1355_v44, %v1471_v18  ;;  %v634_v44 = vld [vmem:[%s4545_s17 + $0xd6] sm:$0xff] }
 0x1a1   : > { %2804 = vrot.lane.b32.xlu1 %v5361_v7, %s4510_s20  ;;  %v772_v7 = vpack.c.b16 %v749_v3, %v748_v15  ;;  %v1543_v35 = vpack.c.bf16 %v1507_v10, %v1507_v10  ;;  %v670_v47 = vpack.c.bf16 %v634_v44, %v634_v44  ;;  %v7067_v44 = vld [vmem:[#allocation17_spill] sm:$0xff] }
 0x1a2   : > { %2678 = vrot.lane.b32.xlu0 %v5421_v50, %s4509_s19  ;;  %v5545_v8 = vpop.permute.xlu2 %3412 }
 0x1a3   : > { %v1356_v34 = vpop.f32.mrf.mxu0  ;;  %v2793_v14 = vpop.permute.xlu1 %2792  ;;  %v1195_v30 = vsel %vm1156_vm0, %v772_v7, %v7065_v49  ;;  %v5573_v18 = vunpack.c.l.b16 %v1543_v35  ;;  %v3370_v35 = vunpack.c.l.b16 %v670_v47 }
 0x1a4   : > { %v1357_v27 = vadd.f32 %v5336_v31, %v1356_v34  ;;  %v2667_v57 = vpop.permute.xlu0 %2666  ;;  %v1237_v15 = vsel %vm1211_vm1, %v1195_v30, %v7066_v61  ;;  %v7068_v30 = vld [vmem:[#allocation2_spill] sm:$0xff] }
 0x1a5   : > { %v2883_v50 = vsel %vm1211_vm1, %v2831_v29, %v2667_v57  ;;  %v1274_v9 = vsel %vm1248_vm3, %v1237_v15, %v5096_v16  ;;  %v671_v29 = vpack.c.bf16 %v635_v60, %v635_v60  ;;  %v599_v57 = vpack.c.bf16 %v563_v1, %v563_v1 }
 0x1a6   : > { %vm1436_vm11 = vcmp.gt.f32.partialorder %v1357_v27, 0.0  ;;  %v1472_v37 = vmul.f32 0.2, %v1357_v27  ;;  %v2919_v13 = vsel %vm1248_vm3, %v2883_v50, %v2793_v14  ;;  %v598_v14 = vpack.c.bf16 %v562_v41, %v562_v41 }
 0x1a7   : > { %4400 = vmatmul.msk.bf16.gmra.mxu2 %vm1293_vm2, %v2919_v13  ;;  %v750_v16 = vunpack.c.l.b16 %v234_v42  ;;  %v751_v13 = vunpack.c.l.b16 %v235_v40  ;;  %v3371_v20 = vunpack.c.l.b16 %v671_v29  ;;  %v2834_v60 = vsel %vm1156_vm0, %v7067_v44, %v5489_v38  ;;  %v201_v29 = vld [vmem:[%s4545_s17 + $0xe8] sm:$0xff] }
 0x1a8   : > { %v1508_v55 = vsel %vm1436_vm11, %v1357_v27, %v1472_v37  ;;  %2639 = vrot.lane.b32.xlu2 %v7064_v22, %s4508_s18  ;;  %v523_v37 = vpack.c.bf16 %v487_v2, %v487_v2  ;;  %v237_v44 = vpack.c.bf16 %v201_v29, %v201_v29 }
 0x1a9   : > { %v1544_v54 = vpack.c.bf16 %v1508_v55, %v1508_v55  ;;  %3422 = vrot.lane.b32.xlu1 %v3394_v17, %s4510_s20  ;;  %v522_v17 = vpack.c.bf16 %v486_v63, %v486_v63  ;;  %v2758_v55 = vunpack.c.l.b16 %v598_v14  ;;  %v773_v1 = vpack.c.b16 %v751_v13, %v750_v16  ;;  %v564_v14 = vld [vmem:[%s4545_s17 + $0xe5] sm:$0xff] }
 0x1aa   : > { %3296 = vrot.lane.b32.xlu0 %v5552_v11, %s4509_s19  ;;  %v5577_v45 = vpop.permute.xlu2 %2670  ;;  %v1709_v49 = vunpack.c.l.b16 %v523_v37  ;;  %v489_v37 = vld [vmem:[%s4545_s17 + $0xdc] sm:$0xff] }
 0x1ab   : > { %v5575_v3 = vunpack.c.l.b16 %v1544_v54  ;;  %v1359_v36 = vpop.f32.mrf.mxu0  ;;  %v3411_v34 = vpop.permute.xlu1 %3410  ;;  %v2759_v54 = vunpack.c.l.b16 %v599_v57  ;;  %v1708_v42 = vunpack.c.l.b16 %v522_v17  ;;  %v565_v57 = vld [vmem:[%s4545_s17 + $0xed] sm:$0xff]  ;;  %v7070_v13 = vld [vmem:[#allocation54_spill] sm:$0xff] }
 0x1ac   : > { %v1360_v28 = vadd.f32 %v5336_v31, %v1359_v36  ;;  %v3285_v10 = vpop.permute.xlu0 %3284 }
 0x1ad   : > { %v3501_v27 = vsel %vm1211_vm1, %v3452_v12, %v3285_v10  ;;  %v1790_v12 = vsel %vm1156_vm0, %v7068_v30, %v5157_v48  ;;  %v3395_v48 = vpack.c.b16 %v3371_v20, %v3370_v35  ;;  %v5609_v2 = vpack.c.b16 %v2759_v54, %v2758_v55  ;;  %v200_v10 = vld [vmem:[%s4545_s17 + $0xe0] sm:$0xff] }
 0x1ae   : > { %4363 = vmatmul.msk.bf16.gmra.mxu0 %vm1293_vm2, %v1274_v9  ;;  %v3537_v50 = vsel %vm1248_vm3, %v3501_v27, %v3411_v34  ;;  %v1473_v5 = vmul.f32 0.2, %v1360_v28  ;;  %vm1437_vm12 = vcmp.gt.f32.partialorder %v1360_v28, 0.0  ;;  %v1839_v40 = vsel %vm1211_vm1, %v1790_v12, %v5283_v19 }
 0x1af   : > { %4427 = vmatmul.msk.bf16.gmra.mxu3 %vm1293_vm2, %v3537_v50  ;;  %v7069_v50 = vld [vmem:[#allocation47_spill] sm:$0xff]  ;;  %v236_v16 = vpack.c.bf16 %v200_v10, %v200_v10  ;;  %v600_v30 = vpack.c.bf16 %v564_v14, %v564_v14  ;;  %v601_v12 = vpack.c.bf16 %v565_v57, %v565_v57  ;;  %v7072_v10 = vld [vmem:[#allocation61_spill] sm:$0xff] }
 0x1b0   : > { %2806 = vrot.lane.b32.xlu2 %v5419_v39, %s4510_s20  ;;  %v1509_v38 = vsel %vm1437_vm12, %v1360_v28, %v1473_v5  ;;  %v5614_v28 = vpack.c.b16 %v1709_v49, %v1708_v42  ;;  %v1198_v17 = vsel %vm1156_vm0, %v773_v1, %v7069_v50 }
 0x1b1   : > { %2680 = vrot.lane.b32.xlu1 %v5470_v43, %s4509_s19  ;;  %v1545_v34 = vpack.c.bf16 %v1509_v38, %v1509_v38  ;;  %v1239_v5 = vsel %vm1211_vm1, %v1198_v17, %v7070_v13 }
 0x1b2   : > { %1760 = vrot.lane.b32.xlu0 %v5531_v51, %s4510_s20  ;;  %v5602_v41 = vpop.permute.xlu2 %3288 }
 0x1b3   : > { %v1361_v39 = vpop.f32.mrf.mxu0  ;;  %v2669_v61 = vpop.permute.xlu1 %2668  ;;  %v5632_v35 = vunpack.c.l.b16 %v1545_v34  ;;  %v7071_v34 = vld [vmem:[#allocation38_spill] sm:$0xff] }
 0x1b4   : > { %v1362_v43 = vadd.f32 %v5336_v31, %v1361_v39  ;;  %v1749_v15 = vpop.permute.xlu0 %1748  ;;  %v2885_v36 = vsel %vm1211_vm1, %v2834_v60, %v2669_v61  ;;  %v1276_v60 = vsel %vm1248_vm3, %v1239_v5, %v5094_v32 }
 0x1b5   : > { %v1875_v63 = vsel %vm1248_vm3, %v1839_v40, %v1749_v15  ;;  %v2921_v19 = vsel %vm1248_vm3, %v2885_v36, %v5520_v62  ;;  %v488_v62 = vld [vmem:[%s4545_s17 + $0xd4] sm:$0xff]  ;;  %v525_v40 = vpack.c.bf16 %v489_v37, %v489_v37  ;;  %v752_v15 = vunpack.c.l.b16 %v236_v16 }
 0x1b6   : > { %vm1438_vm13 = vcmp.gt.f32.partialorder %v1362_v43, 0.0  ;;  %v1474_v9 = vmul.f32 0.2, %v1362_v43  ;;  %4379 = vmatmul.msk.bf16.gmra.mxu1 %vm1293_vm2, %v1875_v63  ;;  %v524_v1 = vpack.c.bf16 %v488_v62, %v488_v62  ;;  %v753_v36 = vunpack.c.l.b16 %v237_v44 }
 0x1b7   : > { %4401 = vmatmul.msk.bf16.gmra.mxu2 %vm1293_vm2, %v2921_v19  ;;  %v2761_v63 = vunpack.c.l.b16 %v601_v12 }
 0x1b8   : > { %v1510_v47 = vsel %vm1438_vm13, %v1362_v43, %v1474_v9  ;;  %3424 = vrot.lane.b32.xlu2 %v3395_v48, %s4510_s20  ;;  %v1710_v48 = vunpack.c.l.b16 %v524_v1  ;;  %v1711_v9 = vunpack.c.l.b16 %v525_v40  ;;  %v774_v57 = vpack.c.b16 %v753_v36, %v752_v15  ;;  %v7076_v15 = vld [vmem:[#allocation52_spill] sm:$0xff] }
 0x1b9   : > { %v1546_v27 = vpack.c.bf16 %v1510_v47, %v1510_v47  ;;  %3298 = vrot.lane.b32.xlu1 %v5609_v2, %s4509_s19  ;;  %v7073_v47 = vld [vmem:[#allocation3_spill] sm:$0xff] }
 0x1ba   : > { %3262 = vrot.lane.b32.xlu0 %v5614_v28, %s4508_s18  ;;  %v5636_v54 = vpop.permute.xlu2 %1752  ;;  %v1793_v29 = vsel %vm1156_vm0, %v7073_v47, %v7072_v10  ;;  %v5669_v5 = vpack.c.b16 %v1711_v9, %v1710_v48  ;;  %v202_v48 = vld [vmem:[%s4545_s17 + $0xf0] sm:$0xff]  ;;  %v203_v9 = vld [vmem:[%s4545_s17 + $0xf8] sm:$0xff] }
 0x1bb   : > { %v5634_v20 = vunpack.c.l.b16 %v1546_v27  ;;  %v1364_v55 = vpop.f32.mrf.mxu0  ;;  %v3287_v42 = vpop.permute.xlu1 %3286  ;;  %v1841_v50 = vsel %vm1211_vm1, %v1793_v29, %v5214_v0 }
 0x1bc   : > { %v3251_v49 = vpop.permute.xlu0 %3250  ;;  %v1365_v43 = vadd.f32 %v5336_v31, %v1364_v55 }
 0x1bd   : > { %v3455_v39 = vsel %vm1156_vm0, %v4797_v52, %v3251_v49  ;;  %v2760_v52 = vunpack.c.l.b16 %v600_v30  ;;  %v7074_v30 = vld [vmem:[#allocation21_spill] sm:$0xff] }
 0x1be   : > { %4364 = vmatmul.msk.bf16.gmra.mxu0 %vm1293_vm2, %v1276_v60  ;;  %v3503_v61 = vsel %vm1211_vm1, %v3455_v39, %v3287_v42  ;;  %v1475_v19 = vmul.f32 0.2, %v1365_v43  ;;  %vm1439_vm14 = vcmp.gt.f32.partialorder %v1365_v43, 0.0  ;;  %v7075_v39 = vld [vmem:[#allocation39_spill] sm:$0xff] }
 0x1bf   : > { %v3539_v32 = vsel %vm1248_vm3, %v3503_v61, %v5545_v8  ;;  %v636_v8 = vld [vmem:[%s4545_s17 + $0xe6] sm:$0xff]  ;;  %v5667_v13 = vpack.c.b16 %v2761_v63, %v2760_v52  ;;  %v1201_v1 = vsel %vm1156_vm0, %v774_v57, %v7075_v39  ;;  %v566_v39 = vld [vmem:[%s4545_s17 + $0xf5] sm:$0xff] }
 0x1c0   : > { %4428 = vmatmul.msk.bf16.gmra.mxu3 %vm1293_vm2, %v3539_v32  ;;  %2682 = vrot.lane.b32.xlu2 %v5531_v51, %s4509_s19  ;;  %v637_v51 = vld [vmem:[%s4545_s17 + $0xee] sm:$0xff]  ;;  %v672_v55 = vpack.c.bf16 %v636_v8, %v636_v8  ;;  %v1511_v44 = vsel %vm1439_vm14, %v1365_v43, %v1475_v19  ;;  %v490_v61 = vld [vmem:[%s4545_s17 + $0xe4] sm:$0xff]  ;;  %v1241_v36 = vsel %vm1211_vm1, %v1201_v1, %v7076_v15 }
 0x1c1   : > { %1762 = vrot.lane.b32.xlu1 %v5614_v28, %s4510_s20  ;;  %v673_v42 = vpack.c.bf16 %v637_v51, %v637_v51  ;;  %v491_v32 = vld [vmem:[%s4545_s17 + $0xec] sm:$0xff]  ;;  %v526_v51 = vpack.c.bf16 %v490_v61, %v490_v61  ;;  %v567_v1 = vld [vmem:[%s4545_s17 + $0xfd] sm:$0xff] }
 0x1c2   : > { %2641 = vrot.lane.b32.xlu0 %v7071_v34, %s4508_s18  ;;  %v5660_v14 = vpop.permute.xlu2 %3254  ;;  %v3372_v40 = vunpack.c.l.b16 %v672_v55  ;;  %v7077_v19 = vld [vmem:[#allocation59_spill] sm:$0xff]  ;;  %v527_v57 = vpack.c.bf16 %v491_v32, %v491_v32 }
 0x1c3   : > { %v1366_v27 = vpop.f32.mrf.mxu0  ;;  %v1751_v62 = vpop.permute.xlu1 %1750  ;;  %v3373_v43 = vunpack.c.l.b16 %v673_v42  ;;  %v1278_v8 = vsel %vm1248_vm3, %v1241_v36, %v7077_v19 }
 0x1c4   : > { %v1367_v17 = vadd.f32 %v5336_v31, %v1366_v27  ;;  %v2630_v37 = vpop.permute.xlu0 %2629  ;;  %v1877_v16 = vsel %vm1248_vm3, %v1841_v50, %v1751_v62  ;;  %v1547_v31 = vpack.c.bf16 %v1511_v44, %v1511_v44  ;;  %v239_v62 = vpack.c.bf16 %v203_v9, %v203_v9  ;;  %v7078_v44 = vld [vmem:[#allocation37_spill] sm:$0xff] }
 0x1c5   : > { %v2837_v12 = vsel %vm1156_vm0, %v7074_v30, %v2630_v37  ;;  %v3396_v50 = vpack.c.b16 %v3373_v43, %v3372_v40  ;;  %v1713_v55 = vunpack.c.l.b16 %v527_v57  ;;  %v7081_v40 = vld [vmem:[#allocation78_spill] sm:$0xff] }
 0x1c6   : > { %vm1440_vm15 = vcmp.gt.f32.partialorder %v1367_v17, 0.0  ;;  %v1476_v60 = vmul.f32 0.2, %v1367_v17  ;;  %4380 = vmatmul.msk.bf16.gmra.mxu1 %vm1293_vm2, %v1877_v16  ;;  %v5696_v29 = vunpack.c.l.b16 %v1547_v31  ;;  %v1712_v16 = vunpack.c.l.b16 %v526_v51  ;;  %v7079_v31 = vld [vmem:[#allocation69_spill] sm:$0xff] }
 0x1c8   : > { %v1512_v0 = vsel %vm1440_vm15, %v1367_v17, %v1476_v60  ;;  %3300 = vrot.lane.b32.xlu2 %v5667_v13, %s4509_s19  ;;  %v238_v17 = vpack.c.bf16 %v202_v48, %v202_v48  ;;  %v638_v60 = vld [vmem:[%s4545_s17 + $0xf6] sm:$0xff]  ;;  %v5726_v9 = vpack.c.b16 %v1713_v55, %v1712_v16 }
 0x1c9   : > { %v1548_v49 = vpack.c.bf16 %v1512_v0, %v1512_v0  ;;  %3264 = vrot.lane.b32.xlu1 %v5669_v5, %s4508_s18  ;;  %v755_v0 = vunpack.c.l.b16 %v239_v62  ;;  %v674_v19 = vpack.c.bf16 %v638_v60, %v638_v60  ;;  %v7083_v16 = vld [vmem:[#allocation57_spill] sm:$0xff]  ;;  %v7084_v60 = vld [vmem:[#allocation20_spill] sm:$0xff] }
 0x1ca   : > { %2808 = vrot.lane.b32.xlu0 %v5468_v6, %s4510_s20  ;;  %v5688_v63 = vpop.permute.xlu2 %2633  ;;  %v2887_v6 = vsel %vm1211_vm1, %v2837_v12, %v5577_v45  ;;  %v754_v42 = vunpack.c.l.b16 %v238_v17  ;;  %v7082_v17 = vld [vmem:[#allocation50_spill] sm:$0xff] }
 0x1cb   : > { %v5686_v52 = vunpack.c.l.b16 %v1548_v49  ;;  %v3253_v10 = vpop.permute.xlu1 %3252  ;;  %v7080_v49 = vld [vmem:[#allocation7_spill] sm:$0xff]  ;;  %v537_v45 = vld [vmem:[%s4545_s17 + $0x13c] sm:$0xff] }
 0x1cc   : > { %v2797_v47 = vpop.permute.xlu0 %2796  ;;  %v3458_v37 = vsel %vm1156_vm0, %v4821_v58, %v3253_v10  ;;  %v1796_v30 = vsel %vm1156_vm0, %v7080_v49, %v7079_v31  ;;  %v639_v58 = vld [vmem:[%s4545_s17 + $0xfe] sm:$0xff]  ;;  %v602_v10 = vpack.c.bf16 %v566_v39, %v566_v39  ;;  %v7085_v31 = vld [vmem:[#allocation64_spill] sm:$0xff] }
 0x1cd   : > { %v2923_v27 = vsel %vm1248_vm3, %v2887_v6, %v2797_v47  ;;  %v1843_v43 = vsel %vm1211_vm1, %v1796_v30, %v7081_v40  ;;  %v3505_v15 = vsel %vm1211_vm1, %v3458_v37, %v5602_v41  ;;  %v603_v47 = vpack.c.bf16 %v567_v1, %v567_v1  ;;  %v204_v41 = vld [vmem:[%s4545_s17 + $0x100] sm:$0xff] }
 0x1ce   : > { %4365 = vmatmul.msk.bf16.gmra.mxu0 %vm1293_vm2, %v1278_v8  ;;  %4402 = vmatmul.msk.bf16.gmra.mxu2 %vm1293_vm2, %v2923_v27  ;;  %v1879_v36 = vsel %vm1248_vm3, %v1843_v43, %v5636_v54  ;;  %v675_v8 = vpack.c.bf16 %v639_v58, %v639_v58  ;;  %v775_v6 = vpack.c.b16 %v755_v0, %v754_v42  ;;  %v3374_v54 = vunpack.c.l.b16 %v674_v19  ;;  %v7086_v43 = vld [vmem:[#allocation41_spill] sm:$0xff] }
 0x1cf   : > { %v2762_v51 = vunpack.c.l.b16 %v602_v10  ;;  %v2763_v57 = vunpack.c.l.b16 %v603_v47  ;;  %v240_v0 = vpack.c.bf16 %v204_v41, %v204_v41  ;;  %v492_v19 = vld [vmem:[%s4545_s17 + $0xf4] sm:$0xff] }
 0x1d0   : > { %1764 = vrot.lane.b32.xlu2 %v5669_v5, %s4510_s20  ;;  %v3375_v27 = vunpack.c.l.b16 %v675_v8  ;;  %v1204_v62 = vsel %vm1156_vm0, %v775_v6, %v7082_v17  ;;  %v493_v8 = vld [vmem:[%s4545_s17 + $0xfc] sm:$0xff] }
 0x1d1   : > { %2643 = vrot.lane.b32.xlu1 %v7078_v44, %s4508_s18  ;;  %v1243_v55 = vsel %vm1211_vm1, %v1204_v62, %v7083_v16  ;;  %v5751_v40 = vpack.c.b16 %v2763_v57, %v2762_v51  ;;  %v528_v51 = vpack.c.bf16 %v492_v19, %v492_v19  ;;  %v529_v57 = vpack.c.bf16 %v493_v8, %v493_v8  ;;  %v207_v17 = vld [vmem:[%s4545_s17 + $0x118] sm:$0xff]  ;;  %v5773_v62 = vpop.f32.mrf.mxu1 }
 0x1d2   : > { %3426 = vrot.lane.b32.xlu0 %v3396_v50, %s4510_s20  ;;  %v5714_v12 = vpop.permute.xlu2 %2800  ;;  %v205_v50 = vld [vmem:[%s4545_s17 + $0x108] sm:$0xff]  ;;  %v1280_v49 = vsel %vm1248_vm3, %v1243_v55, %v7085_v31  ;;  %v3397_v1 = vpack.c.b16 %v3375_v27, %v3374_v54  ;;  %v7094_v8 = vld [vmem:[#allocation77_spill] sm:$0xff] }
 0x1d3   : > { %v2632_v61 = vpop.permute.xlu1 %2631  ;;  %v241_v58 = vpack.c.bf16 %v205_v50, %v205_v50  ;;  %v206_v50 = vld [vmem:[%s4545_s17 + $0x110] sm:$0xff] }
 0x1d4   : > { %v3415_v32 = vpop.permute.xlu0 %3414 }
 0x1d5   : > { %v3541_v48 = vsel %vm1248_vm3, %v3505_v15, %v3415_v32  ;;  %v569_v32 = vld [vmem:[%s4545_s17 + $0x10d] sm:$0xff]  ;;  %v756_v15 = vunpack.c.l.b16 %v240_v0 }
 0x1d6   : > { %4381 = vmatmul.msk.bf16.gmra.mxu1 %vm1293_vm2, %v1879_v36  ;;  %4429 = vmatmul.msk.bf16.gmra.mxu3 %vm1293_vm2, %v3541_v48  ;;  %v757_v36 = vunpack.c.l.b16 %v241_v58  ;;  %v3461_v48 = vsel %vm1156_vm0, %v7061_v33, %v5660_v14  ;;  %v605_v27 = vpack.c.bf16 %v569_v32, %v569_v32  ;;  %v7088_v0 = vld [vmem:[#allocation19_spill] sm:$0xff]  ;;  %v7091_v58 = vld [vmem:[#allocation68_spill] sm:$0xff] }
 0x1d7   : > { %v2843_v31 = vsel %vm1156_vm0, %v7088_v0, %v5688_v63  ;;  %v640_v32 = vld [vmem:[%s4545_s17 + $0x106] sm:$0xff] }
 0x1d8   : > { %3266 = vrot.lane.b32.xlu2 %v5726_v9, %s4508_s18  ;;  %v776_v33 = vpack.c.b16 %v757_v36, %v756_v15  ;;  %v2765_v55 = vunpack.c.l.b16 %v605_v27  ;;  %v641_v15 = vld [vmem:[%s4545_s17 + $0x10e] sm:$0xff]  ;;  %v242_v36 = vpack.c.bf16 %v206_v50, %v206_v50 }
 0x1d9   : > { %2810 = vrot.lane.b32.xlu1 %v5552_v11, %s4510_s20  ;;  %v2840_v11 = vsel %vm1156_vm0, %v7084_v60, %v2632_v61  ;;  %v568_v61 = vld [vmem:[%s4545_s17 + $0x105] sm:$0xff]  ;;  %v1714_v60 = vunpack.c.l.b16 %v528_v51  ;;  %v677_v50 = vpack.c.bf16 %v641_v15, %v641_v15 }
 0x1da   : > { %2684 = vrot.lane.b32.xlu0 %v5614_v28, %s4509_s19  ;;  %v5740_v37 = vpop.permute.xlu2 %3418  ;;  %v604_v41 = vpack.c.bf16 %v568_v61, %v568_v61  ;;  %v7093_v63 = vld [vmem:[#allocation63_spill] sm:$0xff] }
 0x1db   : > { %v2799_v42 = vpop.permute.xlu1 %2798 }
 0x1dc   : > { %v2673_v28 = vpop.permute.xlu0 %2672  ;;  %v2764_v16 = vunpack.c.l.b16 %v604_v41 }
 0x1dd   : > { %v2889_v30 = vsel %vm1211_vm1, %v2840_v11, %v2673_v28  ;;  %v1715_v11 = vunpack.c.l.b16 %v529_v57 }
 0x1de   : > { %4366 = vmatmul.msk.bf16.gmra.mxu0 %vm1293_vm2, %v1280_v49  ;;  %v2925_v39 = vsel %vm1248_vm3, %v2889_v30, %v2799_v42  ;;  %v7087_v42 = vld [vmem:[#allocation49_spill] sm:$0xff]  ;;  %v7089_v49 = vld [vmem:[#allocation36_spill] sm:$0xff]  ;;  %v5801_v51 = vpack.c.b16 %v2765_v55, %v2764_v16 }
 0x1df   : > { %4403 = vmatmul.msk.bf16.gmra.mxu2 %vm1293_vm2, %v2925_v39  ;;  %v1207_v28 = vsel %vm1156_vm0, %v776_v33, %v7087_v42  ;;  %v7090_v30 = vld [vmem:[#allocation56_spill] sm:$0xff]  ;;  %v7092_v39 = vld [vmem:[#allocation6_spill] sm:$0xff]  ;;  %v5803_v57 = vpack.c.b16 %v1715_v11, %v1714_v60  ;;  %v5818_v60 = vpop.f32.mrf.mxu1 }
 0x1e0   : > { %1640 = vrot.lane.b32.xlu2 %v7086_v43, %s4509_s19 }
 0x1e1   : > { %3428 = vrot.lane.b32.xlu1 %v3397_v1, %s4510_s20  ;;  %v1799_v1 = vsel %vm1156_vm0, %v7092_v39, %v7091_v58  ;;  %v7095_v39 = vld [vmem:[#allocation42_spill] sm:$0xff] }
 0x1e2   : > { %3302 = vrot.lane.b32.xlu0 %v5751_v40, %s4509_s19  ;;  %v5766_v10 = vpop.permute.xlu2 %2676 }
 0x1e3   : > { %v3417_v47 = vpop.permute.xlu1 %3416 }
 0x1e4   : > { %v3291_v6 = vpop.permute.xlu0 %3290 }
 0x1e5   : > { %v3507_v54 = vsel %vm1211_vm1, %v3461_v48, %v3291_v6  ;;  %v243_v48 = vpack.c.bf16 %v207_v17, %v207_v17  ;;  %v758_v17 = vunpack.c.l.b16 %v242_v36 }
 0x1e6   : > { %v3543_v14 = vsel %vm1248_vm3, %v3507_v54, %v3417_v47  ;;  %v1845_v47 = vsel %vm1211_vm1, %v1799_v1, %v7094_v8  ;;  %v642_v1 = vld [vmem:[%s4545_s17 + $0x116] sm:$0xff]  ;;  %v7099_v8 = vld [vmem:[#allocation62_spill] sm:$0xff] }
 0x1e7   : > { %4430 = vmatmul.msk.bf16.gmra.mxu3 %vm1293_vm2, %v3543_v14  ;;  %v676_v14 = vpack.c.bf16 %v640_v32, %v640_v32  ;;  %v759_v42 = vunpack.c.l.b16 %v243_v48  ;;  %v7096_v32 = vld [vmem:[#allocation43_spill] sm:$0xff]  ;;  %v643_v48 = vld [vmem:[%s4545_s17 + $0x11e] sm:$0xff] }
 0x1e8   : > { %2686 = vrot.lane.b32.xlu2 %v5669_v5, %s4509_s19  ;;  %v1245_v5 = vsel %vm1211_vm1, %v1207_v28, %v7090_v30 }
 0x1e9   : > { %1766 = vrot.lane.b32.xlu1 %v5726_v9, %s4510_s20  ;;  %v1282_v19 = vsel %vm1248_vm3, %v1245_v5, %v7093_v63  ;;  %v3376_v55 = vunpack.c.l.b16 %v676_v14  ;;  %v777_v30 = vpack.c.b16 %v759_v42, %v758_v17  ;;  %v570_v63 = vld [vmem:[%s4545_s17 + $0x115] sm:$0xff]  ;;  %v7102_v17 = vld [vmem:[#allocation74_spill] sm:$0xff] }
 0x1ea   : > { %2645 = vrot.lane.b32.xlu0 %v7089_v49, %s4508_s18  ;;  %v5791_v61 = vpop.permute.xlu2 %3294  ;;  %v7101_v14 = vld [vmem:[#allocation60_spill] sm:$0xff] }
 0x1eb   : > { %v2675_v6 = vpop.permute.xlu1 %2674  ;;  %v1210_v15 = vsel %vm1156_vm0, %v777_v30, %v7096_v32  ;;  %v679_v30 = vpack.c.bf16 %v643_v48, %v643_v48 }
 0x1ec   : > { %v1755_v41 = vpop.permute.xlu0 %1754  ;;  %v2891_v54 = vsel %vm1211_vm1, %v2843_v31, %v2675_v6 }
 0x1ed   : > { %v1881_v27 = vsel %vm1248_vm3, %v1845_v47, %v1755_v41  ;;  %v2927_v33 = vsel %vm1248_vm3, %v2891_v54, %v5714_v12  ;;  %v3377_v12 = vunpack.c.l.b16 %v677_v50  ;;  %v7100_v47 = vld [vmem:[#allocation5_spill] sm:$0xff] }
 0x1ee   : > { %4367 = vmatmul.msk.bf16.gmra.mxu0 %vm1293_vm2, %v1282_v19  ;;  %4382 = vmatmul.msk.bf16.gmra.mxu1 %vm1293_vm2, %v1881_v27  ;;  %v7098_v19 = vld [vmem:[#allocation53_spill] sm:$0xff]  ;;  %v1802_v6 = vsel %vm1156_vm0, %v7100_v47, %v7099_v8  ;;  %v494_v27 = vld [vmem:[%s4545_s17 + $0x104] sm:$0xff]  ;;  %v7103_v47 = vld [vmem:[#allocation24_spill] sm:$0xff] }
 0x1ef   : > { %4404 = vmatmul.msk.bf16.gmra.mxu2 %vm1293_vm2, %v2927_v33  ;;  %v571_v54 = vld [vmem:[%s4545_s17 + $0x11d] sm:$0xff]  ;;  %v495_v33 = vld [vmem:[%s4545_s17 + $0x10c] sm:$0xff]  ;;  %v1847_v42 = vsel %vm1211_vm1, %v1802_v6, %v7102_v17 }
 0x1f0   : > { %3304 = vrot.lane.b32.xlu2 %v5801_v51, %s4509_s19  ;;  %v531_v32 = vpack.c.bf16 %v495_v33, %v495_v33 }
 0x1f1   : > { %3268 = vrot.lane.b32.xlu1 %v5803_v57, %s4508_s18 }
 0x1f2   : > { %2812 = vrot.lane.b32.xlu0 %v5609_v2, %s4510_s20  ;;  %v5816_v16 = vpop.f32.mrf.mxu3  ;;  %v5820_v11 = vpop.permute.xlu2 %1758  ;;  %v3398_v2 = vpack.c.b16 %v3377_v12, %v3376_v55  ;;  %v1717_v8 = vunpack.c.l.b16 %v531_v32 }
 0x1f3   : > { %v3293_v28 = vpop.permute.xlu1 %3292 }
 0x1f4   : > { %v3257_v0 = vpop.permute.xlu0 %3256 }
 0x1f5   : > { %v3464_v31 = vsel %vm1156_vm0, %v7064_v22, %v3257_v0  ;;  %v7097_v22 = vld [vmem:[#allocation40_spill] sm:$0xff] }
 0x1f6   : > { %v3509_v5 = vsel %vm1211_vm1, %v3464_v31, %v3293_v28  ;;  %v678_v31 = vpack.c.bf16 %v642_v1, %v642_v1 }
 0x1f7   : > { %v3545_v58 = vsel %vm1248_vm3, %v3509_v5, %v5740_v37  ;;  %v1247_v37 = vsel %vm1211_vm1, %v1210_v15, %v7098_v19  ;;  %v606_v5 = vpack.c.bf16 %v570_v63, %v570_v63  ;;  %v3379_v19 = vunpack.c.l.b16 %v679_v30 }
 0x1f8   : > { %4431 = vmatmul.msk.bf16.gmra.mxu3 %vm1293_vm2, %v3545_v58  ;;  %2647 = vrot.lane.b32.xlu2 %v7095_v39, %s4508_s18  ;;  %v1284_v50 = vsel %vm1248_vm3, %v1247_v37, %v7101_v14  ;;  %v530_v58 = vpack.c.bf16 %v494_v27, %v494_v27  ;;  %v3378_v15 = vunpack.c.l.b16 %v678_v31  ;;  %v7105_v31 = vld [vmem:[#allocation10_spill] sm:$0xff] }
 0x1f9   : > { %1642 = vrot.lane.b32.xlu1 %v7097_v22, %s4509_s19  ;;  %v2766_v48 = vunpack.c.l.b16 %v606_v5 }
 0x1fa   : > { %3430 = vrot.lane.b32.xlu0 %v3398_v2, %s4510_s20  ;;  %v5836_v36 = vpop.f32.mrf.mxu3  ;;  %v5845_v41 = vpop.f32.mrf.mxu1  ;;  %v607_v2 = vpack.c.bf16 %v571_v54, %v571_v54  ;;  %v1716_v37 = vunpack.c.l.b16 %v530_v58  ;;  %v3399_v33 = vpack.c.b16 %v3379_v19, %v3378_v15 }
 0x1fb   : > { %v5854_v55 = vpop.permute.xlu2 %3260  ;;  %v1757_v12 = vpop.permute.xlu1 %1756 }
 0x1fc   : > { %v2636_v28 = vpop.permute.xlu0 %2635  ;;  %v1883_v0 = vsel %vm1248_vm3, %v1847_v42, %v1757_v12  ;;  %v2767_v63 = vunpack.c.l.b16 %v607_v2  ;;  %v5877_v17 = vpack.c.b16 %v1717_v8, %v1716_v37  ;;  %v7106_v2 = vld [vmem:[#allocation81_spill] sm:$0xff] }
 0x1fd   : > { %v2846_v6 = vsel %vm1156_vm0, %v7103_v47, %v2636_v28  ;;  %v496_v28 = vld [vmem:[%s4545_s17 + $0x114] sm:$0xff] }
 0x1fe   : > { %4368 = vmatmul.msk.bf16.gmra.mxu0 %vm1293_vm2, %v1284_v50  ;;  %4383 = vmatmul.msk.bf16.gmra.mxu1 %vm1293_vm2, %v1883_v0  ;;  %v2893_v14 = vsel %vm1211_vm1, %v2846_v6, %v5766_v10  ;;  %v5875_v50 = vpack.c.b16 %v2767_v63, %v2766_v48  ;;  %v497_v10 = vld [vmem:[%s4545_s17 + $0x11c] sm:$0xff]  ;;  %v7104_v0 = vld [vmem:[#allocation71_spill] sm:$0xff]  ;;  %v532_v37 = vpack.c.bf16 %v496_v28, %v496_v28 }
 0x1ff   : > { %v1805_v30 = vsel %vm1156_vm0, %v7105_v31, %v7104_v0  ;;  %v533_v8 = vpack.c.bf16 %v497_v10, %v497_v10 }
 0x200   : > { %2814 = vrot.lane.b32.xlu2 %v5667_v13, %s4510_s20  ;;  %v1849_v58 = vsel %vm1211_vm1, %v1805_v30, %v7106_v2  ;;  %v1718_v6 = vunpack.c.l.b16 %v532_v37 }
 0x201   : > { %2688 = vrot.lane.b32.xlu1 %v5726_v9, %s4509_s19  ;;  %v1885_v63 = vsel %vm1248_vm3, %v1849_v58, %v5820_v11  ;;  %v7107_v11 = vld [vmem:[#allocation46_spill] sm:$0xff] }
 0x202   : > { %1768 = vrot.lane.b32.xlu0 %v5803_v57, %s4510_s20  ;;  %v5865_v1 = vpop.f32.mrf.mxu3  ;;  %v5869_v13 = vpop.f32.mrf.mxu1 }
 0x203   : > { %v5871_v54 = vpop.permute.xlu2 %2639  ;;  %v3259_v27 = vpop.permute.xlu1 %3258 }
 0x204   : > { %v2803_v9 = vpop.permute.xlu0 %2802  ;;  %v3467_v5 = vsel %vm1156_vm0, %v7071_v34, %v3259_v27  ;;  %v1719_v27 = vunpack.c.l.b16 %v533_v8 }
 0x205   : > { %v2929_v42 = vsel %vm1248_vm3, %v2893_v14, %v2803_v9  ;;  %v3511_v34 = vsel %vm1211_vm1, %v3467_v5, %v5791_v61  ;;  %v645_v14 = vld [vmem:[%s4545_s17 + $0x12e] sm:$0xff]  ;;  %v572_v61 = vld [vmem:[%s4545_s17 + $0x125] sm:$0xff] }
 0x206   : > { %4405 = vmatmul.msk.bf16.gmra.mxu2 %vm1293_vm2, %v2929_v42  ;;  %v573_v42 = vld [vmem:[%s4545_s17 + $0x12d] sm:$0xff]  ;;  %v5922_v31 = vpack.c.b16 %v1719_v27, %v1718_v6  ;;  %v681_v58 = vpack.c.bf16 %v645_v14, %v645_v14 }
 0x207   : > { %v7109_v5 = vld [vmem:[#allocation23_spill] sm:$0xff] }
 0x208   : > { %3432 = vrot.lane.b32.xlu2 %v3399_v33, %s4510_s20  ;;  %v644_v33 = vld [vmem:[%s4545_s17 + $0x126] sm:$0xff]  ;;  %v3381_v27 = vunpack.c.l.b16 %v681_v58 }
 0x209   : > { %3306 = vrot.lane.b32.xlu1 %v5875_v50, %s4509_s19  ;;  %v680_v30 = vpack.c.bf16 %v644_v33, %v644_v33  ;;  %v7114_v58 = vld [vmem:[#allocation22_spill] sm:$0xff] }
 0x20a   : > { %3270 = vrot.lane.b32.xlu0 %v5877_v17, %s4508_s18  ;;  %v5886_v12 = vpop.f32.mrf.mxu3  ;;  %v5899_v19 = vpop.f32.mrf.mxu1 }
 0x20b   : > { %v5897_v32 = vpop.permute.xlu2 %2806  ;;  %v2638_v15 = vpop.permute.xlu1 %2637  ;;  %v3380_v6 = vunpack.c.l.b16 %v680_v30 }
 0x20c   : > { %v3421_v48 = vpop.permute.xlu0 %3420  ;;  %v2849_v2 = vsel %vm1156_vm0, %v7109_v5, %v2638_v15 }
 0x20d   : > { %v3547_v47 = vsel %vm1248_vm3, %v3511_v34, %v3421_v48  ;;  %v608_v48 = vpack.c.bf16 %v572_v61, %v572_v61  ;;  %v3470_v61 = vsel %vm1156_vm0, %v7078_v44, %v5854_v55  ;;  %v7113_v55 = vld [vmem:[#allocation45_spill] sm:$0xff] }
 0x20e   : > { %4384 = vmatmul.msk.bf16.gmra.mxu1 %vm1293_vm2, %v1885_v63  ;;  %4432 = vmatmul.msk.bf16.gmra.mxu3 %vm1293_vm2, %v3547_v47  ;;  %v609_v63 = vpack.c.bf16 %v573_v42, %v573_v42 }
 0x20f   : > { %v2768_v33 = vunpack.c.l.b16 %v608_v48  ;;  %v2852_v48 = vsel %vm1156_vm0, %v7114_v58, %v5871_v54 }
 0x210   : > { %1770 = vrot.lane.b32.xlu2 %v5877_v17, %s4510_s20  ;;  %v2769_v14 = vunpack.c.l.b16 %v609_v63 }
 0x211   : > { %2649 = vrot.lane.b32.xlu1 %v7086_v43, %s4508_s18 }
 0x212   : > { %1644 = vrot.lane.b32.xlu0 %v7107_v11, %s4509_s19  ;;  %v5914_v9 = vpop.f32.mrf.mxu3  ;;  %v5926_v37 = vpop.f32.mrf.mxu1 }
 0x213   : > { %7108 = vst [vmem:[#allocation51_spill] sm:$0xff] %v5914_v9  ;;  %v5920_v28 = vpop.permute.xlu2 %3424  ;;  %v2805_v10 = vpop.permute.xlu1 %2804 }
 0x214   : > { %v2679_v0 = vpop.permute.xlu0 %2678 }
 0x215   : > { %v2895_v8 = vsel %vm1211_vm1, %v2849_v2, %v2679_v0  ;;  %v3400_v0 = vpack.c.b16 %v3381_v27, %v3380_v6  ;;  %v498_v6 = vld [vmem:[%s4545_s17 + $0x124] sm:$0xff]  ;;  %v499_v27 = vld [vmem:[%s4545_s17 + $0x12c] sm:$0xff] }
 0x216   : > { %v2931_v34 = vsel %vm1248_vm3, %v2895_v8, %v2805_v10  ;;  %v574_v8 = vld [vmem:[%s4545_s17 + $0x135] sm:$0xff]  ;;  %v534_v24 = vpack.c.bf16 %v498_v6, %v498_v6  ;;  %v535_v21 = vpack.c.bf16 %v499_v27, %v499_v27 }
 0x217   : > { %4406 = vmatmul.msk.bf16.gmra.mxu2 %vm1293_vm2, %v2931_v34  ;;  %v575_v34 = vld [vmem:[%s4545_s17 + $0x13d] sm:$0xff]  ;;  %v610_v58 = vpack.c.bf16 %v574_v8, %v574_v8 }
 0x218   : > { %3272 = vrot.lane.b32.xlu2 %v5922_v31, %s4508_s18  ;;  %v611_v7 = vpack.c.bf16 %v575_v34, %v575_v34  ;;  %v1721_v34 = vunpack.c.l.b16 %v535_v21 }
 0x219   : > { %v5931_v47 = vpop.f32.mrf.mxu2  ;;  %2816 = vrot.lane.b32.xlu1 %v5751_v40, %s4510_s20 }
 0x21a   : > { %7110 = vst [vmem:[#allocation4_spill] sm:$0xff] %v5931_v47  ;;  %2690 = vrot.lane.b32.xlu0 %v5803_v57, %s4509_s19  ;;  %v5939_v15 = vpop.f32.mrf.mxu3  ;;  %v5946_v57 = vpack.c.b16 %v2769_v14, %v2768_v33  ;;  %v5950_v2 = vpop.f32.mrf.mxu1  ;;  %v7115_v33 = vld [vmem:[#allocation70_spill] sm:$0xff]  ;;  %v7116_v14 = vld [vmem:[#allocation9_spill] sm:$0xff]  ;;  %v539_v47 = vpack.c.bf16 %v537_v45, %v537_v45 }
 0x21b   : > { %7111 = vst [vmem:[#allocation35_spill] sm:$0xff] %v5939_v15  ;;  %v5944_v42 = vpop.permute.xlu2 %2682  ;;  %v3423_v10 = vpop.permute.xlu1 %3422 }
 0x21c   : > { %v3297_v40 = vpop.permute.xlu0 %3296 }
 0x21d   : > { %v3513_v30 = vsel %vm1211_vm1, %v3470_v61, %v3297_v40  ;;  %v1808_v61 = vsel %vm1156_vm0, %v7116_v14, %v7115_v33  ;;  %v2771_v14 = vunpack.c.l.b16 %v611_v7 }
 0x21e   : > { %v3549_v5 = vsel %vm1248_vm3, %v3513_v30, %v3423_v10  ;;  %v7117_v30 = vld [vmem:[#allocation80_spill] sm:$0xff] }
 0x21f   : > { %4433 = vmatmul.msk.bf16.gmra.mxu3 %vm1293_vm2, %v3549_v5  ;;  %v1851_v54 = vsel %vm1211_vm1, %v1808_v61, %v7117_v30 }
 0x220   : > { %1646 = vrot.lane.b32.xlu2 %v7113_v55, %s4509_s19 }
 0x221   : > { %v5953_v44 = vpop.f32.mrf.mxu2  ;;  %3434 = vrot.lane.b32.xlu1 %v3400_v0, %s4510_s20 }
 0x222   : > { %7112 = vst [vmem:[#allocation58_spill] sm:$0xff] %v5953_v44  ;;  %3308 = vrot.lane.b32.xlu0 %v5946_v57, %s4509_s19  ;;  %v5963_v63 = vpop.f32.mrf.mxu3  ;;  %v5990_v6 = vpop.f32.mrf.mxu1 }
 0x223   : > { %v5972_v10 = vpop.permute.xlu2 %3300  ;;  %v2681_v40 = vpop.permute.xlu1 %2680 }
 0x224   : > { %v2897_v0 = vsel %vm1211_vm1, %v2852_v48, %v2681_v40  ;;  %v1761_v5 = vpop.permute.xlu0 %1760  ;;  %v2770_v48 = vunpack.c.l.b16 %v610_v58  ;;  %v647_v40 = vld [vmem:[%s4545_s17 + $0x13e] sm:$0xff] }
 0x225   : > { %v1887_v38 = vsel %vm1248_vm3, %v1851_v54, %v1761_v5  ;;  %v2933_v33 = vsel %vm1248_vm3, %v2897_v0, %v5897_v32  ;;  %v683_v5 = vpack.c.bf16 %v647_v40, %v647_v40  ;;  %v7122_v40 = vld [vmem:[#allocation8_spill] sm:$0xff] }
 0x226   : > { %4385 = vmatmul.msk.bf16.gmra.mxu1 %vm1293_vm2, %v1887_v38  ;;  %v1720_v38 = vunpack.c.l.b16 %v534_v24  ;;  %v5998_v30 = vpack.c.b16 %v2771_v14, %v2770_v48 }
 0x227   : > { %4407 = vmatmul.msk.bf16.gmra.mxu2 %vm1293_vm2, %v2933_v33  ;;  %v3383_v14 = vunpack.c.l.b16 %v683_v5 }
 0x228   : > { %2692 = vrot.lane.b32.xlu2 %v5877_v17, %s4509_s19  ;;  %v646_v17 = vld [vmem:[%s4545_s17 + $0x136] sm:$0xff]  ;;  %v6002_v0 = vpack.c.b16 %v1721_v34, %v1720_v38 }
 0x229   : > { %1772 = vrot.lane.b32.xlu1 %v5922_v31, %s4510_s20  ;;  %v682_v21 = vpack.c.bf16 %v646_v17, %v646_v17  ;;  %v7121_v17 = vld [vmem:[#allocation65_spill] sm:$0xff] }
 0x22a   : > { %2651 = vrot.lane.b32.xlu0 %v7097_v22, %s4508_s18  ;;  %v5988_v8 = vpop.f32.mrf.mxu3  ;;  %v5992_v32 = vpop.f32.mrf.mxu2 }
 0x22b   : > { %7118 = vst [vmem:[#allocation18_spill] sm:$0xff] %v5992_v32  ;;  %v5994_v27 = vpop.permute.xlu2 %1764  ;;  %v3299_v61 = vpop.permute.xlu1 %3298  ;;  %v3382_v48 = vunpack.c.l.b16 %v682_v21  ;;  %v7123_v21 = vld [vmem:[#allocation44_spill] sm:$0xff] }
 0x22c   : > { %v3263_v7 = vpop.permute.xlu0 %3262 }
 0x22d   : > { %v3473_v54 = vsel %vm1156_vm0, %v7089_v49, %v3263_v7  ;;  %v1811_v7 = vsel %vm1156_vm0, %v7122_v40, %v7121_v17 }
 0x22e   : > { %v3515_v24 = vsel %vm1211_vm1, %v3473_v54, %v3299_v61  ;;  %v3401_v54 = vpack.c.b16 %v3383_v14, %v3382_v48  ;;  %v7124_v14 = vld [vmem:[#allocation27_spill] sm:$0xff] }
 0x22f   : > { %v3551_v58 = vsel %vm1248_vm3, %v3515_v24, %v5920_v28 }
 0x230   : > { %4434 = vmatmul.msk.bf16.gmra.mxu3 %vm1293_vm2, %v3551_v58  ;;  %3310 = vrot.lane.b32.xlu2 %v5998_v30, %s4509_s19 }
 0x231   : > { %3274 = vrot.lane.b32.xlu1 %v6002_v0, %s4508_s18 }
 0x232   : > { %2818 = vrot.lane.b32.xlu0 %v5801_v51, %s4510_s20  ;;  %v6014_v49 = vpop.f32.mrf.mxu3  ;;  %v6020_v34 = vpop.f32.mrf.mxu2  ;;  %v1853_v51 = vsel %vm1211_vm1, %v1811_v7, %v5381_v25  ;;  %v6047_v7 = vld [vmem:[%s6917_s2] ss:$0 sm:$0xff] }
 0x233   : > { %7119 = vst [vmem:[#allocation34_spill] sm:$0xff] %v6014_v49  ;;  %v6016_v33 = vpop.f32.mrf.mxu1  ;;  %v6018_v38 = vpop.permute.xlu2 %3266  ;;  %v1962_v4 = vadd.f32 %v6047_v7, %v5845_v41 }
 0x234   : > { %v1763_v28 = vpop.permute.xlu1 %1762  ;;  %7120 = vst [vmem:[#allocation48_spill] sm:$0xff] %v6020_v34  ;;  %v2642_v61 = vpop.permute.xlu0 %2641 }
 0x235   : > { %v1889_v24 = vsel %vm1248_vm3, %v1853_v51, %v1763_v28  ;;  %v2855_v25 = vsel %vm1156_vm0, %v7124_v14, %v2642_v61  ;;  %v1959_v51 = vadd.f32 %v6047_v7, %v5818_v60  ;;  %v1964_v14 = vadd.f32 %v6047_v7, %v5869_v13  ;;  %v536_v60 = vld [vmem:[%s4545_s17 + $0x134] sm:$0xff] }
 0x236   : > { %4386 = vmatmul.msk.bf16.gmra.mxu1 %vm1293_vm2, %v1889_v24  ;;  %v2899_v61 = vsel %vm1211_vm1, %v2855_v25, %v5944_v42  ;;  %v538_v44 = vpack.c.bf16 %v536_v60, %v536_v60  ;;  %vm2048_vm7 = vcmp.gt.f32.partialorder %v1962_v4, 0.0 }
 0x237   : > { %v2083_v25 = vmul.f32 0.2, %v1959_v51  ;;  %vm2047_vm5 = vcmp.gt.f32.partialorder %v1959_v51, 0.0  ;;  %v2085_v32 = vmul.f32 0.2, %v1964_v14  ;;  %vm2049_vm6 = vcmp.gt.f32.partialorder %v1964_v14, 0.0 }
 0x238   : > { %2653 = vrot.lane.b32.xlu2 %v7107_v11, %s4508_s18 }
 0x239   : > { %1648 = vrot.lane.b32.xlu1 %v7123_v21, %s4509_s19  ;;  %v2119_v41 = vsel %vm2047_vm5, %v1959_v51, %v2083_v25  ;;  %v2662_v51 = vunpack.c.l.b16 %v539_v47  ;;  %v1974_v47 = vadd.f32 %v6047_v7, %v5990_v6 }
 0x23a   : > { %3436 = vrot.lane.b32.xlu0 %v3401_v54, %s4510_s20  ;;  %v6040_v28 = vpop.f32.mrf.mxu3  ;;  %v6042_v40 = vpop.f32.mrf.mxu2  ;;  %v1957_v54 = vadd.f32 %v6047_v7, %v5773_v62  ;;  %v2155_v60 = vpack.c.bf16 %v2119_v41, %v2119_v41 }
 0x23b   : > { %v6034_v5 = vpop.f32.mrf.mxu1  ;;  %v6036_v58 = vpop.permute.xlu2 %1640  ;;  %7125 = vst [vmem:[#allocation55_spill] sm:$0xff] %v6040_v28  ;;  %v2084_v28 = vmul.f32 0.2, %v1962_v4  ;;  %vm2053_vm11 = vcmp.gt.f32.partialorder %v1974_v47, 0.0 }
 0x23c   : > { %v3265_v48 = vpop.permute.xlu1 %3264  ;;  %v2809_v17 = vpop.permute.xlu0 %2808  ;;  %7126 = vst [vmem:[#allocation17_spill] sm:$0xff] %v6042_v40  ;;  %v2082_v42 = vmul.f32 0.2, %v1957_v54  ;;  %vm2046_vm4 = vcmp.gt.f32.partialorder %v1957_v54, 0.0 }
 0x23d   : > { %v2935_v24 = vsel %vm1248_vm3, %v2899_v61, %v2809_v17  ;;  %v1969_v17 = vadd.f32 %v6047_v7, %v5926_v37  ;;  %v7127_v61 = vld [vmem:[#allocation73_spill] sm:$0xff]  ;;  %v1967_v37 = vadd.f32 %v6047_v7, %v5899_v19 }
 0x23e   : > { %4408 = vmatmul.msk.bf16.gmra.mxu2 %vm1293_vm2, %v2935_v24  ;;  %v7128_v24 = vld [vmem:[#allocation13_spill] sm:$0xff] }
 0x23f   : > { %v2087_v9 = vmul.f32 0.2, %v1969_v17  ;;  %vm2051_vm8 = vcmp.gt.f32.partialorder %v1969_v17, 0.0  ;;  %vm2050_vm9 = vcmp.gt.f32.partialorder %v1967_v37, 0.0 }
 0x240   : > { %2820 = vrot.lane.b32.xlu2 %v5875_v50, %s4510_s20  ;;  %v3476_v50 = vsel %vm1156_vm0, %v7095_v39, %v3265_v48  ;;  %v7129_v39 = vld [vmem:[#allocation79_spill] sm:$0xff] }
 0x241   : > { %2694 = vrot.lane.b32.xlu1 %v5922_v31, %s4509_s19  ;;  %v1814_v31 = vsel %vm1156_vm0, %v7128_v24, %v7127_v61  ;;  %v3517_v61 = vsel %vm1211_vm1, %v3476_v50, %v5972_v10  ;;  %v6086_v24 = vsel %vm2046_vm4, %v1957_v54, %v2082_v42  ;;  %v2121_v10 = vsel %vm2049_vm6, %v1964_v14, %v2085_v32 }
 0x242   : > { %1774 = vrot.lane.b32.xlu0 %v6002_v0, %s4510_s20  ;;  %v1855_v48 = vsel %vm1211_vm1, %v1814_v31, %v7129_v39  ;;  %v6091_v19 = vpop.f32.mrf.mxu2  ;;  %v2086_v54 = vmul.f32 0.2, %v1967_v37  ;;  %v2120_v42 = vsel %vm2048_vm7, %v1962_v4, %v2084_v28  ;;  %v1977_v4 = vadd.f32 %v6047_v7, %v6016_v33 }
 0x243   : > { %v1981_v62 = vpop.f32.mrf.mxu1  ;;  %v6071_v13 = vpop.permute.xlu2 %2686  ;;  %v1891_v45 = vsel %vm1248_vm3, %v1855_v48, %v5994_v27  ;;  %7130 = vst [vmem:[#allocation2_spill] sm:$0xff] %v6091_v19  ;;  %v7131_v48 = vld [vmem:[#allocation26_spill] sm:$0xff]  ;;  %v2156_v6 = vpack.c.bf16 %v2120_v42, %v2120_v42 }
 0x244   : > { %v2644_v40 = vpop.permute.xlu1 %2643  ;;  %v3427_v34 = vpop.permute.xlu0 %3426  ;;  %v2122_v31 = vsel %vm2050_vm9, %v1967_v37, %v2086_v54  ;;  %v1982_v39 = vadd.f32 %v6047_v7, %v1981_v62  ;;  %v2089_v62 = vmul.f32 0.2, %v1974_v47  ;;  %vm2054_vm14 = vcmp.gt.f32.partialorder %v1977_v4, 0.0 }
 0x245   : > { %v6082_v15 = vpop.f32.mrf.mxu3  ;;  %v3553_v49 = vsel %vm1248_vm3, %v3517_v61, %v3427_v34  ;;  %v2661_v34 = vunpack.c.l.b16 %v538_v44  ;;  %v1979_v44 = vadd.f32 %v6047_v7, %v6034_v5  ;;  %v2317_v61 = vunpack.c.l.b16 %v2155_v60 }
 0x246   : > { %4435 = vmatmul.msk.bf16.gmra.mxu3 %vm1293_vm2, %v3553_v49  ;;  %4387 = vmatmul.msk.bf16.gmra.mxu1 %vm1293_vm2, %v1891_v45  ;;  %v2154_v49 = vpack.c.bf16 %v6086_v24, %v6086_v24  ;;  %v1972_v5 = vadd.f32 %v6047_v7, %v5950_v2  ;;  %v2158_v45 = vpack.c.bf16 %v2122_v31, %v2122_v31  ;;  %vm2056_vm13 = vcmp.gt.f32.partialorder %v1982_v39, 0.0 }
 0x247   : > { %vm2055_vm12 = vcmp.gt.f32.partialorder %v1979_v44, 0.0  ;;  %v3479_v60 = vsel %vm1156_vm0, %v7086_v43, %v6018_v38 }
 0x248   : > { %2822 = vrot.lane.b32.xlu2 %v5946_v57, %s4510_s20  ;;  %v2123_v57 = vsel %vm2051_vm8, %v1969_v17, %v2087_v9  ;;  %v2858_v9 = vsel %vm1156_vm0, %v7131_v48, %v2644_v40  ;;  %v2663_v17 = vpack.c.b16 %v2662_v51, %v2661_v34  ;;  %v2092_v34 = vmul.f32 0.2, %v1982_v39 }
 0x249   : > { %2696 = vrot.lane.b32.xlu1 %v6002_v0, %s4509_s19  ;;  %v2157_v0 = vpack.c.bf16 %v2121_v10, %v2121_v10  ;;  %v2159_v24 = vpack.c.bf16 %v2123_v57, %v2123_v57  ;;  %v2091_v10 = vmul.f32 0.2, %v1979_v44  ;;  %v2090_v51 = vmul.f32 0.2, %v1977_v4 }
 0x24a   : > { %2655 = vrot.lane.b32.xlu0 %v7113_v55, %s4508_s18  ;;  %v2088_v57 = vmul.f32 0.2, %v1972_v5  ;;  %vm2052_vm15 = vcmp.gt.f32.partialorder %v1972_v5, 0.0  ;;  %v2316_v38 = vunpack.c.l.b16 %v2154_v49 }
 0x24b   : > { %v1983_v27 = vpop.f32.mrf.mxu1  ;;  %v6105_v14 = vpop.permute.xlu2 %3304  ;;  %v2319_v33 = vunpack.c.l.b16 %v2157_v0  ;;  %v2321_v2 = vunpack.c.l.b16 %v2159_v24  ;;  %v2127_v31 = vsel %vm2055_vm12, %v1979_v44, %v2091_v10 }
 0x24c   : > { %v1984_v32 = vadd.f32 %v6047_v7, %v1983_v27  ;;  %v2811_v25 = vpop.permute.xlu1 %2810  ;;  %v2685_v50 = vpop.permute.xlu0 %2684  ;;  %v2352_v49 = vpack.c.b16 %v2317_v61, %v2316_v38 }
 0x24d   : > { %v2901_v28 = vsel %vm1211_vm1, %v2858_v9, %v2685_v50  ;;  %v6121_v40 = vpop.f32.mrf.mxu3  ;;  %v2125_v50 = vsel %vm2053_vm11, %v1974_v47, %v2089_v62  ;;  %v2128_v9 = vsel %vm2056_vm13, %v1982_v39, %v2092_v34  ;;  %v7133_v34 = vld [vmem:[#allocation72_spill] sm:$0xff] }
 0x24e   : > { %v2093_v41 = vmul.f32 0.2, %v1984_v32  ;;  %v2937_v37 = vsel %vm1248_vm3, %v2901_v28, %v2811_v25  ;;  %vm2057_vm10 = vcmp.gt.f32.partialorder %v1984_v32, 0.0  ;;  %v2320_v25 = vunpack.c.l.b16 %v2158_v45 }
 0x24f   : > { %4409 = vmatmul.msk.bf16.gmra.mxu2 %vm1293_vm2, %v2937_v37  ;;  %v2126_v28 = vsel %vm2054_vm14, %v1977_v4, %v2090_v51  ;;  %v2161_v19 = vpack.c.bf16 %v2125_v50, %v2125_v50  ;;  %v2163_v45 = vpack.c.bf16 %v2127_v31, %v2127_v31  ;;  %v2164_v47 = vpack.c.bf16 %v2128_v9, %v2128_v9 }
 0x250   : > { %2824 = vrot.lane.b32.xlu2 %v5998_v30, %s4510_s20  ;;  %v2318_v30 = vunpack.c.l.b16 %v2156_v6  ;;  %v2129_v42 = vsel %vm2057_vm10, %v1984_v32, %v2093_v41  ;;  %v2354_v32 = vpack.c.b16 %v2321_v2, %v2320_v25  ;;  %v2124_v41 = vsel %vm2052_vm15, %v1972_v5, %v2088_v57  ;;  %v7134_v2 = vld [vmem:[#allocation12_spill] sm:$0xff] }
 0x251   : > { %v6123_v54 = vpop.f32.mrf.mxu2  ;;  %2698 = vrot.lane.b32.xlu1 %v2663_v17, %s4509_s19  ;;  %v2165_v6 = vpack.c.bf16 %v2129_v42, %v2129_v42  ;;  %v2162_v39 = vpack.c.bf16 %v2126_v28, %v2126_v28  ;;  %v2160_v10 = vpack.c.bf16 %v2124_v41, %v2124_v41  ;;  %v1817_v51 = vsel %vm1156_vm0, %v7134_v2, %v7133_v34 }
 0x252   : > { %7132 = vst [vmem:[#allocation47_spill] sm:$0xff] %v6123_v54  ;;  %2657 = vrot.lane.b32.xlu0 %v7123_v21, %s4508_s18  ;;  %v2353_v24 = vpack.c.b16 %v2319_v33, %v2318_v30  ;;  %v1857_v57 = vsel %vm1211_vm1, %v1817_v51, %v6036_v58  ;;  %v2326_v42 = vunpack.c.l.b16 %v2164_v47 }
 0x253   : > { %v1986_v27 = vpop.f32.mrf.mxu1  ;;  %v6135_v0 = vpop.permute.xlu2 %2647  ;;  %v2327_v5 = vunpack.c.l.b16 %v2165_v6  ;;  %v2322_v9 = vunpack.c.l.b16 %v2160_v10 }
 0x254   : > { %v3429_v48 = vpop.permute.xlu1 %3428  ;;  %v3303_v43 = vpop.permute.xlu0 %3302  ;;  %v1987_v54 = vadd.f32 %v6047_v7, %v1986_v27  ;;  %v2325_v27 = vunpack.c.l.b16 %v2163_v45 }
 0x255   : > { %v3519_v17 = vsel %vm1211_vm1, %v3479_v60, %v3303_v43  ;;  %v2323_v60 = vunpack.c.l.b16 %v2161_v19  ;;  %v2357_v19 = vpack.c.b16 %v2327_v5, %v2326_v42 }
 0x256   : > { %v3555_v37 = vsel %vm1248_vm3, %v3519_v17, %v3429_v48  ;;  %v2094_v30 = vmul.f32 0.2, %v1987_v54  ;;  %vm2058_vm4 = vcmp.gt.f32.partialorder %v1987_v54, 0.0  ;;  %v2324_v48 = vunpack.c.l.b16 %v2162_v39 }
 0x257   : > { %4436 = vmatmul.msk.bf16.gmra.mxu3 %vm1293_vm2, %v3555_v37  ;;  %v2355_v6 = vpack.c.b16 %v2323_v60, %v2322_v9 }
 0x258   : > { %2374 = vrot.lane.b32.xlu2 %v2354_v32, %s4509_s19  ;;  %v2130_v17 = vsel %vm2058_vm4, %v1987_v54, %v2094_v30  ;;  %v2356_v28 = vpack.c.b16 %v2325_v27, %v2324_v48 }
 0x259   : > { %v3648_v44 = vpop.f32.mrf.mxu3  ;;  %v6144_v62 = vpop.f32.mrf.mxu2  ;;  %2372 = vrot.lane.b32.xlu1 %v2353_v24, %s4509_s19  ;;  %v2166_v45 = vpack.c.bf16 %v2130_v17, %v2130_v17 }
 0x25a   : > { %v3649_v4 = vadd.f32 %v6047_v7, %v3648_v44  ;;  %2370 = vrot.lane.b32.xlu0 %v2352_v49, %s4509_s19  ;;  %v7135_v44 = vld [vmem:[#allocation25_spill] sm:$0xff] }
 0x25b   : > { %v1988_v33 = vpop.f32.mrf.mxu1  ;;  %v6152_v61 = vpop.permute.xlu2 %2814  ;;  %v2328_v60 = vunpack.c.l.b16 %v2166_v45  ;;  %v7137_v45 = vld [vmem:[#allocation30_spill] sm:$0xff] }
 0x25c   : > { %v1989_v25 = vadd.f32 %v6047_v7, %v1988_v33  ;;  %v1767_v50 = vpop.permute.xlu1 %1766  ;;  %v2646_v31 = vpop.permute.xlu0 %2645  ;;  %v3756_v43 = vmul.f32 0.2, %v3649_v4  ;;  %vm3720_vm5 = vcmp.gt.f32.partialorder %v3649_v4, 0.0 }
 0x25d   : > { %v1893_v38 = vsel %vm1248_vm3, %v1857_v57, %v1767_v50  ;;  %v2861_v49 = vsel %vm1156_vm0, %v7135_v44, %v2646_v31 }
 0x25e   : > { %4388 = vmatmul.msk.bf16.gmra.mxu1 %vm1293_vm2, %v1893_v38  ;;  %vm2059_vm6 = vcmp.gt.f32.partialorder %v1989_v25, 0.0  ;;  %v2095_v24 = vmul.f32 0.2, %v1989_v25  ;;  %v3792_v37 = vsel %vm3720_vm5, %v3649_v4, %v3756_v43  ;;  %v2903_v51 = vsel %vm1211_vm1, %v2861_v49, %v6071_v13 }
 0x25f   : > { %v3828_v5 = vpack.c.bf16 %v3792_v37, %v3792_v37 }
 0x260   : > { %2380 = vrot.lane.b32.xlu2 %v2357_v19, %s4509_s19  ;;  %v2131_v32 = vsel %vm2059_vm6, %v1989_v25, %v2095_v24 }
 0x261   : > { %v3650_v58 = vpop.f32.mrf.mxu3  ;;  %2378 = vrot.lane.b32.xlu1 %v2356_v28, %s4509_s19  ;;  %v2167_v47 = vpack.c.bf16 %v2131_v32, %v2131_v32  ;;  %v6173_v57 = vunpack.c.l.b16 %v3828_v5 }
 0x262   : > { %v3651_v41 = vadd.f32 %v6047_v7, %v3650_v58  ;;  %2376 = vrot.lane.b32.xlu0 %v2355_v6, %s4509_s19  ;;  %v6165_v39 = vpop.f32.mrf.mxu2 }
 0x263   : > { %v6167_v10 = vpop.permute.xlu2 %3432  ;;  %v2329_v4 = vunpack.c.l.b16 %v2167_v47  ;;  %v2864_v47 = vsel %vm1156_vm0, %v7137_v45, %v6135_v0 }
 0x264   : > { %vm3721_vm7 = vcmp.gt.f32.partialorder %v3651_v41, 0.0  ;;  %v3757_v54 = vmul.f32 0.2, %v3651_v41  ;;  %v3269_v33 = vpop.permute.xlu1 %3268  ;;  %v2813_v34 = vpop.permute.xlu0 %2812 }
 0x265   : > { %v2939_v30 = vsel %vm1248_vm3, %v2903_v51, %v2813_v34  ;;  %v2358_v25 = vpack.c.b16 %v2329_v4, %v2328_v60  ;;  %v3482_v31 = vsel %vm1156_vm0, %v7097_v22, %v3269_v33  ;;  %v7139_v51 = vld [vmem:[#allocation11_spill] sm:$0xff] }
 0x266   : > { %v3793_v2 = vsel %vm3721_vm7, %v3651_v41, %v3757_v54  ;;  %4410 = vmatmul.msk.bf16.gmra.mxu2 %vm1293_vm2, %v2939_v30  ;;  %v3521_v17 = vsel %vm1211_vm1, %v3482_v31, %v6105_v14 }
 0x267   : > { %v3829_v27 = vpack.c.bf16 %v3793_v2, %v3793_v2  ;;  %v7138_v2 = vld [vmem:[#allocation66_spill] sm:$0xff] }
 0x268   : > { %v1820_v60 = vsel %vm1156_vm0, %v7139_v51, %v7138_v2 }
 0x269   : > { %v6175_v42 = vunpack.c.l.b16 %v3829_v27 }
 0x26a   : > { %v3653_v50 = vpop.f32.mrf.mxu3  ;;  %2382 = vrot.lane.b32.xlu0 %v2358_v25, %s4509_s19  ;;  %v6187_v24 = vpop.f32.mrf.mxu2 }
 0x26b   : > { %v3654_v48 = vadd.f32 %v6047_v7, %v3653_v50  ;;  %v1991_v13 = vpop.f32.mrf.mxu1  ;;  %v6183_v38 = vpop.permute.xlu2 %1770  ;;  %7136 = vst [vmem:[#allocation54_spill] sm:$0xff] %v6187_v24 }
 0x26c   : > { %v1643_v9 = vpop.permute.xlu1 %1642  ;;  %v3431_v19 = vpop.permute.xlu0 %3430  ;;  %v1992_v58 = vadd.f32 %v6047_v7, %v1991_v13 }
 0x26d   : > { %v3758_v28 = vmul.f32 0.2, %v3654_v48  ;;  %v3557_v22 = vsel %vm1248_vm3, %v3521_v17, %v3431_v19  ;;  %vm3722_vm8 = vcmp.gt.f32.partialorder %v3654_v48, 0.0  ;;  %v1859_v25 = vsel %vm1211_vm1, %v1820_v60, %v1643_v9 }
 0x26e   : > { %4437 = vmatmul.msk.bf16.gmra.mxu3 %vm1293_vm2, %v3557_v22  ;;  %v2096_v14 = vmul.f32 0.2, %v1992_v58  ;;  %vm2060_vm9 = vcmp.gt.f32.partialorder %v1992_v58, 0.0 }
 0x26f   : > { %v3794_v37 = vsel %vm3722_vm8, %v3654_v48, %v3758_v28 }
 0x270   : > { %v3830_v33 = vpack.c.bf16 %v3794_v37, %v3794_v37  ;;  %v2132_v30 = vsel %vm2060_vm9, %v1992_v58, %v2096_v14 }
 0x271   : > { %v2168_v58 = vpack.c.bf16 %v2132_v30, %v2132_v30 }
 0x272   : > { %v3655_v6 = vpop.f32.mrf.mxu3  ;;  %v6204_v48 = vpop.f32.mrf.mxu2  ;;  %v6209_v28 = vunpack.c.l.b16 %v3830_v33 }
 0x273   : > { %v3656_v32 = vadd.f32 %v6047_v7, %v3655_v6  ;;  %v1993_v41 = vpop.f32.mrf.mxu1  ;;  %v6197_v49 = vpop.permute.xlu2 %3272  ;;  %7140 = vst [vmem:[#allocation38_spill] sm:$0xff] %v6204_v48 }
 0x274   : > { %v1994_v44 = vadd.f32 %v6047_v7, %v1993_v41  ;;  %v2689_v5 = vpop.permute.xlu1 %2688  ;;  %v1769_v4 = vpop.permute.xlu0 %1768 }
 0x275   : > { %vm3723_vm10 = vcmp.gt.f32.partialorder %v3656_v32, 0.0  ;;  %v3759_v54 = vmul.f32 0.2, %v3656_v32  ;;  %v2905_v0 = vsel %vm1211_vm1, %v2864_v47, %v2689_v5  ;;  %v1895_v19 = vsel %vm1248_vm3, %v1859_v25, %v1769_v4 }
 0x276   : > { %vm2061_vm11 = vcmp.gt.f32.partialorder %v1994_v44, 0.0  ;;  %v2097_v34 = vmul.f32 0.2, %v1994_v44  ;;  %v2941_v17 = vsel %vm1248_vm3, %v2905_v0, %v6152_v61  ;;  %4389 = vmatmul.msk.bf16.gmra.mxu1 %vm1293_vm2, %v1895_v19 }
 0x277   : > { %v3795_v27 = vsel %vm3723_vm10, %v3656_v32, %v3759_v54  ;;  %4411 = vmatmul.msk.bf16.gmra.mxu2 %vm1293_vm2, %v2941_v17 }
 0x278   : > { %v3831_v50 = vpack.c.bf16 %v3795_v27, %v3795_v27  ;;  %v2133_v31 = vsel %vm2061_vm11, %v1994_v44, %v2097_v34  ;;  %v2330_v44 = vunpack.c.l.b16 %v2168_v58 }
 0x279   : > { %v2169_v13 = vpack.c.bf16 %v2133_v31, %v2133_v31 }
 0x27a   : > { %v6211_v22 = vunpack.c.l.b16 %v3831_v50  ;;  %v6226_v51 = vpop.f32.mrf.mxu2 }
 0x27b   : > { %v1996_v9 = vpop.f32.mrf.mxu1  ;;  %v3658_v37 = vpop.f32.mrf.mxu3  ;;  %v2331_v45 = vunpack.c.l.b16 %v2169_v13  ;;  %7141 = vst [vmem:[#allocation61_spill] sm:$0xff] %v6226_v51  ;;  %v7142_v13 = vld [vmem:[#allocation76_spill] sm:$0xff] }
 0x27c   : > { %v1997_v6 = vadd.f32 %v6047_v7, %v1996_v9  ;;  %v6216_v32 = vpop.permute.xlu2 %1646  ;;  %v3307_v61 = vpop.permute.xlu1 %3306  ;;  %v3659_v14 = vadd.f32 %v6047_v7, %v3658_v37 }
 0x27d   : > { %v3271_v47 = vpop.permute.xlu0 %3270  ;;  %v2359_v33 = vpack.c.b16 %v2331_v45, %v2330_v44 }
 0x27e   : > { %v3485_v54 = vsel %vm1156_vm0, %v7107_v11, %v3271_v47  ;;  %v2098_v5 = vmul.f32 0.2, %v1997_v6  ;;  %vm2062_vm12 = vcmp.gt.f32.partialorder %v1997_v6, 0.0  ;;  %v3760_v34 = vmul.f32 0.2, %v3659_v14 }
 0x27f   : > { %v3523_v4 = vsel %vm1211_vm1, %v3485_v54, %v3307_v61  ;;  %vm3724_vm13 = vcmp.gt.f32.partialorder %v3659_v14, 0.0  ;;  %2384 = vrot.lane.b32.xlu1 %v2359_v33, %s4509_s19 }
 0x280   : > { %v3559_v2 = vsel %vm1248_vm3, %v3523_v4, %v6167_v10  ;;  %v2134_v27 = vsel %vm2062_vm12, %v1997_v6, %v2098_v5  ;;  %v7143_v10 = vld [vmem:[#allocation16_spill] sm:$0xff]  ;;  %v3796_v17 = vsel %vm3724_vm13, %v3659_v14, %v3760_v34 }
 0x281   : > { %4438 = vmatmul.msk.bf16.gmra.mxu3 %vm1293_vm2, %v3559_v2  ;;  %v1823_v19 = vsel %vm1156_vm0, %v7143_v10, %v7142_v13  ;;  %v2170_v9 = vpack.c.bf16 %v2134_v27, %v2134_v27  ;;  %v3832_v47 = vpack.c.bf16 %v3796_v17, %v3796_v17  ;;  %v7144_v13 = vld [vmem:[#allocation29_spill] sm:$0xff] }
 0x283   : > { %v1998_v60 = vpop.f32.mrf.mxu1  ;;  %v3660_v0 = vpop.f32.mrf.mxu3  ;;  %v2332_v4 = vunpack.c.l.b16 %v2170_v9 }
 0x284   : > { %v1999_v11 = vadd.f32 %v6047_v7, %v1998_v60  ;;  %v6231_v30 = vpop.permute.xlu2 %2692  ;;  %v3661_v25 = vadd.f32 %v6047_v7, %v3660_v0  ;;  %v2650_v50 = vpop.permute.xlu1 %2649 }
 0x285   : > { %v1645_v31 = vpop.permute.xlu0 %1644 }
 0x286   : > { %vm2063_vm14 = vcmp.gt.f32.partialorder %v1999_v11, 0.0  ;;  %v2099_v58 = vmul.f32 0.2, %v1999_v11  ;;  %vm3725_vm15 = vcmp.gt.f32.partialorder %v3661_v25, 0.0  ;;  %v3761_v37 = vmul.f32 0.2, %v3661_v25 }
 0x287   : > { %v1861_v6 = vsel %vm1211_vm1, %v1823_v19, %v1645_v31 }
 0x288   : > { %v2135_v45 = vsel %vm2063_vm14, %v1999_v11, %v2099_v58  ;;  %v1897_v61 = vsel %vm1248_vm3, %v1861_v6, %v6183_v38  ;;  %v3797_v54 = vsel %vm3725_vm15, %v3661_v25, %v3761_v37  ;;  %v6246_v11 = vunpack.c.l.b16 %v3832_v47 }
 0x289   : > { %v2171_v44 = vpack.c.bf16 %v2135_v45, %v2135_v45  ;;  %v3833_v5 = vpack.c.bf16 %v3797_v54, %v3797_v54  ;;  %4390 = vmatmul.msk.bf16.gmra.mxu1 %vm1293_vm2, %v1897_v61  ;;  %v3036_v14 = vpop.f32.mrf.mxu2  ;;  %v2867_v25 = vsel %vm1156_vm0, %v7144_v13, %v2650_v50  ;;  %v3488_v50 = vsel %vm1156_vm0, %v7113_v55, %v6197_v49 }
 0x28a   : > { %v3037_v60 = vadd.f32 %v6047_v7, %v3036_v14 }
 0x28b   : > { %v2333_v33 = vunpack.c.l.b16 %v2171_v44  ;;  %v2001_v34 = vpop.f32.mrf.mxu1  ;;  %v6241_v2 = vunpack.c.l.b16 %v3833_v5 }
 0x28c   : > { %v6244_v27 = vpop.permute.xlu2 %3310  ;;  %v2817_v0 = vpop.permute.xlu1 %2816  ;;  %v2002_v10 = vadd.f32 %v6047_v7, %v2001_v34  ;;  %v3144_v58 = vmul.f32 0.2, %v3037_v60  ;;  %vm3108_vm4 = vcmp.gt.f32.partialorder %v3037_v60, 0.0 }
 0x28d   : > { %v2691_v38 = vpop.permute.xlu0 %2690  ;;  %v2360_v31 = vpack.c.b16 %v2333_v33, %v2332_v4 }
 0x28e   : > { %v2907_v19 = vsel %vm1211_vm1, %v2867_v25, %v2691_v38  ;;  %v2100_v37 = vmul.f32 0.2, %v2002_v10  ;;  %vm2064_vm5 = vcmp.gt.f32.partialorder %v2002_v10, 0.0  ;;  %v3180_v61 = vsel %vm3108_vm4, %v3037_v60, %v3144_v58 }
 0x28f   : > { %2386 = vrot.lane.b32.xlu2 %v2360_v31, %s4509_s19  ;;  %v2943_v9 = vsel %vm1248_vm3, %v2907_v19, %v2817_v0  ;;  %v3216_v38 = vpack.c.bf16 %v3180_v61, %v3180_v61  ;;  %v7148_v61 = vld [vmem:[#allocation15_spill] sm:$0xff] }
 0x290   : > { %4412 = vmatmul.msk.bf16.gmra.mxu2 %vm1293_vm2, %v2943_v9  ;;  %v2136_v34 = vsel %vm2064_vm5, %v2002_v10, %v2100_v37 }
 0x291   : > { %v3038_v6 = vpop.f32.mrf.mxu2  ;;  %v3663_v45 = vpop.f32.mrf.mxu3  ;;  %v2172_v25 = vpack.c.bf16 %v2136_v34, %v2136_v34 }
 0x292   : > { %v3039_v47 = vadd.f32 %v6047_v7, %v3038_v6  ;;  %v3664_v44 = vadd.f32 %v6047_v7, %v3663_v45  ;;  %v6268_v6 = vunpack.c.l.b16 %v3216_v38  ;;  %v7147_v45 = vld [vmem:[#allocation75_spill] sm:$0xff] }
 0x293   : > { %v2003_v54 = vpop.f32.mrf.mxu1 }
 0x294   : > { %v6262_v5 = vpop.permute.xlu2 %2653  ;;  %v2004_v4 = vadd.f32 %v6047_v7, %v2003_v54  ;;  %v3435_v33 = vpop.permute.xlu1 %3434  ;;  %vm3109_vm6 = vcmp.gt.f32.partialorder %v3039_v47, 0.0  ;;  %v3145_v0 = vmul.f32 0.2, %v3039_v47  ;;  %v3762_v60 = vmul.f32 0.2, %v3664_v44  ;;  %7145 = vst [vmem:[#allocation3_spill] sm:$0xff] %v6268_v6 }
 0x295   : > { %v3309_v14 = vpop.permute.xlu0 %3308  ;;  %vm3726_vm8 = vcmp.gt.f32.partialorder %v3664_v44, 0.0 }
 0x296   : > { %vm2065_vm7 = vcmp.gt.f32.partialorder %v2004_v4, 0.0  ;;  %v2101_v31 = vmul.f32 0.2, %v2004_v4  ;;  %v3525_v55 = vsel %vm1211_vm1, %v3488_v50, %v3309_v14  ;;  %v3181_v49 = vsel %vm3109_vm6, %v3039_v47, %v3145_v0 }
 0x297   : > { %v3561_v13 = vsel %vm1248_vm3, %v3525_v55, %v3435_v33  ;;  %v3217_v19 = vpack.c.bf16 %v3181_v49, %v3181_v49  ;;  %v1826_v50 = vsel %vm1156_vm0, %v7148_v61, %v7147_v45  ;;  %v3798_v47 = vsel %vm3726_vm8, %v3664_v44, %v3762_v60  ;;  %v6284_v60 = vpop.f32.mrf.mxu0  ;;  %v7149_v61 = vld [vmem:[#allocation28_spill] sm:$0xff] }
 0x298   : > { %v2137_v58 = vsel %vm2065_vm7, %v2004_v4, %v2101_v31  ;;  %4439 = vmatmul.msk.bf16.gmra.mxu3 %vm1293_vm2, %v3561_v13  ;;  %v1863_v4 = vsel %vm1211_vm1, %v1826_v50, %v6216_v32  ;;  %v2334_v0 = vunpack.c.l.b16 %v2172_v25  ;;  %vm2586_vm7 = vcmask 125952  }
 0x299   : > { %v2173_v9 = vpack.c.bf16 %v2137_v58, %v2137_v58  ;;  %v6270_v10 = vunpack.c.l.b16 %v3217_v19  ;;  %v3665_v37 = vpop.f32.mrf.mxu3  ;;  %v3834_v19 = vpack.c.bf16 %v3798_v47, %v3798_v47 }
 0x29a   : > { %v3666_v33 = vadd.f32 %v6047_v7, %v3665_v37  ;;  %v3041_v14 = vpop.f32.mrf.mxu2 }
 0x29b   : > { %7146 = vst [vmem:[#allocation21_spill] sm:$0xff] %v6270_v10  ;;  %v2335_v54 = vunpack.c.l.b16 %v2173_v9  ;;  %v3042_v38 = vadd.f32 %v6047_v7, %v3041_v14  ;;  %v6288_v37 = vunpack.c.l.b16 %v3834_v19 }
 0x29c   : > { %v6276_v34 = vpop.permute.xlu2 %2820  ;;  %v1773_v31 = vpop.permute.xlu1 %1772  ;;  %vm3727_vm9 = vcmp.gt.f32.partialorder %v3666_v33, 0.0  ;;  %v3763_v13 = vmul.f32 0.2, %v3666_v33 }
 0x29d   : > { %v2652_v55 = vpop.permute.xlu0 %2651  ;;  %v1899_v44 = vsel %vm1248_vm3, %v1863_v4, %v1773_v31  ;;  %v2361_v58 = vpack.c.b16 %v2335_v54, %v2334_v0  ;;  %v3146_v25 = vmul.f32 0.2, %v3042_v38  ;;  %vm3110_vm10 = vcmp.gt.f32.partialorder %v3042_v38, 0.0 }
 0x29e   : > { %4391 = vmatmul.msk.bf16.gmra.mxu1 %vm1293_vm2, %v1899_v44  ;;  %v3799_v9 = vsel %vm3727_vm9, %v3666_v33, %v3763_v13  ;;  %v2870_v50 = vsel %vm1156_vm0, %v7149_v61, %v2652_v55 }
 0x29f   : > { %v3835_v32 = vpack.c.bf16 %v3799_v9, %v3799_v9  ;;  %2388 = vrot.lane.b32.xlu0 %v2361_v58, %s4509_s19  ;;  %v3182_v31 = vsel %vm3110_vm10, %v3042_v38, %v3146_v25  ;;  %v2909_v55 = vsel %vm1211_vm1, %v2870_v50, %v6231_v30  ;;  %v6304_v61 = vpop.f32.mrf.mxu0 }
 0x2a0   : > { %v3218_v38 = vpack.c.bf16 %v3182_v31, %v3182_v31 }
 0x2a1   : > { %v6290_v45 = vunpack.c.l.b16 %v3835_v32 }
 0x2a2   : > { %v3043_v14 = vpop.f32.mrf.mxu2  ;;  %v3668_v4 = vpop.f32.mrf.mxu3  ;;  %v6309_v41 = vunpack.c.l.b16 %v3218_v38 }
 0x2a3   : > { %v3044_v47 = vadd.f32 %v6047_v7, %v3043_v14  ;;  %v3669_v54 = vadd.f32 %v6047_v7, %v3668_v4  ;;  %v2006_v33 = vpop.f32.mrf.mxu1 }
 0x2a4   : > { %v6296_v0 = vpop.permute.xlu2 %2822  ;;  %v3275_v44 = vpop.permute.xlu1 %3274  ;;  %v2007_v9 = vadd.f32 %v6047_v7, %v2006_v33  ;;  %7150 = vst [vmem:[#allocation39_spill] sm:$0xff] %v6309_v41 }
 0x2a5   : > { %v2819_v19 = vpop.permute.xlu0 %2818  ;;  %vm3111_vm11 = vcmp.gt.f32.partialorder %v3044_v47, 0.0  ;;  %v3147_v58 = vmul.f32 0.2, %v3044_v47  ;;  %v3764_v32 = vmul.f32 0.2, %v3669_v54  ;;  %vm3728_vm12 = vcmp.gt.f32.partialorder %v3669_v54, 0.0 }
 0x2a6   : > { %v2945_v25 = vsel %vm1248_vm3, %v2909_v55, %v2819_v19  ;;  %v3491_v49 = vsel %vm1156_vm0, %v7123_v21, %v3275_v44  ;;  %v2102_v17 = vmul.f32 0.2, %v2007_v9  ;;  %vm2066_vm13 = vcmp.gt.f32.partialorder %v2007_v9, 0.0 }
 0x2a7   : > { %v3183_v14 = vsel %vm3111_vm11, %v3044_v47, %v3147_v58  ;;  %4413 = vmatmul.msk.bf16.gmra.mxu2 %vm1293_vm2, %v2945_v25  ;;  %v3800_v30 = vsel %vm3728_vm12, %v3669_v54, %v3764_v32  ;;  %v3527_v25 = vsel %vm1211_vm1, %v3491_v49, %v6244_v27  ;;  %v6324_v6 = vpop.f32.mrf.mxu0 }
 0x2a8   : > { %v3219_v4 = vpack.c.bf16 %v3183_v14, %v3183_v14  ;;  %v3836_v32 = vpack.c.bf16 %v3800_v30, %v3800_v30  ;;  %v2138_v14 = vsel %vm2066_vm13, %v2007_v9, %v2102_v17 }
 0x2a9   : > { %v2174_v27 = vpack.c.bf16 %v2138_v14, %v2138_v14 }
 0x2aa   : > { %v6311_v33 = vunpack.c.l.b16 %v3219_v4  ;;  %v3046_v50 = vpop.f32.mrf.mxu2  ;;  %v3670_v31 = vpop.f32.mrf.mxu3  ;;  %v6326_v30 = vunpack.c.l.b16 %v3836_v32 }
 0x2ab   : > { %v3047_v19 = vadd.f32 %v6047_v7, %v3046_v50  ;;  %v3671_v47 = vadd.f32 %v6047_v7, %v3670_v31  ;;  %v2008_v58 = vpop.f32.mrf.mxu1  ;;  %v2336_v14 = vunpack.c.l.b16 %v2174_v27 }
 0x2ac   : > { %7151 = vst [vmem:[#allocation52_spill] sm:$0xff] %v6311_v33  ;;  %v6315_v55 = vpop.permute.xlu2 %2824  ;;  %v2009_v21 = vadd.f32 %v6047_v7, %v2008_v58  ;;  %v1649_v44 = vpop.permute.xlu1 %1648 }
 0x2ad   : > { %v3437_v38 = vpop.permute.xlu0 %3436  ;;  %vm3729_vm14 = vcmp.gt.f32.partialorder %v3671_v47, 0.0  ;;  %v3765_v4 = vmul.f32 0.2, %v3671_v47  ;;  %v3148_v50 = vmul.f32 0.2, %v3047_v19  ;;  %vm3112_vm4 = vcmp.gt.f32.partialorder %v3047_v19, 0.0 }
 0x2ae   : > { %vm2067_vm15 = vcmp.gt.f32.partialorder %v2009_v21, 0.0  ;;  %v2103_v31 = vmul.f32 0.2, %v2009_v21  ;;  %v3563_v13 = vsel %vm1248_vm3, %v3527_v25, %v3437_v38  ;;  %v7152_v38 = vld [vmem:[#allocation67_spill] sm:$0xff] }
 0x2af   : > { %v3801_v43 = vsel %vm3729_vm14, %v3671_v47, %v3765_v4  ;;  %4440 = vmatmul.msk.bf16.gmra.mxu3 %vm1293_vm2, %v3563_v13  ;;  %v3184_v17 = vsel %vm3112_vm4, %v3047_v19, %v3148_v50  ;;  %v7154_v19 = vpack.c.b16 %v5518_v46, %v5516_v56 }
 0x2b0   : > { %v3837_v49 = vpack.c.bf16 %v3801_v43, %v3801_v43  ;;  %v2139_v58 = vsel %vm2067_vm15, %v2009_v21, %v2103_v31  ;;  %v7153_v43 = vld [vmem:[#allocation14_spill] sm:$0xff] }
 0x2b1   : > { %v2175_v54 = vpack.c.bf16 %v2139_v58, %v2139_v58  ;;  %v1829_v21 = vsel %vm1156_vm0, %v7153_v43, %v7152_v38 }
 0x2b2   : > { %v6328_v9 = vunpack.c.l.b16 %v3837_v49  ;;  %v3048_v41 = vpop.f32.mrf.mxu2 }
 0x2b3   : > { %v3673_v33 = vpop.f32.mrf.mxu3  ;;  %v2337_v10 = vunpack.c.l.b16 %v2175_v54  ;;  %v3049_v25 = vadd.f32 %v6047_v7, %v3048_v41  ;;  %v3220_v54 = vpack.c.bf16 %v3184_v17, %v3184_v17  ;;  %v2011_v49 = vpop.f32.mrf.mxu1 }
 0x2b4   : > { %v3674_v47 = vadd.f32 %v6047_v7, %v3673_v33  ;;  %v2375_v13 = vpop.permute.xlu2 %2374  ;;  %v6335_v4 = vpop.permute.xlu1 %2694  ;;  %v1865_v33 = vsel %vm1211_vm1, %v1829_v21, %v1649_v44  ;;  %v2012_v27 = vadd.f32 %v6047_v7, %v2011_v49 }
 0x2b5   : > { %v2414_v32 = vsel %vm1211_vm1, %v7154_v19, %v2375_v13  ;;  %v1775_v50 = vpop.permute.xlu0 %1774  ;;  %vm3113_vm5 = vcmp.gt.f32.partialorder %v3049_v25, 0.0  ;;  %v3149_v31 = vmul.f32 0.2, %v3049_v25  ;;  %v2362_v46 = vpack.c.b16 %v2337_v10, %v2336_v14  ;;  %v6358_v19 = vpop.f32.mrf.mxu0 }
 0x2b6   : > { %v3766_v58 = vmul.f32 0.2, %v3674_v47  ;;  %v2482_v38 = vunpack.c.l.b16 %v2414_v32  ;;  %v2483_v43 = vunpack.c.h.b16 %v2414_v32  ;;  %vm3730_vm6 = vcmp.gt.f32.partialorder %v3674_v47, 0.0 }
 0x2b7   : > { %v3185_v51 = vsel %vm3113_vm5, %v3049_v25, %v3149_v31  ;;  %v1901_v56 = vsel %vm1248_vm3, %v1865_v33, %v1775_v50  ;;  %2390 = vrot.lane.b32.xlu1 %v2362_v46, %s4509_s19  ;;  %v6354_v25 = vunpack.c.l.b16 %v3220_v54  ;;  %v2104_v10 = vmul.f32 0.2, %v2012_v27 }
 0x2b8   : > { %v3221_v13 = vpack.c.bf16 %v3185_v51, %v3185_v51  ;;  %4392 = vmatmul.msk.bf16.gmra.mxu1 %vm1293_vm2, %v1901_v56  ;;  %v2518_v44 = vpack.c.b16 %v2482_v38, %v2482_v38  ;;  %v2519_v17 = vpack.c.b16 %v2483_v43, %v2483_v43  ;;  %v3802_v51 = vsel %vm3730_vm6, %v3674_v47, %v3766_v58 }
 0x2b9   : > { %7155 = vst [vmem:[#allocation59_spill] sm:$0xff] %v6354_v25  ;;  %vm2068_vm8 = vcmp.gt.f32.partialorder %v2012_v27, 0.0  ;;  %v7157_v54 = vpack.c.b16 %v5686_v52, %v5696_v29  ;;  %v3838_v58 = vpack.c.bf16 %v3802_v51, %v3802_v51  ;;  %v6407_v25 = vld [vmem:[%s6917_s2] ss:$0 sm:$0xff] }
 0x2ba   : > { %v6356_v21 = vunpack.c.l.b16 %v3221_v13  ;;  %2591 = vst.msk [vmem:[%s6350_s9 + $0x10] sm:$0xf] %vm2586_vm7, %v2518_v44  ;;  %v2140_v46 = vsel %vm2068_vm8, %v2012_v27, %v2104_v10 }
 0x2bb   : > { %v3675_v14 = vpop.f32.mrf.mxu3  ;;  %2592 = vst.msk [vmem:[%s6350_s9 + $0x14] sm:$0xf] %vm2586_vm7, %v2519_v17  ;;  %v2013_v38 = vpop.f32.mrf.mxu1  ;;  %v7158_v17 = vld [vmem:[#allocation32_spill] sm:$0xff]  ;;  %v2176_v41 = vpack.c.bf16 %v2140_v46, %v2140_v46  ;;  %v6379_v27 = vunpack.c.l.b16 %v3838_v58  ;;  %v1370_v46 = vadd.f32 %v6047_v7, %v6284_v60 }
 0x2bc   : > { %7156 = vst [vmem:[#allocation37_spill] sm:$0xff] %v6356_v21  ;;  %v3676_v32 = vadd.f32 %v6047_v7, %v3675_v14  ;;  %v2381_v50 = vpop.permute.xlu2 %2380  ;;  %v2697_v33 = vpop.permute.xlu1 %2696  ;;  %v2014_v13 = vadd.f32 %v6047_v7, %v2013_v38 }
 0x2bd   : > { %v2423_v31 = vsel %vm1211_vm1, %v7157_v54, %v2381_v50  ;;  %v2656_v49 = vpop.permute.xlu0 %2655  ;;  %vm1441_vm12 = vcmp.gt.f32.partialorder %v1370_v46, 0.0 }
 0x2be   : > { %vm3731_vm9 = vcmp.gt.f32.partialorder %v3676_v32, 0.0  ;;  %v3767_v43 = vmul.f32 0.2, %v3676_v32  ;;  %v2488_v56 = vunpack.c.l.b16 %v2423_v31  ;;  %v2489_v44 = vunpack.c.h.b16 %v2423_v31 }
 0x2bf   : > { %v2876_v52 = vsel %vm1156_vm0, %v7158_v17, %v2656_v49  ;;  %vm2069_vm10 = vcmp.gt.f32.partialorder %v2014_v13, 0.0  ;;  %v2105_v51 = vmul.f32 0.2, %v2014_v13 }
 0x2c0   : > { %v3803_v29 = vsel %vm3731_vm9, %v3676_v32, %v3767_v43  ;;  %v2524_v14 = vpack.c.b16 %v2488_v56, %v2488_v56  ;;  %v6375_v50 = vsel %vm1211_vm1, %v2876_v52, %v2697_v33  ;;  %v2525_v47 = vpack.c.b16 %v2489_v44, %v2489_v44 }
 0x2c1   : > { %v3839_v54 = vpack.c.bf16 %v3803_v29, %v3803_v29  ;;  %v2141_v10 = vsel %vm2069_vm10, %v2014_v13, %v2105_v51  ;;  %v3051_v32 = vpop.f32.mrf.mxu2  ;;  %v2338_v44 = vunpack.c.l.b16 %v2176_v41  ;;  %v7159_v13 = vld [vmem:[#allocation31_spill] sm:$0xff]  ;;  %v1379_v29 = vpop.f32.mrf.mxu0  ;;  %v1372_v51 = vadd.f32 %v6047_v7, %v6304_v61 }
 0x2c2   : > { %2597 = vst.msk [vmem:[%s6350_s9 + $0x28] sm:$0xf] %vm2586_vm7, %v2524_v14  ;;  %v2177_v31 = vpack.c.bf16 %v2141_v10, %v2141_v10  ;;  %v3052_v49 = vadd.f32 %v6047_v7, %v3051_v32  ;;  %v1477_v32 = vmul.f32 0.2, %v1370_v46 }
 0x2c3   : > { %v6381_v38 = vunpack.c.l.b16 %v3839_v54  ;;  %2598 = vst.msk [vmem:[%s6350_s9 + $0x2c] sm:$0xf] %vm2586_vm7, %v2525_v47  ;;  %v2016_v17 = vpop.f32.mrf.mxu1  ;;  %v1478_v41 = vmul.f32 0.2, %v1372_v51  ;;  %vm1442_vm14 = vcmp.gt.f32.partialorder %v1372_v51, 0.0 }
 0x2c4   : > { %v2699_v33 = vpop.permute.xlu1 %2698  ;;  %v2339_v58 = vunpack.c.l.b16 %v2177_v31  ;;  %v2017_v47 = vadd.f32 %v6047_v7, %v2016_v17  ;;  %v3150_v10 = vmul.f32 0.2, %v3052_v49  ;;  %vm3114_vm11 = vcmp.gt.f32.partialorder %v3052_v49, 0.0 }
 0x2c5   : > { %v2658_v43 = vpop.permute.xlu0 %2657 }
 0x2c6   : > { %v2879_v52 = vsel %vm1156_vm0, %v7159_v13, %v2658_v43  ;;  %v2363_v54 = vpack.c.b16 %v2339_v58, %v2338_v44  ;;  %v2106_v60 = vmul.f32 0.2, %v2017_v47  ;;  %vm2070_vm13 = vcmp.gt.f32.partialorder %v2017_v47, 0.0 }
 0x2c7   : > { %v6394_v14 = vsel %vm1211_vm1, %v2879_v52, %v2699_v33  ;;  %v3186_v43 = vsel %vm3114_vm11, %v3052_v49, %v3150_v10  ;;  %v1513_v52 = vsel %vm1441_vm12, %v1370_v46, %v1477_v32  ;;  %v7160_v44 = vpack.c.b16 %v5455_v59, %v5453_v26 }
 0x2c8   : > { %2392 = vrot.lane.b32.xlu2 %v2363_v54, %s4509_s19  ;;  %v2142_v56 = vsel %vm2070_vm13, %v2017_v47, %v2106_v60  ;;  %v1514_v10 = vsel %vm1442_vm14, %v1372_v51, %v1478_v41  ;;  %v7161_v47 = vpack.c.b16 %v5402_v53, %v5400_v23  ;;  %v1549_v24 = vpack.c.bf16 %v1513_v52, %v1513_v52 }
 0x2c9   : > { %v3053_v31 = vpop.f32.mrf.mxu2  ;;  %v1381_v59 = vpop.f32.mrf.mxu0  ;;  %v2178_v32 = vpack.c.bf16 %v2142_v56, %v2142_v56  ;;  %v1550_v51 = vpack.c.bf16 %v1514_v10, %v1514_v10 }
 0x2ca   : > { %v3054_v17 = vadd.f32 %v6047_v7, %v3053_v31  ;;  %v3222_v31 = vpack.c.bf16 %v3186_v43, %v3186_v43  ;;  %v1382_v23 = vadd.f32 %v6407_v25, %v1381_v59  ;;  %v2238_v59 = vunpack.c.l.b16 %v1549_v24 }
 0x2cb   : > { %v2018_v61 = vpop.f32.mrf.mxu1  ;;  %v2340_v10 = vunpack.c.l.b16 %v2178_v32  ;;  %v7163_v32 = vpack.c.b16 %v5575_v3, %v5573_v18 }
 0x2cc   : > { %v2373_v33 = vpop.permute.xlu1 %2372  ;;  %vm3115_vm15 = vcmp.gt.f32.partialorder %v3054_v17, 0.0  ;;  %v3151_v54 = vmul.f32 0.2, %v3054_v17  ;;  %v2019_v49 = vadd.f32 %v6407_v25, %v2018_v61  ;;  %vm1446_vm5 = vcmp.gt.f32.partialorder %v1382_v23, 0.0 }
 0x2cd   : > { %v2371_v13 = vpop.permute.xlu0 %2370  ;;  %v2411_v58 = vsel %vm1211_vm1, %v7160_v44, %v2373_v33 }
 0x2ce   : > { %v2480_v7 = vunpack.c.l.b16 %v2411_v58  ;;  %v2481_v46 = vunpack.c.h.b16 %v2411_v58  ;;  %v2408_v26 = vsel %vm1211_vm1, %v7161_v47, %v2371_v13  ;;  %v3187_v60 = vsel %vm3115_vm15, %v3054_v17, %v3151_v54 }
 0x2cf   : > { %vm2071_vm4 = vcmp.gt.f32.partialorder %v2019_v49, 0.0  ;;  %v2107_v33 = vmul.f32 0.2, %v2019_v49  ;;  %v3223_v44 = vpack.c.bf16 %v3187_v60, %v3187_v60  ;;  %v2478_v61 = vunpack.c.l.b16 %v2408_v26 }
 0x2d0   : > { %v2516_v21 = vpack.c.b16 %v2480_v7, %v2480_v7  ;;  %v2517_v48 = vpack.c.b16 %v2481_v46, %v2481_v46  ;;  %v2479_v43 = vunpack.c.h.b16 %v2408_v26  ;;  %v1380_v58 = vadd.f32 %v6407_v25, %v1379_v29 }
 0x2d1   : > { %v2143_v41 = vsel %vm2071_vm4, %v2019_v49, %v2107_v33  ;;  %v6415_v53 = vunpack.c.l.b16 %v3223_v44  ;;  %v2514_v56 = vpack.c.b16 %v2478_v61, %v2478_v61  ;;  %v6420_v54 = vunpack.c.l.b16 %v3222_v31 }
 0x2d2   : > { %v2179_v13 = vpack.c.bf16 %v2143_v41, %v2143_v41  ;;  %2589 = vst.msk [vmem:[%s6350_s9 + $0x8] sm:$0xf] %vm2586_vm7, %v2516_v21  ;;  %v3056_v17 = vpop.f32.mrf.mxu2  ;;  %v2515_v52 = vpack.c.b16 %v2479_v43, %v2479_v43  ;;  %v7162_v21 = vpack.c.b16 %v5634_v20, %v5632_v35  ;;  %v2239_v29 = vunpack.c.l.b16 %v1550_v51 }
 0x2d3   : > { %2590 = vst.msk [vmem:[%s6350_s9 + $0xc] sm:$0xf] %vm2586_vm7, %v2517_v48  ;;  %v3057_v47 = vadd.f32 %v6407_v25, %v3056_v17  ;;  %v1482_v60 = vmul.f32 0.2, %v1382_v23  ;;  %v3933_v35 = vpack.c.b16 %v6415_v53, %v6420_v54  ;;  %v1481_v20 = vmul.f32 0.2, %v1380_v58 }
 0x2d4   : > { %v2379_v49 = vpop.permute.xlu1 %2378  ;;  %v2341_v46 = vunpack.c.l.b16 %v2179_v13  ;;  %2587 = vst.msk [vmem:[%s6350_s9] sm:$0xf] %vm2586_vm7, %v2514_v56  ;;  %vm1445_vm6 = vcmp.gt.f32.partialorder %v1380_v58, 0.0  ;;  %v6440_v13 = vpop.f32.mrf.mxu0 }
 0x2d5   : > { %v2377_v7 = vpop.permute.xlu0 %2376  ;;  %v2420_v26 = vsel %vm1211_vm1, %v7162_v21, %v2379_v49  ;;  %2588 = vst.msk [vmem:[%s6350_s9 + $0x4] sm:$0xf] %vm2586_vm7, %v2515_v52  ;;  %v3152_v51 = vmul.f32 0.2, %v3057_v47  ;;  %vm3116_vm8 = vcmp.gt.f32.partialorder %v3057_v47, 0.0  ;;  %v1518_v3 = vsel %vm1446_vm5, %v1382_v23, %v1482_v60 }
 0x2d6   : > { %v2486_v31 = vunpack.c.l.b16 %v2420_v26  ;;  %v2487_v48 = vunpack.c.h.b16 %v2420_v26  ;;  %v2417_v33 = vsel %vm1211_vm1, %v7163_v32, %v2377_v7  ;;  %v2364_v44 = vpack.c.b16 %v2341_v46, %v2340_v10 }
 0x2d7   : > { %v2484_v41 = vunpack.c.l.b16 %v2417_v33  ;;  %v2485_v43 = vunpack.c.h.b16 %v2417_v33  ;;  %v2268_v49 = vpack.c.b16 %v2239_v29, %v2238_v59  ;;  %v1517_v7 = vsel %vm1445_vm6, %v1380_v58, %v1481_v20 }
 0x2d8   : > { %v2522_v24 = vpack.c.b16 %v2486_v31, %v2486_v31  ;;  %v2523_v61 = vpack.c.b16 %v2487_v48, %v2487_v48  ;;  %2394 = vrot.lane.b32.xlu0 %v2364_v44, %s4509_s19  ;;  %v1377_v26 = vadd.f32 %v6407_v25, %v6358_v19  ;;  %v3188_v31 = vsel %vm3116_vm8, %v3057_v47, %v3152_v51 }
 0x2d9   : > { %v2520_v56 = vpack.c.b16 %v2484_v41, %v2484_v41  ;;  %v2521_v17 = vpack.c.b16 %v2485_v43, %v2485_v43  ;;  %v1554_v48 = vpack.c.bf16 %v1518_v3, %v1518_v3  ;;  %v1553_v29 = vpack.c.bf16 %v1517_v7, %v1517_v7 }
 0x2da   : > { %2595 = vst.msk [vmem:[%s6350_s9 + $0x20] sm:$0xf] %vm2586_vm7, %v2522_v24  ;;  %v3058_v52 = vpop.f32.mrf.mxu2  ;;  %v3224_v33 = vpack.c.bf16 %v3188_v31, %v3188_v31  ;;  %v1375_v47 = vadd.f32 %v6407_v25, %v6324_v6  ;;  %vm1444_vm11 = vcmp.gt.f32.partialorder %v1377_v26, 0.0 }
 0x2db   : > { %v2021_v18 = vpop.f32.mrf.mxu1  ;;  %2596 = vst.msk [vmem:[%s6350_s9 + $0x24] sm:$0xf] %vm2586_vm7, %v2523_v61  ;;  %v3059_v10 = vadd.f32 %v6407_v25, %v3058_v52  ;;  %v1480_v61 = vmul.f32 0.2, %v1377_v26  ;;  %v2243_v51 = vunpack.c.l.b16 %v1554_v48 }
 0x2dc   : > { %v2022_v46 = vadd.f32 %v6407_v25, %v2021_v18  ;;  %2593 = vst.msk [vmem:[%s6350_s9 + $0x18] sm:$0xf] %vm2586_vm7, %v2520_v56  ;;  %v2242_v56 = vunpack.c.l.b16 %v1553_v29  ;;  %v6466_v52 = vunpack.c.l.b16 %v3224_v33  ;;  %vm1443_vm12 = vcmp.gt.f32.partialorder %v1375_v47, 0.0 }
 0x2dd   : > { %v2383_v21 = vpop.permute.xlu0 %2382  ;;  %2594 = vst.msk [vmem:[%s6350_s9 + $0x1c] sm:$0xf] %vm2586_vm7, %v2521_v17  ;;  %vm3117_vm9 = vcmp.gt.f32.partialorder %v3059_v10, 0.0  ;;  %v3153_v59 = vmul.f32 0.2, %v3059_v10  ;;  %v6464_v17 = vpop.f32.mrf.mxu0  ;;  %v1516_v7 = vsel %vm1444_vm11, %v1377_v26, %v1480_v61 }
 0x2de   : > { %v2426_v23 = vsel %vm1211_vm1, %v2268_v49, %v2383_v21  ;;  %v2108_v60 = vmul.f32 0.2, %v2022_v46  ;;  %vm2072_vm10 = vcmp.gt.f32.partialorder %v2022_v46, 0.0  ;;  %v1479_v6 = vmul.f32 0.2, %v1375_v47 }
 0x2df   : > { %v2490_v58 = vunpack.c.l.b16 %v2426_v23  ;;  %v2491_v32 = vunpack.c.h.b16 %v2426_v23  ;;  %v3189_v44 = vsel %vm3117_vm9, %v3059_v10, %v3153_v59  ;;  %v2270_v21 = vpack.c.b16 %v2243_v51, %v2242_v56 }
 0x2e0   : > { %v3225_v20 = vpack.c.bf16 %v3189_v44, %v3189_v44  ;;  %v2144_v18 = vsel %vm2072_vm10, %v2022_v46, %v2108_v60  ;;  %v7164_v46 = vld [vmem:[#allocation33_spill] sm:$0xff]  ;;  %v1515_v60 = vsel %vm1443_vm12, %v1375_v47, %v1479_v6 }
 0x2e1   : > { %v2526_v19 = vpack.c.b16 %v2490_v58, %v2490_v58  ;;  %v2527_v24 = vpack.c.b16 %v2491_v32, %v2491_v32  ;;  %v2180_v10 = vpack.c.bf16 %v2144_v18, %v2144_v18  ;;  %v2873_v23 = vsel %vm1156_vm0, %v7164_v46, %v6262_v5 }
 0x2e2   : > { %v6459_v43 = vunpack.c.l.b16 %v3225_v20  ;;  %v1552_v32 = vpack.c.bf16 %v1516_v7, %v1516_v7 }
 0x2e3   : > { %2599 = vst.msk [vmem:[%s6350_s9 + $0x30] sm:$0xf] %vm2586_vm7, %v2526_v19  ;;  %v2023_v41 = vpop.f32.mrf.mxu1  ;;  %v2911_v19 = vsel %vm1211_vm1, %v2873_v23, %v6335_v4  ;;  %v2342_v20 = vunpack.c.l.b16 %v2180_v10  ;;  %v6487_v4 = vpop.f32.mrf.mxu3 }
 0x2e4   : > { %2600 = vst.msk [vmem:[%s6350_s9 + $0x34] sm:$0xf] %vm2586_vm7, %v2527_v24  ;;  %v2024_v3 = vadd.f32 %v6407_v25, %v2023_v41  ;;  %v3934_v31 = vpack.c.b16 %v6459_v43, %v6466_v52  ;;  %v1551_v41 = vpack.c.bf16 %v1515_v60, %v1515_v60  ;;  %v2947_v47 = vsel %vm1248_vm3, %v2911_v19, %v6276_v34 }
 0x2e5   : > { %v6481_v56 = vpop.f32.mrf.mxu0  ;;  %4414 = vmatmul.msk.bf16.gmra.mxu2 %vm1293_vm2, %v2947_v47 }
 0x2e6   : > { %vm2073_vm13 = vcmp.gt.f32.partialorder %v2024_v3, 0.0  ;;  %v2109_v49 = vmul.f32 0.2, %v2024_v3 }
 0x2e8   : > { %v2145_v48 = vsel %vm2073_vm13, %v2024_v3, %v2109_v49  ;;  %v2241_v3 = vunpack.c.l.b16 %v1552_v32  ;;  %v2240_v49 = vunpack.c.l.b16 %v1551_v41 }
 0x2e9   : > { %v2387_v59 = vpop.permute.xlu2 %2386  ;;  %v2181_v58 = vpack.c.bf16 %v2145_v48, %v2145_v48  ;;  %v3061_v44 = vpop.f32.mrf.mxu2 }
 0x2ea   : > { %v2432_v29 = vsel %vm1211_vm1, %v2270_v21, %v2387_v59  ;;  %v3062_v61 = vadd.f32 %v6407_v25, %v3061_v44  ;;  %v2269_v21 = vpack.c.b16 %v2241_v3, %v2240_v49  ;;  %v1385_v49 = vadd.f32 %v6407_v25, %v6440_v13 }
 0x2eb   : > { %v2494_v33 = vunpack.c.l.b16 %v2432_v29  ;;  %v2495_v26 = vunpack.c.h.b16 %v2432_v29  ;;  %v2343_v24 = vunpack.c.l.b16 %v2181_v58 }
 0x2ec   : > { %v3154_v6 = vmul.f32 0.2, %v3062_v61  ;;  %vm3118_vm0 = vcmp.gt.f32.partialorder %v3062_v61, 0.0  ;;  %vm1447_vm6 = vcmp.gt.f32.partialorder %v1385_v49, 0.0 }
 0x2ed   : > { %v2530_v5 = vpack.c.b16 %v2494_v33, %v2494_v33  ;;  %v2531_v51 = vpack.c.b16 %v2495_v26, %v2495_v26  ;;  %v2365_v18 = vpack.c.b16 %v2343_v24, %v2342_v20  ;;  %v6492_v20 = vpop.f32.mrf.mxu0  ;;  %v6494_v24 = vpop.f32.mrf.mxu3 }
 0x2ee   : > { %v3190_v10 = vsel %vm3118_vm0, %v3062_v61, %v3154_v6 }
 0x2ef   : > { %2603 = vst.msk [vmem:[%s6350_s9 + $0x40] sm:$0xf] %vm2586_vm7, %v2530_v5  ;;  %2396 = vrot.lane.b32.xlu1 %v2365_v18, %s4509_s19  ;;  %v3226_v59 = vpack.c.bf16 %v3190_v10, %v3190_v10  ;;  %v1387_v18 = vadd.f32 %v6407_v25, %v6464_v17  ;;  %v2949_v17 = vsel %vm1248_vm3, %v6375_v50, %v6296_v0 }
 0x2f0   : > { %2604 = vst.msk [vmem:[%s6350_s9 + $0x44] sm:$0xf] %vm2586_vm7, %v2531_v51 }
 0x2f1   : > { %v3063_v7 = vpop.f32.mrf.mxu2  ;;  %v2385_v34 = vpop.permute.xlu1 %2384  ;;  %v6496_v61 = vunpack.c.l.b16 %v3226_v59  ;;  %v1484_v10 = vmul.f32 0.2, %v1387_v18  ;;  %vm1448_vm5 = vcmp.gt.f32.partialorder %v1387_v18, 0.0 }
 0x2f2   : > { %v3064_v46 = vadd.f32 %v6407_v25, %v3063_v7  ;;  %v2429_v23 = vsel %vm1211_vm1, %v2269_v21, %v2385_v34 }
 0x2f3   : > { %v2492_v58 = vunpack.c.l.b16 %v2429_v23  ;;  %v2493_v29 = vunpack.c.h.b16 %v2429_v23  ;;  %v2026_v60 = vpop.f32.mrf.mxu1  ;;  %v1483_v23 = vmul.f32 0.2, %v1385_v49 }
 0x2f4   : > { %vm3119_vm14 = vcmp.gt.f32.partialorder %v3064_v46, 0.0  ;;  %v3155_v48 = vmul.f32 0.2, %v3064_v46  ;;  %v2027_v33 = vadd.f32 %v6407_v25, %v2026_v60 }
 0x2f5   : > { %v2528_v26 = vpack.c.b16 %v2492_v58, %v2492_v58  ;;  %v2529_v44 = vpack.c.b16 %v2493_v29, %v2493_v29  ;;  %v1520_v58 = vsel %vm1448_vm5, %v1387_v18, %v1484_v10  ;;  %4415 = vmatmul.msk.bf16.gmra.mxu2 %vm1293_vm2, %v2949_v17  ;;  %v3619_v18 = vadd.f32 %v6407_v25, %v5816_v16 }
 0x2f6   : > { %v3191_v32 = vsel %vm3119_vm14, %v3064_v46, %v3155_v48  ;;  %v2110_v51 = vmul.f32 0.2, %v2027_v33  ;;  %vm2074_vm15 = vcmp.gt.f32.partialorder %v2027_v33, 0.0  ;;  %v1394_v46 = vpop.f32.mrf.mxu0  ;;  %v6511_v48 = vpop.f32.mrf.mxu3 }
 0x2f7   : > { %v3227_v19 = vpack.c.bf16 %v3191_v32, %v3191_v32  ;;  %2601 = vst.msk [vmem:[%s6350_s9 + $0x38] sm:$0xf] %vm2586_vm7, %v2528_v26  ;;  %vm3708_vm11 = vcmp.gt.f32.partialorder %v3619_v18, 0.0  ;;  %v3744_v16 = vmul.f32 0.2, %v3619_v18 }
 0x2f8   : > { %2602 = vst.msk [vmem:[%s6350_s9 + $0x3c] sm:$0xf] %vm2586_vm7, %v2529_v44  ;;  %v2146_v3 = vsel %vm2074_vm15, %v2027_v33, %v2110_v51  ;;  %v1519_v33 = vsel %vm1447_vm6, %v1385_v49, %v1483_v23  ;;  %v1556_v44 = vpack.c.bf16 %v1520_v58, %v1520_v58 }
 0x2f9   : > { %v6500_v5 = vunpack.c.l.b16 %v3227_v19  ;;  %v2182_v21 = vpack.c.bf16 %v2146_v3, %v2146_v3  ;;  %v3621_v19 = vadd.f32 %v6407_v25, %v5836_v36  ;;  %v1555_v51 = vpack.c.bf16 %v1519_v33, %v1519_v33 }
 0x2fa   : > { %v2245_v0 = vunpack.c.l.b16 %v1556_v44  ;;  %v1395_v36 = vadd.f32 %v6407_v25, %v1394_v46  ;;  %v3636_v46 = vadd.f32 %v6407_v25, %v5988_v8 }
 0x2fb   : > { %v3935_v41 = vpack.c.b16 %v6500_v5, %v6496_v61  ;;  %v2028_v47 = vpop.f32.mrf.mxu1  ;;  %v2344_v29 = vunpack.c.l.b16 %v2182_v21  ;;  %v2244_v49 = vunpack.c.l.b16 %v1555_v51  ;;  %vm3709_vm9 = vcmp.gt.f32.partialorder %v3621_v19, 0.0 }
 0x2fc   : > { %v2029_v6 = vadd.f32 %v6407_v25, %v2028_v47  ;;  %v1487_v51 = vmul.f32 0.2, %v1395_v36  ;;  %vm1451_vm13 = vcmp.gt.f32.partialorder %v1395_v36, 0.0 }
 0x2fe   : > { %vm2075_vm4 = vcmp.gt.f32.partialorder %v2029_v6, 0.0  ;;  %v2111_v7 = vmul.f32 0.2, %v2029_v6  ;;  %v1396_v50 = vpop.f32.mrf.mxu0  ;;  %v6523_v3 = vpop.f32.mrf.mxu3 }
 0x300   : > { %v2147_v34 = vsel %vm2075_vm4, %v2029_v6, %v2111_v7  ;;  %v3745_v7 = vmul.f32 0.2, %v3621_v19 }
 0x301   : > { %v2183_v59 = vpack.c.bf16 %v2147_v34, %v2147_v34  ;;  %v1397_v34 = vadd.f32 %v6407_v25, %v1396_v50 }
 0x303   : > { %v2345_v60 = vunpack.c.l.b16 %v2183_v59  ;;  %v2271_v59 = vpack.c.b16 %v2245_v0, %v2244_v49  ;;  %v1488_v33 = vmul.f32 0.2, %v1397_v34  ;;  %vm1452_vm12 = vcmp.gt.f32.partialorder %v1397_v34, 0.0 }
 0x304   : > { %v3780_v49 = vsel %vm3708_vm11, %v3619_v18, %v3744_v16  ;;  %v1523_v18 = vsel %vm1451_vm13, %v1395_v36, %v1487_v51 }
 0x305   : > { %v2366_v26 = vpack.c.b16 %v2345_v60, %v2344_v29  ;;  %v3781_v29 = vsel %vm3709_vm9, %v3621_v19, %v3745_v7 }
 0x306   : > { %v2031_v13 = vpop.f32.mrf.mxu1  ;;  %v6534_v0 = vpop.f32.mrf.mxu3  ;;  %v3817_v8 = vpack.c.bf16 %v3781_v29, %v3781_v29 }
 0x307   : > { %v2032_v32 = vadd.f32 %v6407_v25, %v2031_v13  ;;  %2398 = vrot.lane.b32.xlu2 %v2366_v26, %s4509_s19  ;;  %v6549_v16 = vpop.f32.mrf.mxu0 }
 0x309   : > { %v2112_v47 = vmul.f32 0.2, %v2032_v32  ;;  %vm2076_vm8 = vcmp.gt.f32.partialorder %v2032_v32, 0.0 }
 0x30b   : > { %v2148_v10 = vsel %vm2076_vm8, %v2032_v32, %v2112_v47  ;;  %v2951_v47 = vsel %vm1248_vm3, %v6394_v14, %v6315_v55  ;;  %v1524_v55 = vsel %vm1452_vm12, %v1397_v34, %v1488_v33 }
 0x30c   : > { %v2184_v17 = vpack.c.bf16 %v2148_v10, %v2148_v10  ;;  %4416 = vmatmul.msk.bf16.gmra.mxu2 %vm1293_vm2, %v2951_v47  ;;  %v3634_v10 = vadd.f32 %v6407_v25, %v5963_v63  ;;  %vm3715_vm2 = vcmp.gt.f32.partialorder %v3636_v46, 0.0 }
 0x30e   : > { %v2033_v6 = vpop.f32.mrf.mxu1  ;;  %v2346_v19 = vunpack.c.l.b16 %v2184_v17  ;;  %v1390_v17 = vadd.f32 %v6407_v25, %v6481_v56  ;;  %v3750_v63 = vmul.f32 0.2, %v3634_v10  ;;  %vm3714_vm3 = vcmp.gt.f32.partialorder %v3634_v10, 0.0  ;;  %v6552_v47 = vpop.f32.mrf.mxu3 }
 0x30f   : > { %v2034_v21 = vadd.f32 %v6407_v25, %v2033_v6 }
 0x310   : > { %vm1449_vm14 = vcmp.gt.f32.partialorder %v1390_v17, 0.0  ;;  %v3786_v56 = vsel %vm3714_vm3, %v3634_v10, %v3750_v63 }
 0x311   : > { %vm2077_vm10 = vcmp.gt.f32.partialorder %v2034_v21, 0.0  ;;  %v2113_v23 = vmul.f32 0.2, %v2034_v21  ;;  %v2389_v58 = vpop.permute.xlu0 %2388 }
 0x312   : > { %v2435_v13 = vsel %vm1211_vm1, %v2271_v59, %v2389_v58  ;;  %v3816_v59 = vpack.c.bf16 %v3780_v49, %v3780_v49  ;;  %v1560_v58 = vpack.c.bf16 %v1524_v55, %v1524_v55 }
 0x313   : > { %v2149_v60 = vsel %vm2077_vm10, %v2034_v21, %v2113_v23  ;;  %v2496_v26 = vunpack.c.l.b16 %v2435_v13  ;;  %v2497_v44 = vunpack.c.h.b16 %v2435_v13  ;;  %v1392_v21 = vadd.f32 %v6407_v25, %v6492_v20 }
 0x314   : > { %v2185_v32 = vpack.c.bf16 %v2149_v60, %v2149_v60  ;;  %v3751_v23 = vmul.f32 0.2, %v3636_v46  ;;  %v3979_v20 = vunpack.c.l.b16 %v3817_v8  ;;  %v1559_v60 = vpack.c.bf16 %v1523_v18, %v1523_v18  ;;  %v6559_v18 = vpop.f32.mrf.mxu0 }
 0x315   : > { %v2532_v6 = vpack.c.b16 %v2496_v26, %v2496_v26  ;;  %v2533_v7 = vpack.c.b16 %v2497_v44, %v2497_v44  ;;  %v1486_v34 = vmul.f32 0.2, %v1392_v21  ;;  %vm1450_vm0 = vcmp.gt.f32.partialorder %v1392_v21, 0.0 }
 0x316   : > { %v2347_v50 = vunpack.c.l.b16 %v2185_v32  ;;  %v3787_v13 = vsel %vm3715_vm2, %v3636_v46, %v3751_v23  ;;  %v3978_v33 = vunpack.c.l.b16 %v3816_v59  ;;  %v1485_v32 = vmul.f32 0.2, %v1390_v17 }
 0x317   : > { %2605 = vst.msk [vmem:[%s6350_s9 + $0x48] sm:$0xf] %vm2586_vm7, %v2532_v6  ;;  %v2249_v36 = vunpack.c.l.b16 %v1560_v58  ;;  %v1522_v44 = vsel %vm1450_vm0, %v1392_v21, %v1486_v34  ;;  %v3823_v51 = vpack.c.bf16 %v3787_v13, %v3787_v13  ;;  %v3626_v46 = vadd.f32 %v6407_v25, %v5886_v12 }
 0x318   : > { %v2367_v14 = vpack.c.b16 %v2347_v50, %v2346_v19  ;;  %2606 = vst.msk [vmem:[%s6350_s9 + $0x4c] sm:$0xf] %vm2586_vm7, %v2533_v7  ;;  %v4014_v19 = vpack.c.b16 %v3979_v20, %v3978_v33  ;;  %v2248_v50 = vunpack.c.l.b16 %v1559_v60  ;;  %v1521_v6 = vsel %vm1449_vm14, %v1390_v17, %v1485_v32  ;;  %v3693_v33 = vpop.f32.mrf.mxu3 }
 0x319   : > { %v3822_v7 = vpack.c.bf16 %v3786_v56, %v3786_v56  ;;  %v1558_v8 = vpack.c.bf16 %v1522_v44, %v1522_v44  ;;  %v3624_v21 = vadd.f32 %v6407_v25, %v5865_v1  ;;  %v1557_v59 = vpack.c.bf16 %v1521_v6, %v1521_v6 }
 0x31a   : > { %2400 = vrot.lane.b32.xlu0 %v2367_v14, %s4509_s19  ;;  %v2273_v55 = vpack.c.b16 %v2249_v36, %v2248_v50  ;;  %v3985_v14 = vunpack.c.l.b16 %v3823_v51  ;;  %vm3711_vm5 = vcmp.gt.f32.partialorder %v3626_v46, 0.0 }
 0x31b   : > { %v2036_v29 = vpop.f32.mrf.mxu1  ;;  %v3984_v58 = vunpack.c.l.b16 %v3822_v7  ;;  %v2247_v60 = vunpack.c.l.b16 %v1558_v8  ;;  %v3746_v36 = vmul.f32 0.2, %v3624_v21  ;;  %v2246_v44 = vunpack.c.l.b16 %v1557_v59  ;;  %v7165_v7 = vld [vmem:[#allocation55_spill] sm:$0xff] }
 0x31c   : > { %v2037_v26 = vadd.f32 %v6407_v25, %v2036_v29  ;;  %v3747_v29 = vmul.f32 0.2, %v3626_v46  ;;  %vm3710_vm6 = vcmp.gt.f32.partialorder %v3624_v21, 0.0 }
 0x31d   : > { %v4017_v56 = vpack.c.b16 %v3985_v14, %v3984_v58  ;;  %v2272_v6 = vpack.c.b16 %v2247_v60, %v2246_v44  ;;  %v3782_v14 = vsel %vm3710_vm6, %v3624_v21, %v3746_v36 }
 0x31e   : > { %v2114_v49 = vmul.f32 0.2, %v2037_v26  ;;  %vm2078_vm15 = vcmp.gt.f32.partialorder %v2037_v26, 0.0  ;;  %v3783_v50 = vsel %vm3711_vm5, %v3626_v46, %v3747_v29  ;;  %v3818_v21 = vpack.c.bf16 %v3782_v14, %v3782_v14 }
 0x320   : > { %v2150_v20 = vsel %vm2078_vm15, %v2037_v26, %v2114_v49  ;;  %v3641_v49 = vadd.f32 %v6407_v25, %v7165_v7  ;;  %v3695_v36 = vpop.f32.mrf.mxu3 }
 0x321   : > { %v2186_v51 = vpack.c.bf16 %v2150_v20, %v2150_v20 }
 0x322   : > { %4032 = vrot.lane.b32.xlu0 %v4014_v19, %s4509_s19  ;;  %v2393_v10 = vpop.permute.xlu2 %2392  ;;  %v3753_v60 = vmul.f32 0.2, %v3641_v49  ;;  %vm3717_vm8 = vcmp.gt.f32.partialorder %v3641_v49, 0.0 }
 0x323   : > { %v2038_v23 = vpop.f32.mrf.mxu1  ;;  %v2441_v17 = vsel %vm1211_vm1, %v2273_v55, %v2393_v10  ;;  %v3681_v10 = vadd.f32 %v6407_v25, %v6494_v24 }
 0x324   : > { %v2039_v63 = vadd.f32 %v6407_v25, %v2038_v23  ;;  %v2500_v34 = vunpack.c.l.b16 %v2441_v17  ;;  %v2501_v12 = vunpack.c.h.b16 %v2441_v17  ;;  %v2348_v23 = vunpack.c.l.b16 %v2186_v51 }
 0x325   : > { %v3819_v17 = vpack.c.bf16 %v3783_v50, %v3783_v50  ;;  %vm3733_vm9 = vcmp.gt.f32.partialorder %v3681_v10, 0.0  ;;  %v3980_v51 = vunpack.c.l.b16 %v3818_v21  ;;  %v3696_v50 = vadd.f32 %v6407_v25, %v3695_v36 }
 0x326   : > { %vm2079_vm4 = vcmp.gt.f32.partialorder %v2039_v63, 0.0  ;;  %v2115_v13 = vmul.f32 0.2, %v2039_v63  ;;  %v2536_v1 = vpack.c.b16 %v2500_v34, %v2500_v34  ;;  %v2537_v32 = vpack.c.b16 %v2501_v12, %v2501_v12  ;;  %v6575_v34 = vpop.f32.mrf.mxu0 }
 0x327   : > { %v3679_v12 = vadd.f32 %v6407_v25, %v6487_v4  ;;  %v7167_v4 = vpack.c.b16 %v6175_v42, %v6173_v57  ;;  %v3694_v57 = vadd.f32 %v6407_v25, %v3693_v33  ;;  %vm3739_vm12 = vcmp.gt.f32.partialorder %v3696_v50, 0.0 }
 0x328   : > { %v2151_v19 = vsel %vm2079_vm4, %v2039_v63, %v2115_v13  ;;  %2609 = vst.msk [vmem:[%s6350_s9 + $0x58] sm:$0xf] %vm2586_vm7, %v2536_v1  ;;  %v7166_v63 = vld [vmem:[#allocation34_spill] sm:$0xff]  ;;  %v3769_v1 = vmul.f32 0.2, %v3681_v10  ;;  %v7170_v33 = vpack.c.b16 %v6290_v45, %v6288_v37  ;;  %v3698_v37 = vpop.f32.mrf.mxu3 }
 0x329   : > { %v2187_v26 = vpack.c.bf16 %v2151_v19, %v2151_v19  ;;  %2610 = vst.msk [vmem:[%s6350_s9 + $0x5c] sm:$0xf] %vm2586_vm7, %v2537_v32  ;;  %v2391_v55 = vpop.permute.xlu1 %2390  ;;  %v3639_v58 = vadd.f32 %v6407_v25, %v7166_v63  ;;  %v3981_v32 = vunpack.c.l.b16 %v3819_v17  ;;  %v3768_v44 = vmul.f32 0.2, %v3679_v12  ;;  %v7169_v63 = vld [vmem:[#allocation35_spill] sm:$0xff] }
 0x32a   : > { %4038 = vrot.lane.b32.xlu0 %v4017_v56, %s4509_s19  ;;  %v2438_v59 = vsel %vm1211_vm1, %v2272_v6, %v2391_v55  ;;  %v3789_v19 = vsel %vm3717_vm8, %v3641_v49, %v3753_v60  ;;  %vm3732_vm11 = vcmp.gt.f32.partialorder %v3679_v12, 0.0  ;;  %v7168_v6 = vld [vmem:[#allocation51_spill] sm:$0xff]  ;;  %v1402_v17 = vadd.f32 %v6407_v25, %v6559_v18 }
 0x32b   : > { %v2349_v8 = vunpack.c.l.b16 %v2187_v26  ;;  %v2498_v46 = vunpack.c.l.b16 %v2438_v59  ;;  %v2499_v20 = vunpack.c.h.b16 %v2438_v59  ;;  %v3752_v56 = vmul.f32 0.2, %v3639_v58 }
 0x32c   : > { %vm3716_vm10 = vcmp.gt.f32.partialorder %v3639_v58, 0.0  ;;  %v3805_v26 = vsel %vm3733_vm9, %v3681_v10, %v3769_v1  ;;  %v3629_v7 = vadd.f32 %v6407_v25, %v7168_v6  ;;  %v4015_v14 = vpack.c.b16 %v3981_v32, %v3980_v51 }
 0x32d   : > { %v2368_v29 = vpack.c.b16 %v2349_v8, %v2348_v23  ;;  %v2534_v24 = vpack.c.b16 %v2498_v46, %v2498_v46  ;;  %v2535_v13 = vpack.c.b16 %v2499_v20, %v2499_v20  ;;  %v3788_v8 = vsel %vm3716_vm10, %v3639_v58, %v3752_v56 }
 0x32e   : > { %v3825_v23 = vpack.c.bf16 %v3789_v19, %v3789_v19  ;;  %v3804_v59 = vsel %vm3732_vm11, %v3679_v12, %v3768_v44  ;;  %v3841_v49 = vpack.c.bf16 %v3805_v26, %v3805_v26  ;;  %v3631_v10 = vadd.f32 %v6407_v25, %v7169_v63  ;;  %v6597_v20 = vpop.f32.mrf.mxu0 }
 0x32f   : > { %2402 = vrot.lane.b32.xlu1 %v2368_v29, %s4509_s19  ;;  %2607 = vst.msk [vmem:[%s6350_s9 + $0x50] sm:$0xf] %vm2586_vm7, %v2534_v24  ;;  %v3824_v46 = vpack.c.bf16 %v3788_v8, %v3788_v8  ;;  %v3775_v29 = vmul.f32 0.2, %v3696_v50  ;;  %v1400_v58 = vadd.f32 %v6407_v25, %v6549_v16  ;;  %v3840_v12 = vpack.c.bf16 %v3804_v59, %v3804_v59 }
 0x330   : > { %2608 = vst.msk [vmem:[%s6350_s9 + $0x54] sm:$0xf] %vm2586_vm7, %v2535_v13  ;;  %v3748_v18 = vmul.f32 0.2, %v3629_v7  ;;  %v3987_v21 = vunpack.c.l.b16 %v3825_v23  ;;  %v3774_v60 = vmul.f32 0.2, %v3694_v57  ;;  %v4003_v1 = vunpack.c.l.b16 %v3841_v49 }
 0x331   : > { %v1490_v13 = vmul.f32 0.2, %v1402_v17  ;;  %vm3738_vm13 = vcmp.gt.f32.partialorder %v3694_v57, 0.0  ;;  %vm3713_vm3 = vcmp.gt.f32.partialorder %v3631_v10, 0.0  ;;  %v3986_v32 = vunpack.c.l.b16 %v3824_v46 }
 0x332   : > { %4044 = vrot.lane.b32.xlu0 %v7167_v4, %s4509_s19  ;;  %vm1454_vm0 = vcmp.gt.f32.partialorder %v1402_v17, 0.0  ;;  %v3811_v56 = vsel %vm3739_vm12, %v3696_v50, %v3775_v29  ;;  %v3749_v16 = vmul.f32 0.2, %v3631_v10  ;;  %vm1453_vm14 = vcmp.gt.f32.partialorder %v1400_v58, 0.0 }
 0x333   : > { %v1489_v36 = vmul.f32 0.2, %v1400_v58  ;;  %v4002_v4 = vunpack.c.l.b16 %v3840_v12  ;;  %v3810_v51 = vsel %vm3738_vm13, %v3694_v57, %v3774_v60  ;;  %v4018_v26 = vpack.c.b16 %v3987_v21, %v3986_v32 }
 0x334   : > { %vm3712_vm15 = vcmp.gt.f32.partialorder %v3629_v7, 0.0  ;;  %v1526_v6 = vsel %vm1454_vm0, %v1402_v17, %v1490_v13  ;;  %v3847_v8 = vpack.c.bf16 %v3811_v56, %v3811_v56  ;;  %v3785_v50 = vsel %vm3713_vm3, %v3631_v10, %v3749_v16 }
 0x335   : > { %v2041_v55 = vpop.f32.mrf.mxu1  ;;  %v1525_v23 = vsel %vm1453_vm14, %v1400_v58, %v1489_v36  ;;  %v3846_v59 = vpack.c.bf16 %v3810_v51, %v3810_v51  ;;  %v3784_v57 = vsel %vm3712_vm15, %v3629_v7, %v3748_v18  ;;  %v3646_v17 = vadd.f32 %v6407_v25, %v6121_v40 }
 0x336   : > { %v2042_v42 = vadd.f32 %v6407_v25, %v2041_v55  ;;  %v4026_v55 = vpack.c.b16 %v4003_v1, %v4002_v4  ;;  %v1409_v63 = vpop.f32.mrf.mxu0  ;;  %v3686_v29 = vadd.f32 %v6407_v25, %v6523_v3  ;;  %v4009_v12 = vunpack.c.l.b16 %v3847_v8  ;;  %v3700_v4 = vpop.f32.mrf.mxu3 }
 0x337   : > { %4034 = vrot.lane.b32.xlu1 %v4015_v14, %s4509_s19  ;;  %v3821_v21 = vpack.c.bf16 %v3785_v50, %v3785_v50  ;;  %v1561_v10 = vpack.c.bf16 %v1525_v23, %v1525_v23  ;;  %v3684_v58 = vadd.f32 %v6407_v25, %v6511_v48  ;;  %v4008_v60 = vunpack.c.l.b16 %v3846_v59 }
 0x338   : > { %v2116_v24 = vmul.f32 0.2, %v2042_v42  ;;  %vm2080_vm2 = vcmp.gt.f32.partialorder %v2042_v42, 0.0  ;;  %v3820_v7 = vpack.c.bf16 %v3784_v57, %v3784_v57  ;;  %v3644_v1 = vadd.f32 %v6407_v25, %v6082_v15 }
 0x339   : > { %v3755_v32 = vmul.f32 0.2, %v3646_v17  ;;  %v3771_v40 = vmul.f32 0.2, %v3686_v29  ;;  %v4029_v16 = vpack.c.b16 %v4009_v12, %v4008_v60  ;;  %v3983_v3 = vunpack.c.l.b16 %v3821_v21 }
 0x33a   : > { %4050 = vrot.lane.b32.xlu0 %v7170_v33, %s4509_s19  ;;  %v2152_v45 = vsel %vm2080_vm2, %v2042_v42, %v2116_v24  ;;  %v1562_v42 = vpack.c.bf16 %v1526_v6, %v1526_v6  ;;  %v2250_v36 = vunpack.c.l.b16 %v1561_v10  ;;  %vm3719_vm5 = vcmp.gt.f32.partialorder %v3646_v17, 0.0 }
 0x33b   : > { %v2188_v49 = vpack.c.bf16 %v2152_v45, %v2152_v45  ;;  %vm3735_vm6 = vcmp.gt.f32.partialorder %v3686_v29, 0.0  ;;  %v7171_v48 = vpack.c.b16 %v6211_v22, %v6209_v28  ;;  %v3982_v15 = vunpack.c.l.b16 %v3820_v7 }
 0x33c   : > { %v2251_v18 = vunpack.c.l.b16 %v1562_v42  ;;  %v3754_v51 = vmul.f32 0.2, %v3644_v1  ;;  %vm3734_vm8 = vcmp.gt.f32.partialorder %v3684_v58, 0.0  ;;  %vm3718_vm9 = vcmp.gt.f32.partialorder %v3644_v1, 0.0 }
 0x33d   : > { %v2043_v44 = vpop.f32.mrf.mxu1  ;;  %v2350_v24 = vunpack.c.l.b16 %v2188_v49  ;;  %v3701_v6 = vadd.f32 %v6407_v25, %v3700_v4  ;;  %v3699_v23 = vadd.f32 %v6407_v25, %v3698_v37  ;;  %v1405_v57 = vadd.f32 %v6407_v25, %v6575_v34 }
 0x33e   : > { %v2044_v19 = vadd.f32 %v6407_v25, %v2043_v44  ;;  %v3770_v44 = vmul.f32 0.2, %v3684_v58  ;;  %v2274_v45 = vpack.c.b16 %v2251_v18, %v2250_v36  ;;  %v1411_v28 = vpop.f32.mrf.mxu0  ;;  %v3790_v42 = vsel %vm3718_vm9, %v3644_v1, %v3754_v51 }
 0x33f   : > { %4040 = vrot.lane.b32.xlu1 %v4018_v26, %s4509_s19  ;;  %v3807_v26 = vsel %vm3735_vm6, %v3686_v29, %v3771_v40  ;;  %v1412_v29 = vadd.f32 %v6407_v25, %v1411_v28  ;;  %v3777_v12 = vmul.f32 0.2, %v3701_v6  ;;  %vm3741_vm10 = vcmp.gt.f32.partialorder %v3701_v6, 0.0 }
 0x340   : > { %vm2081_vm4 = vcmp.gt.f32.partialorder %v2044_v19, 0.0  ;;  %v2117_v14 = vmul.f32 0.2, %v2044_v19  ;;  %v3806_v50 = vsel %vm3734_vm8, %v3684_v58, %v3770_v44  ;;  %v7172_v37 = vpack.c.b16 %v6328_v9, %v6326_v30  ;;  %v3703_v44 = vpop.f32.mrf.mxu3 }
 0x341   : > { %v3842_v10 = vpack.c.bf16 %v3806_v50, %v3806_v50  ;;  %v3826_v34 = vpack.c.bf16 %v3790_v42, %v3790_v42  ;;  %v1410_v58 = vadd.f32 %v6407_v25, %v1409_v63  ;;  %v3776_v60 = vmul.f32 0.2, %v3699_v23 }
 0x342   : > { %4056 = vrot.lane.b32.xlu0 %v4026_v55, %s4509_s19  ;;  %v2153_v46 = vsel %vm2081_vm4, %v2044_v19, %v2117_v14  ;;  %v3791_v19 = vsel %vm3719_vm5, %v3646_v17, %v3755_v32  ;;  %v1407_v55 = vadd.f32 %v6407_v25, %v6597_v20  ;;  %v4016_v14 = vpack.c.b16 %v3983_v3, %v3982_v15 }
 0x343   : > { %v2189_v33 = vpack.c.bf16 %v2153_v46, %v2153_v46  ;;  %v3827_v46 = vpack.c.bf16 %v3791_v19, %v3791_v19  ;;  %v3843_v17 = vpack.c.bf16 %v3807_v26, %v3807_v26  ;;  %vm3740_vm12 = vcmp.gt.f32.partialorder %v3699_v23, 0.0 }
 0x344   : > { %v1492_v21 = vmul.f32 0.2, %v1407_v55  ;;  %vm1456_vm11 = vcmp.gt.f32.partialorder %v1407_v55, 0.0  ;;  %vm1455_vm13 = vcmp.gt.f32.partialorder %v1405_v57, 0.0  ;;  %v1494_v18 = vmul.f32 0.2, %v1412_v29 }
 0x345   : > { %v2351_v13 = vunpack.c.l.b16 %v2189_v33  ;;  %v3989_v7 = vunpack.c.l.b16 %v3827_v46  ;;  %v3813_v1 = vsel %vm3741_vm10, %v3701_v6, %v3777_v12  ;;  %vm1458_vm2 = vcmp.gt.f32.partialorder %v1412_v29, 0.0 }
 0x346   : > { %v1528_v30 = vsel %vm1456_vm11, %v1407_v55, %v1492_v21  ;;  %v4004_v9 = vunpack.c.l.b16 %v3842_v10  ;;  %v3988_v32 = vunpack.c.l.b16 %v3826_v34  ;;  %v1493_v40 = vmul.f32 0.2, %v1410_v58  ;;  %v6647_v6 = vpop.f32.mrf.mxu0 }
 0x347   : > { %v2369_v56 = vpack.c.b16 %v2351_v13, %v2350_v24  ;;  %4046 = vrot.lane.b32.xlu1 %v7171_v48, %s4509_s19  ;;  %v1491_v24 = vmul.f32 0.2, %v1405_v57  ;;  %v4005_v13 = vunpack.c.l.b16 %v3843_v17  ;;  %v3812_v63 = vsel %vm3740_vm12, %v3699_v23, %v3776_v60 }
 0x348   : > { %vm1457_vm3 = vcmp.gt.f32.partialorder %v1410_v58, 0.0  ;;  %v3849_v3 = vpack.c.bf16 %v3813_v1, %v3813_v1  ;;  %v1564_v4 = vpack.c.bf16 %v1528_v30, %v1528_v30  ;;  %v1530_v48 = vsel %vm1458_vm2, %v1412_v29, %v1494_v18  ;;  %v3705_v12 = vpop.f32.mrf.mxu3 }
 0x349   : > { %2404 = vrot.lane.b32.xlu2 %v2369_v56, %s4509_s19  ;;  %v1527_v56 = vsel %vm1455_vm13, %v1405_v57, %v1491_v24  ;;  %v4027_v36 = vpack.c.b16 %v4005_v13, %v4004_v9  ;;  %v4019_v15 = vpack.c.b16 %v3989_v7, %v3988_v32  ;;  %v3848_v51 = vpack.c.bf16 %v3812_v63, %v3812_v63 }
 0x34a   : > { %4062 = vrot.lane.b32.xlu0 %v4029_v16, %s4509_s19  ;;  %v2395_v8 = vpop.permute.xlu0 %2394  ;;  %v6643_v16 = vpop.f32.mrf.mxu2  ;;  %v1529_v19 = vsel %vm1457_vm3, %v1410_v58, %v1493_v40  ;;  %v1566_v26 = vpack.c.bf16 %v1530_v48, %v1530_v48  ;;  %v2253_v55 = vunpack.c.l.b16 %v1564_v4  ;;  %v3691_v28 = vadd.f32 %v6407_v25, %v6552_v47  ;;  %v6664_v58 = vld [vmem:[%s6917_s2] ss:$0 sm:$0xff] }
 0x34b   : > { %v2444_v22 = vsel %vm1211_vm1, %v2274_v45, %v2395_v8  ;;  %v1563_v45 = vpack.c.bf16 %v1527_v56, %v1527_v56  ;;  %v4011_v8 = vunpack.c.l.b16 %v3849_v3  ;;  %v7173_v47 = vpack.c.b16 %v6241_v2, %v6246_v11 }
 0x34c   : > { %v2502_v59 = vunpack.c.l.b16 %v2444_v22  ;;  %v2503_v49 = vunpack.c.h.b16 %v2444_v22  ;;  %v1565_v22 = vpack.c.bf16 %v1529_v19, %v1529_v19  ;;  %v2255_v23 = vunpack.c.l.b16 %v1566_v26 }
 0x34d   : > { %v2252_v50 = vunpack.c.l.b16 %v1563_v45  ;;  %v3773_v57 = vmul.f32 0.2, %v3691_v28  ;;  %vm3737_vm0 = vcmp.gt.f32.partialorder %v3691_v28, 0.0  ;;  %v3706_v2 = vadd.f32 %v6664_v58, %v3705_v12 }
 0x34e   : > { %v2538_v20 = vpack.c.b16 %v2502_v59, %v2502_v59  ;;  %v2539_v33 = vpack.c.b16 %v2503_v49, %v2503_v49  ;;  %v3689_v59 = vadd.f32 %v6407_v25, %v6534_v0  ;;  %v2254_v46 = vunpack.c.l.b16 %v1565_v22  ;;  %v1416_v34 = vpop.f32.mrf.mxu0 }
 0x34f   : > { %4052 = vrot.lane.b32.xlu1 %v7172_v37, %s4509_s19  ;;  %v2275_v42 = vpack.c.b16 %v2253_v55, %v2252_v50  ;;  %v3809_v10 = vsel %vm3737_vm0, %v3691_v28, %v3773_v57  ;;  %v3704_v1 = vadd.f32 %v6664_v58, %v3703_v44  ;;  %v3779_v63 = vmul.f32 0.2, %v3706_v2  ;;  %v7176_v57 = vld [vmem:[#allocation58_spill] sm:$0xff] }
 0x350   : > { %2611 = vst.msk [vmem:[%s6350_s9 + $0x60] sm:$0xf] %vm2586_vm7, %v2538_v20  ;;  %v2276_v21 = vpack.c.b16 %v2255_v23, %v2254_v46  ;;  %vm3736_vm14 = vcmp.gt.f32.partialorder %v3689_v59, 0.0  ;;  %v3845_v30 = vpack.c.bf16 %v3809_v10, %v3809_v10  ;;  %vm3743_vm15 = vcmp.gt.f32.partialorder %v3706_v2, 0.0 }
 0x351   : > { %4036 = vrot.lane.b32.xlu2 %v4016_v14, %s4509_s19  ;;  %2612 = vst.msk [vmem:[%s6350_s9 + $0x64] sm:$0xf] %vm2586_vm7, %v2539_v33  ;;  %v4010_v14 = vunpack.c.l.b16 %v3848_v51  ;;  %v3772_v33 = vmul.f32 0.2, %v3689_v59  ;;  %v7174_v3 = vpack.c.b16 %v6381_v38, %v6379_v27  ;;  %vm3742_vm4 = vcmp.gt.f32.partialorder %v3704_v1, 0.0 }
 0x352   : > { %v6653_v17 = vpop.f32.mrf.mxu2  ;;  %v4007_v4 = vunpack.c.l.b16 %v3845_v30  ;;  %v3815_v48 = vsel %vm3743_vm15, %v3706_v2, %v3779_v63  ;;  %v1417_v38 = vadd.f32 %v6664_v58, %v1416_v34 }
 0x353   : > { %v4030_v49 = vpack.c.b16 %v4011_v8, %v4010_v14  ;;  %v3808_v18 = vsel %vm3736_vm14, %v3689_v59, %v3772_v33  ;;  %v3851_v45 = vpack.c.bf16 %v3815_v48, %v3815_v48  ;;  %v1415_v14 = vadd.f32 %v6664_v58, %v6647_v6  ;;  %v7175_v59 = vld [vmem:[#allocation4_spill] sm:$0xff] }
 0x354   : > { %v3844_v56 = vpack.c.bf16 %v3808_v18, %v3808_v18  ;;  %v1496_v23 = vmul.f32 0.2, %v1417_v38  ;;  %vm1460_vm5 = vcmp.gt.f32.partialorder %v1417_v38, 0.0 }
 0x355   : > { %v4013_v55 = vunpack.c.l.b16 %v3851_v45  ;;  %v1495_v46 = vmul.f32 0.2, %v1415_v14  ;;  %vm1459_vm6 = vcmp.gt.f32.partialorder %v1415_v14, 0.0 }
 0x356   : > { %v4006_v44 = vunpack.c.l.b16 %v3844_v56 }
 0x357   : > { %4058 = vrot.lane.b32.xlu1 %v4027_v36, %s4509_s19  ;;  %v3778_v36 = vmul.f32 0.2, %v3704_v1  ;;  %v1531_v6 = vsel %vm1459_vm6, %v1415_v14, %v1495_v46 }
 0x358   : > { %v4028_v19 = vpack.c.b16 %v4007_v4, %v4006_v44  ;;  %v1567_v2 = vpack.c.bf16 %v1531_v6, %v1531_v6 }
 0x359   : > { %4042 = vrot.lane.b32.xlu2 %v4019_v15, %s4509_s19  ;;  %v6683_v15 = vpop.f32.mrf.mxu0  ;;  %v3814_v51 = vsel %vm3742_vm4, %v3704_v1, %v3778_v36  ;;  %v7179_v1 = vld [vmem:[#allocation48_spill] sm:$0xff]  ;;  %v7181_v36 = vld [vmem:[#allocation2_spill] sm:$0xff] }
 0x35a   : > { %v6673_v40 = vpop.f32.mrf.mxu2  ;;  %v3850_v26 = vpack.c.bf16 %v3814_v51, %v3814_v51  ;;  %v3014_v30 = vadd.f32 %v6664_v58, %v7179_v1  ;;  %v2256_v56 = vunpack.c.l.b16 %v1567_v2  ;;  %v3019_v4 = vadd.f32 %v6664_v58, %v7181_v36 }
 0x35c   : > { %v4012_v27 = vunpack.c.l.b16 %v3850_v26  ;;  %vm3099_vm13 = vcmp.gt.f32.partialorder %v3014_v30, 0.0  ;;  %vm3101_vm3 = vcmp.gt.f32.partialorder %v3019_v4, 0.0 }
 0x35e   : > { %v4031_v28 = vpack.c.b16 %v4013_v55, %v4012_v27 }
 0x35f   : > { %4064 = vrot.lane.b32.xlu1 %v4030_v49, %s4509_s19  ;;  %v3007_v49 = vadd.f32 %v6664_v58, %v7175_v59 }
 0x361   : > { %v2397_v29 = vpop.permute.xlu1 %2396  ;;  %4048 = vrot.lane.b32.xlu2 %v7173_v47, %s4509_s19  ;;  %v2399_v37 = vpop.permute.xlu2 %2398  ;;  %v3132_v12 = vmul.f32 0.2, %v3007_v49  ;;  %vm3096_vm8 = vcmp.gt.f32.partialorder %v3007_v49, 0.0 }
 0x362   : > { %v2447_v20 = vsel %vm1211_vm1, %v2275_v42, %v2397_v29  ;;  %v2450_v24 = vsel %vm1211_vm1, %v2276_v21, %v2399_v37  ;;  %v6686_v8 = vpop.f32.mrf.mxu2  ;;  %v1421_v22 = vpop.f32.mrf.mxu0  ;;  %v3009_v42 = vadd.f32 %v6664_v58, %v7176_v57  ;;  %v1532_v29 = vsel %vm1460_vm5, %v1417_v38, %v1496_v23  ;;  %v7178_v37 = vld [vmem:[#allocation47_spill] sm:$0xff] }
 0x363   : > { %v2504_v25 = vunpack.c.l.b16 %v2447_v20  ;;  %v2505_v0 = vunpack.c.h.b16 %v2447_v20  ;;  %v2506_v13 = vunpack.c.l.b16 %v2450_v24  ;;  %v2507_v7 = vunpack.c.h.b16 %v2450_v24 }
 0x364   : > { %v3133_v47 = vmul.f32 0.2, %v3009_v42  ;;  %vm3097_vm9 = vcmp.gt.f32.partialorder %v3009_v42, 0.0  ;;  %v1568_v20 = vpack.c.bf16 %v1532_v29, %v1532_v29  ;;  %v3168_v21 = vsel %vm3096_vm8, %v3007_v49, %v3132_v12 }
 0x365   : > { %v2540_v11 = vpack.c.b16 %v2504_v25, %v2504_v25  ;;  %v2541_v60 = vpack.c.b16 %v2505_v0, %v2505_v0  ;;  %v2542_v9 = vpack.c.b16 %v2506_v13, %v2506_v13  ;;  %v2543_v32 = vpack.c.b16 %v2507_v7, %v2507_v7  ;;  %v7177_v25 = vld [vmem:[#allocation18_spill] sm:$0xff] }
 0x366   : > { %v3012_v0 = vadd.f32 %v6664_v58, %v7177_v25  ;;  %v3169_v10 = vsel %vm3097_vm9, %v3009_v42, %v3133_v47  ;;  %v3022_v34 = vadd.f32 %v6664_v58, %v7178_v37  ;;  %v2257_v24 = vunpack.c.l.b16 %v1568_v20 }
 0x367   : > { %2613 = vst.msk [vmem:[%s6350_s9 + $0x68] sm:$0xf] %vm2586_vm7, %v2540_v11  ;;  %v3204_v13 = vpack.c.bf16 %v3168_v21, %v3168_v21  ;;  %v3205_v7 = vpack.c.bf16 %v3169_v10, %v3169_v10  ;;  %v3137_v49 = vmul.f32 0.2, %v3019_v4  ;;  %v1420_v57 = vadd.f32 %v6664_v58, %v6683_v15 }
 0x368   : > { %2614 = vst.msk [vmem:[%s6350_s9 + $0x6c] sm:$0xf] %vm2586_vm7, %v2541_v60  ;;  %v3024_v60 = vadd.f32 %v6664_v58, %v6144_v62  ;;  %v3134_v18 = vmul.f32 0.2, %v3012_v0  ;;  %vm3098_vm10 = vcmp.gt.f32.partialorder %v3012_v0, 0.0  ;;  %vm3102_vm11 = vcmp.gt.f32.partialorder %v3022_v34, 0.0 }
 0x369   : > { %2615 = vst.msk [vmem:[%s6350_s9 + $0x70] sm:$0xf] %vm2586_vm7, %v2542_v9  ;;  %4054 = vrot.lane.b32.xlu2 %v7174_v3, %s4509_s19  ;;  %v7180_v9 = vld [vmem:[#allocation17_spill] sm:$0xff]  ;;  %v3138_v63 = vmul.f32 0.2, %v3022_v34  ;;  %v2277_v62 = vpack.c.b16 %v2257_v24, %v2256_v56  ;;  %v3888_v48 = vunpack.c.l.b16 %v3204_v13  ;;  %v3889_v44 = vunpack.c.l.b16 %v3205_v7  ;;  %v7182_v7 = vld [vmem:[#allocation54_spill] sm:$0xff] }
 0x36a   : > { %2616 = vst.msk [vmem:[%s6350_s9 + $0x74] sm:$0xf] %vm2586_vm7, %v2543_v32  ;;  %v6692_v50 = vpop.f32.mrf.mxu2  ;;  %v1424_v33 = vpop.f32.mrf.mxu0  ;;  %v3017_v32 = vadd.f32 %v6664_v58, %v7180_v9  ;;  %v3139_v3 = vmul.f32 0.2, %v3024_v60  ;;  %vm3103_vm12 = vcmp.gt.f32.partialorder %v3024_v60, 0.0  ;;  %v6712_v51 = vsel %vm3098_vm10, %v3012_v0, %v3134_v18 }
 0x36b   : > { %v3174_v26 = vsel %vm3102_vm11, %v3022_v34, %v3138_v63  ;;  %v1422_v42 = vadd.f32 %v6664_v58, %v1421_v22  ;;  %v3027_v20 = vadd.f32 %v6664_v58, %v6165_v39  ;;  %v3206_v25 = vpack.c.bf16 %v6712_v51, %v6712_v51  ;;  %v7183_v63 = vld [vmem:[#allocation38_spill] sm:$0xff] }
 0x36c   : > { %vm3100_vm2 = vcmp.gt.f32.partialorder %v3017_v32, 0.0  ;;  %v3175_v14 = vsel %vm3103_vm12, %v3024_v60, %v3139_v3  ;;  %v3210_v46 = vpack.c.bf16 %v3174_v26, %v3174_v26  ;;  %v1425_v15 = vadd.f32 %v6664_v58, %v1424_v33 }
 0x36d   : > { %v3211_v6 = vpack.c.bf16 %v3175_v14, %v3175_v14  ;;  %v3924_v22 = vpack.c.b16 %v3889_v44, %v3888_v48  ;;  %v6735_v10 = vsel %vm3101_vm3, %v3019_v4, %v3137_v49  ;;  %v1497_v37 = vmul.f32 0.2, %v1420_v57  ;;  %v7184_v4 = vld [vmem:[#allocation61_spill] sm:$0xff] }
 0x36e   : > { %v1498_v34 = vmul.f32 0.2, %v1422_v42  ;;  %v3894_v39 = vunpack.c.l.b16 %v3210_v46  ;;  %vm1461_vm0 = vcmp.gt.f32.partialorder %v1420_v57, 0.0  ;;  %vm1462_vm14 = vcmp.gt.f32.partialorder %v1422_v42, 0.0 }
 0x36f   : > { %v3895_v24 = vunpack.c.l.b16 %v3211_v6  ;;  %v3140_v33 = vmul.f32 0.2, %v3027_v20  ;;  %v3029_v18 = vadd.f32 %v6664_v58, %v7182_v7  ;;  %v1499_v1 = vmul.f32 0.2, %v1425_v15 }
 0x370   : > { %v3032_v56 = vadd.f32 %v6664_v58, %v7183_v63  ;;  %v1534_v3 = vsel %vm1462_vm14, %v1422_v42, %v1498_v34  ;;  %vm1463_vm4 = vcmp.gt.f32.partialorder %v1425_v15, 0.0  ;;  %vm3104_vm5 = vcmp.gt.f32.partialorder %v3027_v20, 0.0 }
 0x371   : > { %4060 = vrot.lane.b32.xlu2 %v4028_v19, %s4509_s19  ;;  %v3135_v19 = vmul.f32 0.2, %v3014_v30  ;;  %v1535_v14 = vsel %vm1463_vm4, %v1425_v15, %v1499_v1  ;;  %v3176_v46 = vsel %vm3104_vm5, %v3027_v20, %v3140_v33  ;;  %vm3105_vm6 = vcmp.gt.f32.partialorder %v3029_v18, 0.0 }
 0x372   : > { %v6702_v11 = vpop.f32.mrf.mxu2  ;;  %v1426_v55 = vpop.f32.mrf.mxu0  ;;  %vm3106_vm8 = vcmp.gt.f32.partialorder %v3032_v56, 0.0  ;;  %v3890_v33 = vunpack.c.l.b16 %v3206_v25 }
 0x373   : > { %v1427_v29 = vadd.f32 %v6664_v58, %v1426_v55  ;;  %v6726_v0 = vsel %vm3099_vm13, %v3014_v30, %v3135_v19  ;;  %v3069_v55 = vadd.f32 %v6664_v58, %v6653_v17  ;;  %v1571_v17 = vpack.c.bf16 %v1535_v14, %v1535_v14 }
 0x374   : > { %v3207_v19 = vpack.c.bf16 %v6726_v0, %v6726_v0 }
 0x375   : > { %v1500_v2 = vmul.f32 0.2, %v1427_v29  ;;  %vm1464_vm15 = vcmp.gt.f32.partialorder %v1427_v29, 0.0  ;;  %vm3121_vm10 = vcmp.gt.f32.partialorder %v3069_v55, 0.0  ;;  %v2260_v7 = vunpack.c.l.b16 %v1571_v17 }
 0x377   : > { %v1536_v48 = vsel %vm1464_vm15, %v1427_v29, %v1500_v2  ;;  %v3067_v2 = vadd.f32 %v6664_v58, %v6643_v16 }
 0x378   : > { %v1572_v42 = vpack.c.bf16 %v1536_v48, %v1536_v48 }
 0x379   : > { %4066 = vrot.lane.b32.xlu2 %v4031_v28, %s4509_s19  ;;  %v3136_v28 = vmul.f32 0.2, %v3017_v32  ;;  %vm3120_vm11 = vcmp.gt.f32.partialorder %v3067_v2, 0.0 }
 0x37a   : > { %v6715_v38 = vpop.f32.mrf.mxu2  ;;  %v2261_v34 = vunpack.c.l.b16 %v1572_v42  ;;  %v3072_v42 = vadd.f32 %v6664_v58, %v6673_v40 }
 0x37b   : > { %v6732_v21 = vsel %vm3100_vm2, %v3017_v32, %v3136_v28  ;;  %v1533_v32 = vsel %vm1461_vm0, %v1420_v57, %v1497_v37  ;;  %v1570_v28 = vpack.c.bf16 %v1534_v3, %v1534_v3  ;;  %v3142_v57 = vmul.f32 0.2, %v3032_v56 }
 0x37c   : > { %v3208_v26 = vpack.c.bf16 %v6732_v21, %v6732_v21  ;;  %v1569_v49 = vpack.c.bf16 %v1533_v32, %v1533_v32  ;;  %vm3122_vm12 = vcmp.gt.f32.partialorder %v3072_v42, 0.0 }
 0x37d   : > { %v2259_v0 = vunpack.c.l.b16 %v1570_v28  ;;  %v3178_v37 = vsel %vm3106_vm8, %v3032_v56, %v3142_v57 }
 0x37e   : > { %v3892_v1 = vunpack.c.l.b16 %v3208_v26  ;;  %v3214_v56 = vpack.c.bf16 %v3178_v37, %v3178_v37 }
 0x380   : > { %v3898_v37 = vunpack.c.l.b16 %v3214_v56 }
 0x382   : > { %v6744_v36 = vpop.f32.mrf.mxu2 }
 0x38c   : > { %v2401_v45 = vpop.permute.xlu0 %2400 }
 0x38d   : > { %v2453_v27 = vsel %vm1211_vm1, %v2277_v62, %v2401_v45  ;;  %v3034_v62 = vadd.f32 %v6664_v58, %v7184_v4  ;;  %v2279_v4 = vpack.c.b16 %v2261_v34, %v2260_v7 }
 0x38e   : > { %v2508_v23 = vunpack.c.l.b16 %v2453_v27  ;;  %v2509_v59 = vunpack.c.h.b16 %v2453_v27  ;;  %v3209_v27 = vpack.c.bf16 %v6735_v10, %v6735_v10  ;;  %v2258_v10 = vunpack.c.l.b16 %v1569_v49 }
 0x38f   : > { %v3143_v29 = vmul.f32 0.2, %v3034_v62  ;;  %vm3107_vm9 = vcmp.gt.f32.partialorder %v3034_v62, 0.0 }
 0x390   : > { %v2544_v12 = vpack.c.b16 %v2508_v23, %v2508_v23  ;;  %v2545_v47 = vpack.c.b16 %v2509_v59, %v2509_v59  ;;  %v3927_v23 = vpack.c.b16 %v3895_v24, %v3894_v39  ;;  %v3141_v59 = vmul.f32 0.2, %v3029_v18  ;;  %v6761_v39 = vpop.f32.mrf.mxu2 }
 0x391   : > { %v3179_v20 = vsel %vm3107_vm9, %v3034_v62, %v3143_v29  ;;  %v2278_v32 = vpack.c.b16 %v2259_v0, %v2258_v10  ;;  %v3156_v62 = vmul.f32 0.2, %v3067_v2 }
 0x392   : > { %2617 = vst.msk [vmem:[%s6350_s9 + $0x78] sm:$0xf] %vm2586_vm7, %v2544_v12  ;;  %v3177_v21 = vsel %vm3105_vm6, %v3029_v18, %v3141_v59  ;;  %v3215_v3 = vpack.c.bf16 %v3179_v20, %v3179_v20 }
 0x393   : > { %2618 = vst.msk [vmem:[%s6350_s9 + $0x7c] sm:$0xf] %vm2586_vm7, %v2545_v47  ;;  %v3157_v47 = vmul.f32 0.2, %v3069_v55  ;;  %v3213_v63 = vpack.c.bf16 %v3177_v21, %v3177_v21  ;;  %v3192_v17 = vsel %vm3120_vm11, %v3067_v2, %v3156_v62  ;;  %v3074_v62 = vadd.f32 %v6664_v58, %v6686_v8 }
 0x394   : > { %v4033_v60 = vpop.permute.xlu0 %4032  ;;  %v3899_v34 = vunpack.c.l.b16 %v3215_v3 }
 0x395   : > { %v4070_v13 = vsel %vm1211_vm1, %v3924_v22, %v4033_v60  ;;  %v3193_v18 = vsel %vm3121_vm10, %v3069_v55, %v3157_v47  ;;  %v7185_v55 = vld [vmem:[#allocation21_spill] sm:$0xff]  ;;  %v3084_v47 = vadd.f32 %v6664_v58, %v6744_v36  ;;  %v3228_v36 = vpack.c.bf16 %v3192_v17, %v3192_v17 }
 0x396   : > { %v4140_v30 = vunpack.c.l.b16 %v4070_v13  ;;  %v4141_v9 = vunpack.c.h.b16 %v4070_v13  ;;  %v3891_v13 = vunpack.c.l.b16 %v3207_v19  ;;  %v3229_v51 = vpack.c.bf16 %v3193_v18, %v3193_v18 }
 0x397   : > { %vm3127_vm2 = vcmp.gt.f32.partialorder %v3084_v47, 0.0  ;;  %v3929_v8 = vpack.c.b16 %v3899_v34, %v3898_v37  ;;  %vm3123_vm3 = vcmp.gt.f32.partialorder %v3074_v62, 0.0 }
 0x398   : > { %v4176_v44 = vpack.c.b16 %v4140_v30, %v4140_v30  ;;  %v4177_v45 = vpack.c.b16 %v4141_v9, %v4141_v9  ;;  %v3893_v30 = vunpack.c.l.b16 %v3209_v27  ;;  %v3212_v9 = vpack.c.bf16 %v3176_v46, %v3176_v46  ;;  %v7186_v27 = vld [vmem:[#allocation3_spill] sm:$0xff]  ;;  %v6787_v10 = vpop.f32.mrf.mxu2 }
 0x399   : > { %v7187_v28 = vpack.c.b16 %v7185_v55, %v7186_v27  ;;  %v3082_v46 = vadd.f32 %v6664_v58, %v6715_v38  ;;  %v3925_v21 = vpack.c.b16 %v3891_v13, %v3890_v33  ;;  %v3897_v38 = vunpack.c.l.b16 %v3213_v63 }
 0x39a   : > { %4441 = vst.msk [vmem:[%s6350_s9 + $0x90] sm:$0xf] %vm2586_vm7, %v4176_v44  ;;  %v3926_v40 = vpack.c.b16 %v3893_v30, %v3892_v1  ;;  %v3913_v2 = vunpack.c.l.b16 %v3229_v51  ;;  %v3163_v33 = vmul.f32 0.2, %v3084_v47 }
 0x39b   : > { %4442 = vst.msk [vmem:[%s6350_s9 + $0x94] sm:$0xf] %vm2586_vm7, %v4177_v45  ;;  %vm3126_vm13 = vcmp.gt.f32.partialorder %v3082_v46, 0.0 }
 0x39c   : > { %v4039_v12 = vpop.permute.xlu0 %4038  ;;  %v3199_v53 = vsel %vm3127_vm2, %v3084_v47, %v3163_v33 }
 0x39d   : > { %v4079_v6 = vsel %vm1211_vm1, %v3927_v23, %v4039_v12 }
 0x39e   : > { %v4146_v15 = vunpack.c.l.b16 %v4079_v6  ;;  %v4147_v22 = vunpack.c.h.b16 %v4079_v6 }
 0x3a0   : > { %v4182_v60 = vpack.c.b16 %v4146_v15, %v4146_v15  ;;  %v4183_v24 = vpack.c.b16 %v4147_v22, %v4147_v22  ;;  %v3896_v15 = vunpack.c.l.b16 %v3212_v9 }
 0x3a1   : > { %v2403_v16 = vpop.permute.xlu1 %2402 }
 0x3a2   : > { %4447 = vst.msk [vmem:[%s6350_s9 + $0xa8] sm:$0xf] %vm2586_vm7, %v4182_v60  ;;  %v2456_v25 = vsel %vm1211_vm1, %v2278_v32, %v2403_v16  ;;  %v3162_v60 = vmul.f32 0.2, %v3082_v46 }
 0x3a3   : > { %4448 = vst.msk [vmem:[%s6350_s9 + $0xac] sm:$0xf] %vm2586_vm7, %v4183_v24  ;;  %v2405_v48 = vpop.permute.xlu2 %2404  ;;  %v2510_v45 = vunpack.c.l.b16 %v2456_v25  ;;  %v2511_v19 = vunpack.c.h.b16 %v2456_v25 }
 0x3a4   : > { %v4045_v44 = vpop.permute.xlu0 %4044  ;;  %v2459_v26 = vsel %vm1211_vm1, %v2279_v4, %v2405_v48  ;;  %v3158_v4 = vmul.f32 0.2, %v3072_v42  ;;  %v3198_v48 = vsel %vm3126_vm13, %v3082_v46, %v3162_v60  ;;  %v3079_v46 = vadd.f32 %v6664_v58, %v6702_v11 }
 0x3a5   : > { %v4088_v14 = vsel %vm1211_vm1, %v7187_v28, %v4045_v44  ;;  %v2512_v23 = vunpack.c.l.b16 %v2459_v26  ;;  %v2513_v59 = vunpack.c.h.b16 %v2459_v26  ;;  %v2546_v29 = vpack.c.b16 %v2510_v45, %v2510_v45 }
 0x3a6   : > { %v4152_v49 = vunpack.c.l.b16 %v4088_v14  ;;  %v4153_v57 = vunpack.c.h.b16 %v4088_v14  ;;  %v2547_v12 = vpack.c.b16 %v2511_v19, %v2511_v19  ;;  %v3912_v44 = vunpack.c.l.b16 %v3228_v36 }
 0x3a7   : > { %v2548_v6 = vpack.c.b16 %v2512_v23, %v2512_v23  ;;  %v2549_v0 = vpack.c.b16 %v2513_v59, %v2513_v59  ;;  %2619 = vst.msk [vmem:[%s6350_s9 + $0x80] sm:$0xf] %vm2586_vm7, %v2546_v29  ;;  %v3928_v26 = vpack.c.b16 %v3897_v38, %v3896_v15  ;;  %v6814_v55 = vsel %vm3122_vm12, %v3072_v42, %v3158_v4  ;;  %v3091_v59 = vpop.f32.mrf.mxu2 }
 0x3a8   : > { %v4188_v22 = vpack.c.b16 %v4152_v49, %v4152_v49  ;;  %2620 = vst.msk [vmem:[%s6350_s9 + $0x84] sm:$0xf] %vm2586_vm7, %v2547_v12  ;;  %v4189_v20 = vpack.c.b16 %v4153_v57, %v4153_v57  ;;  %v3234_v27 = vpack.c.bf16 %v3198_v48, %v3198_v48  ;;  %v3235_v28 = vpack.c.bf16 %v3199_v53, %v3199_v53 }
 0x3a9   : > { %2621 = vst.msk [vmem:[%s6350_s9 + $0x88] sm:$0xf] %vm2586_vm7, %v2548_v6  ;;  %v4035_v24 = vpop.permute.xlu1 %4034  ;;  %v3936_v23 = vpack.c.b16 %v3913_v2, %v3912_v44  ;;  %v3159_v49 = vmul.f32 0.2, %v3074_v62  ;;  %v3077_v57 = vadd.f32 %v6664_v58, %v6692_v50  ;;  %v3161_v34 = vmul.f32 0.2, %v3079_v46 }
 0x3aa   : > { %2622 = vst.msk [vmem:[%s6350_s9 + $0x8c] sm:$0xf] %vm2586_vm7, %v2549_v0  ;;  %v4073_v13 = vsel %vm1211_vm1, %v3925_v21, %v4035_v24  ;;  %v3918_v21 = vunpack.c.l.b16 %v3234_v27  ;;  %vm3125_vm0 = vcmp.gt.f32.partialorder %v3079_v46, 0.0  ;;  %v3230_v24 = vpack.c.bf16 %v6814_v55, %v6814_v55 }
 0x3ab   : > { %v4037_v7 = vpop.permute.xlu2 %4036  ;;  %4453 = vst.msk [vmem:[%s6350_s9 + $0xc0] sm:$0xf] %vm2586_vm7, %v4188_v22  ;;  %v4142_v1 = vunpack.c.l.b16 %v4073_v13  ;;  %v4143_v30 = vunpack.c.h.b16 %v4073_v13  ;;  %v3195_v33 = vsel %vm3123_vm3, %v3074_v62, %v3159_v49  ;;  %vm3124_vm14 = vcmp.gt.f32.partialorder %v3077_v57, 0.0 }
 0x3ac   : > { %v4051_v18 = vpop.permute.xlu0 %4050  ;;  %v4076_v9 = vsel %vm1211_vm1, %v3926_v40, %v4037_v7  ;;  %4454 = vst.msk [vmem:[%s6350_s9 + $0xc4] sm:$0xf] %vm2586_vm7, %v4189_v20  ;;  %v3919_v40 = vunpack.c.l.b16 %v3235_v28  ;;  %v3231_v49 = vpack.c.bf16 %v3195_v33, %v3195_v33 }
 0x3ad   : > { %v4097_v32 = vsel %vm1211_vm1, %v3933_v35, %v4051_v18  ;;  %v4144_v63 = vunpack.c.l.b16 %v4076_v9  ;;  %v4145_v56 = vunpack.c.h.b16 %v4076_v9  ;;  %v4178_v51 = vpack.c.b16 %v4142_v1, %v4142_v1  ;;  %v7188_v9 = vld [vmem:[#allocation52_spill] sm:$0xff] }
 0x3ae   : > { %v4158_v3 = vunpack.c.l.b16 %v4097_v32  ;;  %v4159_v16 = vunpack.c.h.b16 %v4097_v32  ;;  %v4179_v25 = vpack.c.b16 %v4143_v30, %v4143_v30  ;;  %v3939_v7 = vpack.c.b16 %v3919_v40, %v3918_v21  ;;  %v7189_v32 = vld [vmem:[#allocation39_spill] sm:$0xff] }
 0x3af   : > { %v4180_v54 = vpack.c.b16 %v4144_v63, %v4144_v63  ;;  %v4181_v35 = vpack.c.b16 %v4145_v56, %v4145_v56  ;;  %4443 = vst.msk [vmem:[%s6350_s9 + $0x98] sm:$0xf] %vm2586_vm7, %v4178_v51  ;;  %v3160_v18 = vmul.f32 0.2, %v3077_v57  ;;  %v3197_v1 = vsel %vm3125_vm0, %v3079_v46, %v3161_v34  ;;  %v7191_v51 = vld [vmem:[#allocation37_spill] sm:$0xff] }
 0x3b0   : > { %v4194_v45 = vpack.c.b16 %v4158_v3, %v4158_v3  ;;  %4444 = vst.msk [vmem:[%s6350_s9 + $0x9c] sm:$0xf] %vm2586_vm7, %v4179_v25  ;;  %v4195_v19 = vpack.c.b16 %v4159_v16, %v4159_v16  ;;  %v3087_v30 = vadd.f32 %v6664_v58, %v6761_v39  ;;  %v7190_v63 = vpack.c.b16 %v7188_v9, %v7189_v32  ;;  %v7192_v25 = vld [vmem:[#allocation59_spill] sm:$0xff] }
 0x3b1   : > { %4445 = vst.msk [vmem:[%s6350_s9 + $0xa0] sm:$0xf] %vm2586_vm7, %v4180_v54  ;;  %v4041_v14 = vpop.permute.xlu1 %4040  ;;  %v7193_v48 = vpack.c.b16 %v7191_v51, %v7192_v25  ;;  %v3093_v54 = vpop.f32.mrf.mxu2  ;;  %v3196_v46 = vsel %vm3124_vm14, %v3077_v57, %v3160_v18  ;;  %v3915_v21 = vunpack.c.l.b16 %v3231_v49 }
 0x3b2   : > { %4446 = vst.msk [vmem:[%s6350_s9 + $0xa4] sm:$0xf] %vm2586_vm7, %v4181_v35  ;;  %v4082_v42 = vsel %vm1211_vm1, %v3928_v26, %v4041_v14  ;;  %v3089_v26 = vadd.f32 %v6664_v58, %v6787_v10  ;;  %vm3128_vm15 = vcmp.gt.f32.partialorder %v3087_v30, 0.0  ;;  %v3164_v10 = vmul.f32 0.2, %v3087_v30 }
 0x3b3   : > { %v4043_v29 = vpop.permute.xlu2 %4042  ;;  %4459 = vst.msk [vmem:[%s6350_s9 + $0xd8] sm:$0xf] %vm2586_vm7, %v4194_v45  ;;  %v4148_v17 = vunpack.c.l.b16 %v4082_v42  ;;  %v4149_v47 = vunpack.c.h.b16 %v4082_v42  ;;  %v3232_v57 = vpack.c.bf16 %v3196_v46, %v3196_v46 }
 0x3b4   : > { %v4057_v12 = vpop.permute.xlu0 %4056  ;;  %v4085_v6 = vsel %vm1211_vm1, %v3929_v8, %v4043_v29  ;;  %4460 = vst.msk [vmem:[%s6350_s9 + $0xdc] sm:$0xf] %vm2586_vm7, %v4195_v19  ;;  %v3092_v8 = vadd.f32 %v6664_v58, %v3091_v59  ;;  %v3233_v29 = vpack.c.bf16 %v3197_v1, %v3197_v1  ;;  %vm3129_vm4 = vcmp.gt.f32.partialorder %v3089_v26, 0.0 }
 0x3b5   : > { %v4106_v0 = vsel %vm1211_vm1, %v3936_v23, %v4057_v12  ;;  %v4150_v50 = vunpack.c.l.b16 %v4085_v6  ;;  %v4151_v11 = vunpack.c.h.b16 %v4085_v6  ;;  %v4184_v38 = vpack.c.b16 %v4148_v17, %v4148_v17 }
 0x3b6   : > { %v4164_v15 = vunpack.c.l.b16 %v4106_v0  ;;  %v4165_v22 = vunpack.c.h.b16 %v4106_v0  ;;  %v4185_v37 = vpack.c.b16 %v4149_v47, %v4149_v47  ;;  %v3094_v23 = vadd.f32 %v6664_v58, %v3093_v54 }
 0x3b7   : > { %v4186_v20 = vpack.c.b16 %v4150_v50, %v4150_v50  ;;  %v4187_v36 = vpack.c.b16 %v4151_v11, %v4151_v11  ;;  %4449 = vst.msk [vmem:[%s6350_s9 + $0xb0] sm:$0xf] %vm2586_vm7, %v4184_v38  ;;  %v3914_v12 = vunpack.c.l.b16 %v3230_v24  ;;  %v3165_v17 = vmul.f32 0.2, %v3089_v26 }
 0x3b8   : > { %v4200_v2 = vpack.c.b16 %v4164_v15, %v4164_v15  ;;  %4450 = vst.msk [vmem:[%s6350_s9 + $0xb4] sm:$0xf] %vm2586_vm7, %v4185_v37  ;;  %v4201_v60 = vpack.c.b16 %v4165_v22, %v4165_v22  ;;  %vm3130_vm5 = vcmp.gt.f32.partialorder %v3092_v8, 0.0  ;;  %v3166_v47 = vmul.f32 0.2, %v3092_v8 }
 0x3b9   : > { %4451 = vst.msk [vmem:[%s6350_s9 + $0xb8] sm:$0xf] %vm2586_vm7, %v4186_v20  ;;  %v4047_v13 = vpop.permute.xlu1 %4046  ;;  %v3167_v6 = vmul.f32 0.2, %v3094_v23  ;;  %vm3131_vm6 = vcmp.gt.f32.partialorder %v3094_v23, 0.0  ;;  %v3917_v40 = vunpack.c.l.b16 %v3233_v29  ;;  %v3201_v38 = vsel %vm3129_vm4, %v3089_v26, %v3165_v17 }
 0x3ba   : > { %4452 = vst.msk [vmem:[%s6350_s9 + $0xbc] sm:$0xf] %vm2586_vm7, %v4187_v36  ;;  %v4091_v56 = vsel %vm1211_vm1, %v7190_v63, %v4047_v13  ;;  %v3202_v61 = vsel %vm3130_vm5, %v3092_v8, %v3166_v47  ;;  %v3916_v36 = vunpack.c.l.b16 %v3232_v57  ;;  %v3937_v24 = vpack.c.b16 %v3915_v21, %v3914_v12 }
 0x3bb   : > { %v4049_v3 = vpop.permute.xlu2 %4048  ;;  %4465 = vst.msk [vmem:[%s6350_s9 + $0xf0] sm:$0xf] %vm2586_vm7, %v4200_v2  ;;  %v4154_v4 = vunpack.c.l.b16 %v4091_v56  ;;  %v4155_v62 = vunpack.c.h.b16 %v4091_v56  ;;  %v3203_v5 = vsel %vm3131_vm6, %v3094_v23, %v3167_v6  ;;  %v3238_v33 = vpack.c.bf16 %v3202_v61, %v3202_v61 }
 0x3bc   : > { %v4063_v16 = vpop.permute.xlu0 %4062  ;;  %v4094_v53 = vsel %vm1211_vm1, %v7193_v48, %v4049_v3  ;;  %4466 = vst.msk [vmem:[%s6350_s9 + $0xf4] sm:$0xf] %vm2586_vm7, %v4201_v60  ;;  %v3237_v60 = vpack.c.bf16 %v3201_v38, %v3201_v38  ;;  %v3239_v13 = vpack.c.bf16 %v3203_v5, %v3203_v5  ;;  %v3938_v18 = vpack.c.b16 %v3917_v40, %v3916_v36 }
 0x3bd   : > { %v4115_v39 = vsel %vm1211_vm1, %v3939_v7, %v4063_v16  ;;  %v4156_v35 = vunpack.c.l.b16 %v4094_v53  ;;  %v4157_v44 = vunpack.c.h.b16 %v4094_v53  ;;  %v4190_v55 = vpack.c.b16 %v4154_v4, %v4154_v4 }
 0x3be   : > { %v4170_v45 = vunpack.c.l.b16 %v4115_v39  ;;  %v4171_v19 = vunpack.c.h.b16 %v4115_v39  ;;  %v4191_v27 = vpack.c.b16 %v4155_v62, %v4155_v62  ;;  %v3921_v3 = vunpack.c.l.b16 %v3237_v60 }
 0x3bf   : > { %v4192_v28 = vpack.c.b16 %v4156_v35, %v4156_v35  ;;  %v4193_v14 = vpack.c.b16 %v4157_v44, %v4157_v44  ;;  %4455 = vst.msk [vmem:[%s6350_s9 + $0xc8] sm:$0xf] %vm2586_vm7, %v4190_v55  ;;  %v3922_v62 = vunpack.c.l.b16 %v3238_v33  ;;  %v3923_v51 = vunpack.c.l.b16 %v3239_v13 }
 0x3c0   : > { %v4206_v42 = vpack.c.b16 %v4170_v45, %v4170_v45  ;;  %4456 = vst.msk [vmem:[%s6350_s9 + $0xcc] sm:$0xf] %vm2586_vm7, %v4191_v27  ;;  %v4207_v59 = vpack.c.b16 %v4171_v19, %v4171_v19 }
 0x3c1   : > { %4457 = vst.msk [vmem:[%s6350_s9 + $0xd0] sm:$0xf] %vm2586_vm7, %v4192_v28  ;;  %v4053_v58 = vpop.permute.xlu1 %4052  ;;  %v3941_v44 = vpack.c.b16 %v3923_v51, %v3922_v62 }
 0x3c2   : > { %4458 = vst.msk [vmem:[%s6350_s9 + $0xd4] sm:$0xf] %vm2586_vm7, %v4193_v14  ;;  %v4100_v0 = vsel %vm1211_vm1, %v3934_v31, %v4053_v58  ;;  %v3200_v31 = vsel %vm3128_vm15, %v3087_v30, %v3164_v10 }
 0x3c3   : > { %v4055_v50 = vpop.permute.xlu2 %4054  ;;  %4471 = vst.msk [vmem:[%s6350_s9 + $0x108] sm:$0xf] %vm2586_vm7, %v4206_v42  ;;  %v4160_v11 = vunpack.c.l.b16 %v4100_v0  ;;  %v4161_v15 = vunpack.c.h.b16 %v4100_v0  ;;  %v3236_v2 = vpack.c.bf16 %v3200_v31, %v3200_v31 }
 0x3c4   : > { %v4103_v22 = vsel %vm1211_vm1, %v3935_v41, %v4055_v50  ;;  %4472 = vst.msk [vmem:[%s6350_s9 + $0x10c] sm:$0xf] %vm2586_vm7, %v4207_v59 }
 0x3c5   : > { %v4162_v43 = vunpack.c.l.b16 %v4103_v22  ;;  %v4163_v52 = vunpack.c.h.b16 %v4103_v22  ;;  %v4196_v37 = vpack.c.b16 %v4160_v11, %v4160_v11  ;;  %v4197_v34 = vpack.c.b16 %v4161_v15, %v4161_v15 }
 0x3c6   : > { %v3920_v56 = vunpack.c.l.b16 %v3236_v2 }
 0x3c7   : > { %v4198_v20 = vpack.c.b16 %v4162_v43, %v4162_v43  ;;  %v4199_v41 = vpack.c.b16 %v4163_v52, %v4163_v52  ;;  %4461 = vst.msk [vmem:[%s6350_s9 + $0xe0] sm:$0xf] %vm2586_vm7, %v4196_v37 }
 0x3c8   : > { %4462 = vst.msk [vmem:[%s6350_s9 + $0xe4] sm:$0xf] %vm2586_vm7, %v4197_v34  ;;  %v3940_v54 = vpack.c.b16 %v3921_v3, %v3920_v56 }
 0x3c9   : > { %4463 = vst.msk [vmem:[%s6350_s9 + $0xe8] sm:$0xf] %vm2586_vm7, %v4198_v20  ;;  %v4059_v7 = vpop.permute.xlu1 %4058 }
 0x3ca   : > { %4464 = vst.msk [vmem:[%s6350_s9 + $0xec] sm:$0xf] %vm2586_vm7, %v4199_v41  ;;  %v4109_v1 = vsel %vm1211_vm1, %v3937_v24, %v4059_v7 }
 0x3cb   : > { %v4061_v30 = vpop.permute.xlu2 %4060  ;;  %v4166_v9 = vunpack.c.l.b16 %v4109_v1  ;;  %v4167_v32 = vunpack.c.h.b16 %v4109_v1 }
 0x3cc   : > { %v4112_v63 = vsel %vm1211_vm1, %v3938_v18, %v4061_v30 }
 0x3cd   : > { %v4168_v16 = vunpack.c.l.b16 %v4112_v63  ;;  %v4169_v4 = vunpack.c.h.b16 %v4112_v63  ;;  %v4202_v25 = vpack.c.b16 %v4166_v9, %v4166_v9  ;;  %v4203_v48 = vpack.c.b16 %v4167_v32, %v4167_v32 }
 0x3cf   : > { %v4204_v53 = vpack.c.b16 %v4168_v16, %v4168_v16  ;;  %v4205_v39 = vpack.c.b16 %v4169_v4, %v4169_v4  ;;  %4467 = vst.msk [vmem:[%s6350_s9 + $0xf8] sm:$0xf] %vm2586_vm7, %v4202_v25 }
 0x3d0   : > { %4468 = vst.msk [vmem:[%s6350_s9 + $0xfc] sm:$0xf] %vm2586_vm7, %v4203_v48 }
 0x3d1   : > { %4469 = vst.msk [vmem:[%s6350_s9 + $0x100] sm:$0xf] %vm2586_vm7, %v4204_v53  ;;  %v4065_v35 = vpop.permute.xlu1 %4064 }
 0x3d2   : > { %4470 = vst.msk [vmem:[%s6350_s9 + $0x104] sm:$0xf] %vm2586_vm7, %v4205_v39  ;;  %v4118_v45 = vsel %vm1211_vm1, %v3940_v54, %v4065_v35 }
 0x3d3   : > { %v4067_v19 = vpop.permute.xlu2 %4066  ;;  %v4172_v26 = vunpack.c.l.b16 %v4118_v45  ;;  %v4173_v8 = vunpack.c.h.b16 %v4118_v45 }
 0x3d4   : > { %v4121_v55 = vsel %vm1211_vm1, %v3941_v44, %v4067_v19 }
 0x3d5   : > { %v4174_v27 = vunpack.c.l.b16 %v4121_v55  ;;  %v4175_v28 = vunpack.c.h.b16 %v4121_v55  ;;  %v4208_v14 = vpack.c.b16 %v4172_v26, %v4172_v26  ;;  %v4209_v23 = vpack.c.b16 %v4173_v8, %v4173_v8 }
 0x3d7   : > { %v4210_v49 = vpack.c.b16 %v4174_v27, %v4174_v27  ;;  %v4211_v46 = vpack.c.b16 %v4175_v28, %v4175_v28  ;;  %4473 = vst.msk [vmem:[%s6350_s9 + $0x110] sm:$0xf] %vm2586_vm7, %v4208_v14 }
 0x3d8   : > { %4474 = vst.msk [vmem:[%s6350_s9 + $0x114] sm:$0xf] %vm2586_vm7, %v4209_v23 }
 0x3d9   : > { %4475 = vst.msk [vmem:[%s6350_s9 + $0x118] sm:$0xf] %vm2586_vm7, %v4210_v49 }
 0x3da   : > { %4476 = vst.msk [vmem:[%s6350_s9 + $0x11c] sm:$0xf] %vm2586_vm7, %v4211_v46 }
 0x3db PF: > { %s13_s12 = sadd.s32 1, %s4506_s12  }
 0x3dc   : > { %p10_p4 = scmp.ge.s32.totalorder %s13_s12, 4  }
 0x3de   :  { %12 = sbr.rel (!%p10_p4) target bundleno = 1 (0x1), region = 66 }

</bundles_post_ra>
